<compile_context>
chip_gen: v7x
topology: tpu7x:2x2x1
jax: 0.10.0
libtpu: 0.0.40
codegen_flags: <defaults>
</compile_context>

<pallas_src>
import jax
import jax.numpy as jnp
from jax.experimental import pallas as pl
from jax.experimental.pallas import tpu as pltpu

# ---------------------------------------------------------------------------
# Problem sizes (module hard-codes the fused feature dim 1460)
# ---------------------------------------------------------------------------
BATCH = 2
MODALITY_DIMS = (600, 480, 380)          # flattened per-modality feature dims
IN_DIM = sum(MODALITY_DIMS)              # == 1460, matches MLP(1460, 1460, 2)
PAD_DIMS = (640, 512, 384)               # lane(128)/bf16-sublane(16) friendly storage
HID_DIM = 1460
HID_PAD = 1536                           # 1460 padded to a multiple of 2*128
OUT_DIM = 2


# ---------------------------------------------------------------------------
# Pallas kernel: per-modality split matmul -> bias -> relu -> transposed layer-2.
# Runs once per hidden-column block (grid=(n_hidden_splits,)).
# ---------------------------------------------------------------------------
def urfunny_kernel(m0_ref, m1_ref, m2_ref,
                   w1a_ref, w1b_ref, w1c_ref, b1_ref, w2t_ref,
                   out_ref):
    # Layer 1, Concat() fused away: split the (B,1460)@(1460,H) matmul into three
    # per-modality partial dots (bf16 operands, f32 MXU accumulation).  The zero-
    # padded input columns / weight rows contribute exactly 0.
    h = jnp.dot(m0_ref[...].astype(jnp.bfloat16), w1a_ref[...],
                preferred_element_type=jnp.float32)
    h += jnp.dot(m1_ref[...].astype(jnp.bfloat16), w1b_ref[...],
                 preferred_element_type=jnp.float32)
    h += jnp.dot(m2_ref[...].astype(jnp.bfloat16), w1c_ref[...],
                 preferred_element_type=jnp.float32)
    h = jnp.maximum(h + b1_ref[...], 0.0)

    # TODO(synk): MLP supports optional dropout; default dropout=False, so omitted.

    # Layer 2 with w2 stored transposed (OUT_DIM, HID_PAD): VPU multiply + lane
    # reduction per output column instead of a lane-sparse (hid_blk, 2) MXU tile.
    # Partials for each hidden block are summed (plus b2) in the wrapper.
    w2t = w2t_ref[...].astype(jnp.float32)                      # (OUT_DIM, hid_blk)
    for o in range(OUT_DIM):
        y = jnp.sum(h * w2t[o:o + 1, :], axis=-1, keepdims=True)   # (B, 1)
        out_ref[:, o:o + 1] = y.astype(out_ref.dtype)


# ---------------------------------------------------------------------------
# Hardware gating: 2-way hidden split only where there are 2 TensorCores per chip.
# ---------------------------------------------------------------------------
def _tensorcores_per_chip():
    """Best-effort TensorCores-per-chip query (v7x = 2, v5e/v6e = 1)."""
    try:
        info = pltpu.get_tpu_info()
        for attr in ("tensorcores_per_chip", "num_tensorcores", "cores_per_chip"):
            v = getattr(info, attr, None)
            if isinstance(v, int) and v > 0:
                return v
    except Exception:
        pass
    try:
        kind = str(jax.devices()[0].device_kind).lower()
        if "v7" in kind or "tpu7" in kind:
            return 2
    except Exception:
        pass
    return 1


def _flatten_and_pad(m, target):
    """Concat()'s per-modality flatten + zero-pad of the feature dim to the stored
    lane-friendly width (the matching w1 rows are zero, so this adds exactly 0)."""
    m = m.reshape(m.shape[0], -1)
    pad = target - m.shape[1]
    return jnp.pad(m, ((0, 0), (0, pad))) if pad else m


def global_model_urfunny(input_list, params, hidden_splits=None, core_parallel=None):
    """Forward pass of GlobalModelForURFUNNY.  input_list: three modality tensors
    (any rank, leading batch dim).  Returns (B, 2) float32 logits."""
    w1a, w1b, w1c, b1, w2t, b2 = params
    m0, m1, m2 = (_flatten_and_pad(m, d) for m, d in zip(input_list, PAD_DIMS))
    B = m0.shape[0]
    d0, d1, d2 = m0.shape[1], m1.shape[1], m2.shape[1]
    hid_p = b1.shape[-1]

    cores = _tensorcores_per_chip()
    n = hidden_splits if hidden_splits is not None else (2 if cores >= 2 else 1)
    if n < 1 or hid_p % (n * 128) != 0:
        n = 1
    hid_blk = hid_p // n

    # Dimension semantics: CORE_PARALLEL only when the split matches a real 2-TC chip.
    if core_parallel is None:
        core_parallel = (n == 2 and cores == 2)
    if n == 1:
        sems = ("arbitrary",)
    elif core_parallel:
        sems = (getattr(pltpu, "CORE_PARALLEL", "parallel"),)
    else:
        sems = ("parallel",)

    # Single grid step -> double-buffering ~4.7 MB of weights is pure VMEM waste
    # (relevant to v5e's 16 MiB scoped default); request single buffers.
    _Buffered = getattr(pl, "Buffered", None)
    wkw = {"pipeline_mode": _Buffered(1)} if (n == 1 and _Buffered is not None) else {}

    cost = pl.CostEstimate(
        flops=2 * B * (d0 + d1 + d2) * hid_p + 2 * B * hid_p * OUT_DIM,
        transcendentals=0,
        bytes_accessed=(sum(int(x.size) * x.dtype.itemsize
                            for x in (m0, m1, m2, w1a, w1b, w1c, b1, w2t, b2))
                        + n * B * OUT_DIM * 4),
    )

    partials = pl.pallas_call(
        urfunny_kernel,
        out_shape=jax.ShapeDtypeStruct((n, B, OUT_DIM), jnp.float32),
        grid=(n,),
        in_specs=[
            pl.BlockSpec((B, d0), lambda j: (0, 0)),               # modality inputs
            pl.BlockSpec((B, d1), lambda j: (0, 0)),               # stay resident
            pl.BlockSpec((B, d2), lambda j: (0, 0)),               # across hidden split
            pl.BlockSpec((d0, hid_blk), lambda j: (0, j), **wkw),  # w1 row-blocks,
            pl.BlockSpec((d1, hid_blk), lambda j: (0, j), **wkw),  #   column-split
            pl.BlockSpec((d2, hid_blk), lambda j: (0, j), **wkw),
            pl.BlockSpec((1, hid_blk), lambda j: (0, j)),          # b1 column-split
            pl.BlockSpec((OUT_DIM, hid_blk), lambda j: (0, j), **wkw),  # w2^T col-split
        ],
        out_specs=pl.BlockSpec((None, B, OUT_DIM), lambda j: (j, 0, 0)),
        compiler_params=pltpu.CompilerParams(dimension_semantics=sems),
        cost_estimate=cost,
    )(m0, m1, m2, w1a, w1b, w1c, b1, w2t)

    # Tiny (n, B, 2) partial-sum + final bias in the wrapper.
    return jnp.sum(partials, axis=0) + b2


# ---------------------------------------------------------------------------
# Deterministic parameter init (PyTorch nn.Linear default: U(-1/sqrt(fan_in), +)),
# stored in the kernel-friendly layout: bf16 weights, hidden dim zero-padded to 1536,
# w1 pre-split by modality with rows zero-padded to (640, 512, 384), and w2 stored
# transposed as a lane-dense (2, 1536) array.  All padding contributes exactly 0.
# ---------------------------------------------------------------------------
def init_params(key):
    k1, k2, k3, k4 = jax.random.split(key, 4)
    b_in = 1.0 / (IN_DIM ** 0.5)
    b_hid = 1.0 / (HID_DIM ** 0.5)
    w1 = jax.random.uniform(k1, (IN_DIM, HID_DIM), jnp.float32, -b_in, b_in)
    b1 = jax.random.uniform(k2, (1, HID_DIM), jnp.float32, -b_in, b_in)
    w2 = jax.random.uniform(k3, (HID_DIM, OUT_DIM), jnp.float32, -b_hid, b_hid)
    b2 = jax.random.uniform(k4, (1, OUT_DIM), jnp.float32, -b_hid, b_hid)

    hpad = HID_PAD - HID_DIM
    w1 = jnp.pad(w1, ((0, 0), (0, hpad)))        # zero hidden-pad columns
    b1 = jnp.pad(b1, ((0, 0), (0, hpad)))        # zero bias on pad columns
    w2 = jnp.pad(w2, ((0, hpad), (0, 0)))        # zero rows for pad hidden units

    parts, off = [], 0
    for d, dp in zip(MODALITY_DIMS, PAD_DIMS):
        part = jnp.pad(w1[off:off + d], ((0, dp - d), (0, 0)))   # zero rows for padded
        parts.append(part.astype(jnp.bfloat16))                  # input features
        off += d
    w1a, w1b, w1c = parts

    w2t = w2.T.astype(jnp.bfloat16)              # (OUT_DIM, HID_PAD), lane-dense
    return w1a, w1b, w1c, b1, w2t, b2


def reference(input_list, params):
    """Pure-JAX reference of the module forward with the same bf16 weight storage."""
    w1a, w1b, w1c, b1, w2t, b2 = params
    x = jnp.concatenate(
        [_flatten_and_pad(m, d) for m, d in zip(input_list, PAD_DIMS)], axis=1)
    w1 = jnp.concatenate([w1a, w1b, w1c], axis=0)
    h = jnp.dot(x.astype(jnp.bfloat16), w1, preferred_element_type=jnp.float32) + b1
    h = jnp.maximum(h, 0.0)
    return jnp.dot(h, w2t.T.astype(jnp.float32),
                   preferred_element_type=jnp.float32) + b2


if __name__ == "__main__":
    key = jax.random.PRNGKey(0)
    kp, kx = jax.random.split(key)
    params = init_params(kp)

    mod_keys = jax.random.split(kx, len(MODALITY_DIMS))
    input_list = [
        jax.random.normal(mk, (BATCH, d), jnp.float32)
        for mk, d in zip(mod_keys, MODALITY_DIMS)
    ]

    ref = reference(input_list, params)

    # Default plan: single hidden block on 1-TC chips (v5e/v6e, single-buffered
    # weights), 2-way CORE_PARALLEL hidden split on 2-TC chips (v7x).
    out = jax.block_until_ready(global_model_urfunny(input_list, params))
    assert out.shape == (BATCH, OUT_DIM)
    assert jnp.allclose(out, ref, atol=1e-2, rtol=1e-2), "mismatch vs reference (auto)"

    # Also validate the 2-way hidden-split numerics on any chip (without forcing the
    # v7x-only CORE_PARALLEL codegen on a single-core part).
    out2 = jax.block_until_ready(
        global_model_urfunny(input_list, params, hidden_splits=2, core_parallel=False))
    assert out2.shape == (BATCH, OUT_DIM)
    assert jnp.allclose(out2, ref, atol=1e-2, rtol=1e-2), "mismatch vs reference (split=2)"

    print("KERNEL_OK")
</pallas_src>

<mosaic_0001>
module attributes {stable_mosaic.version = 11 : i64} {
  func.func @urfunny_kernel(%arg0: i32, %arg1: memref<2x640xf32, #tpu.memory_space<vmem>>, %arg2: memref<2x512xf32, #tpu.memory_space<vmem>>, %arg3: memref<2x384xf32, #tpu.memory_space<vmem>>, %arg4: memref<640x1536xbf16, #tpu.memory_space<vmem>>, %arg5: memref<512x1536xbf16, #tpu.memory_space<vmem>>, %arg6: memref<384x1536xbf16, #tpu.memory_space<vmem>>, %arg7: memref<1x1536xf32, #tpu.memory_space<vmem>>, %arg8: memref<2x1536xbf16, #tpu.memory_space<vmem>>, %arg9: memref<1x2x2xf32, #tpu.memory_space<vmem>>) attributes {dimension_semantics = [#tpu.dimension_semantics<arbitrary>], iteration_bounds = array<i64: 1>, scalar_prefetch = 0 : i64, scratch_operands = 0 : i64, tpu.core_type = #tpu.core_type<tc>, window_params = [{pipeline_mode = #tpu.pipeline_mode<synchronous>, transform_indices = @transform_0, window_bounds = array<i64: 2, 640>}, {pipeline_mode = #tpu.pipeline_mode<synchronous>, transform_indices = @transform_1, window_bounds = array<i64: 2, 512>}, {pipeline_mode = #tpu.pipeline_mode<synchronous>, transform_indices = @transform_2, window_bounds = array<i64: 2, 384>}, {pipeline_mode = #tpu.pipeline_mode<synchronous>, transform_indices = @transform_3, window_bounds = array<i64: 640, 1536>}, {pipeline_mode = #tpu.pipeline_mode<synchronous>, transform_indices = @transform_4, window_bounds = array<i64: 512, 1536>}, {pipeline_mode = #tpu.pipeline_mode<synchronous>, transform_indices = @transform_5, window_bounds = array<i64: 384, 1536>}, {transform_indices = @transform_6, window_bounds = array<i64: 1, 1536>}, {pipeline_mode = #tpu.pipeline_mode<synchronous>, transform_indices = @transform_7, window_bounds = array<i64: 2, 1536>}, {transform_indices = @transform_8, window_bounds = array<i64: 1, 2, 2>}]} {
    %c0 = arith.constant 0 : index
    %c0_0 = arith.constant 0 : index
    %0 = vector.load %arg1[%c0, %c0_0] : memref<2x640xf32, #tpu.memory_space<vmem>>, vector<2x640xf32>
    %1 = arith.truncf %0 : vector<2x640xf32> to vector<2x640xbf16>
    %c0_1 = arith.constant 0 : index
    %c0_2 = arith.constant 0 : index
    %2 = vector.load %arg4[%c0_1, %c0_2] : memref<640x1536xbf16, #tpu.memory_space<vmem>>, vector<640x1536xbf16>
    %cst = arith.constant dense<0.000000e+00> : vector<2x1536xf32>
    %3 = tpu.matmul %1, %2, %cst {dimension_numbers = #tpu.dot_dimension_numbers<[1], [0], [0], [1], [0, 0, 1, 1], [], []>} : vector<2x640xbf16>, vector<640x1536xbf16>, vector<2x1536xf32> -> vector<2x1536xf32>
    %c0_3 = arith.constant 0 : index
    %c0_4 = arith.constant 0 : index
    %4 = vector.load %arg2[%c0_3, %c0_4] : memref<2x512xf32, #tpu.memory_space<vmem>>, vector<2x512xf32>
    %5 = arith.truncf %4 : vector<2x512xf32> to vector<2x512xbf16>
    %c0_5 = arith.constant 0 : index
    %c0_6 = arith.constant 0 : index
    %6 = vector.load %arg5[%c0_5, %c0_6] : memref<512x1536xbf16, #tpu.memory_space<vmem>>, vector<512x1536xbf16>
    %cst_7 = arith.constant dense<0.000000e+00> : vector<2x1536xf32>
    %7 = tpu.matmul %5, %6, %cst_7 {dimension_numbers = #tpu.dot_dimension_numbers<[1], [0], [0], [1], [0, 0, 1, 1], [], []>} : vector<2x512xbf16>, vector<512x1536xbf16>, vector<2x1536xf32> -> vector<2x1536xf32>
    %8 = arith.addf %3, %7 : vector<2x1536xf32>
    %c0_8 = arith.constant 0 : index
    %c0_9 = arith.constant 0 : index
    %9 = vector.load %arg3[%c0_8, %c0_9] : memref<2x384xf32, #tpu.memory_space<vmem>>, vector<2x384xf32>
    %10 = arith.truncf %9 : vector<2x384xf32> to vector<2x384xbf16>
    %c0_10 = arith.constant 0 : index
    %c0_11 = arith.constant 0 : index
    %11 = vector.load %arg6[%c0_10, %c0_11] : memref<384x1536xbf16, #tpu.memory_space<vmem>>, vector<384x1536xbf16>
    %cst_12 = arith.constant dense<0.000000e+00> : vector<2x1536xf32>
    %12 = tpu.matmul %10, %11, %cst_12 {dimension_numbers = #tpu.dot_dimension_numbers<[1], [0], [0], [1], [0, 0, 1, 1], [], []>} : vector<2x384xbf16>, vector<384x1536xbf16>, vector<2x1536xf32> -> vector<2x1536xf32>
    %13 = arith.addf %8, %12 : vector<2x1536xf32>
    %c0_13 = arith.constant 0 : index
    %c0_14 = arith.constant 0 : index
    %14 = vector.load %arg7[%c0_13, %c0_14] : memref<1x1536xf32, #tpu.memory_space<vmem>>, vector<1x1536xf32>
    %15 = vector.broadcast %14 : vector<1x1536xf32> to vector<2x1536xf32>
    %16 = arith.addf %13, %15 : vector<2x1536xf32>
    %cst_15 = arith.constant 0.000000e+00 : f32
    %17 = vector.broadcast %cst_15 : f32 to vector<2x1536xf32>
    %18 = arith.maximumf %16, %17 : vector<2x1536xf32>
    %c0_16 = arith.constant 0 : index
    %c0_17 = arith.constant 0 : index
    %19 = vector.load %arg8[%c0_16, %c0_17] : memref<2x1536xbf16, #tpu.memory_space<vmem>>, vector<2x1536xbf16>
    %20 = arith.extf %19 : vector<2x1536xbf16> to vector<2x1536xf32>
    %21 = vector.extract_strided_slice %20 {offsets = [0, 0], sizes = [1, 1536], strides = [1, 1]} : vector<2x1536xf32> to vector<1x1536xf32>
    %22 = vector.broadcast %21 : vector<1x1536xf32> to vector<2x1536xf32>
    %23 = arith.mulf %18, %22 : vector<2x1536xf32>
    %cst_18 = arith.constant dense<0.000000e+00> : vector<2xf32>
    %24 = vector.multi_reduction <add>, %23, %cst_18 [1] : vector<2x1536xf32> to vector<2xf32>
    %25 = vector.shape_cast %24 : vector<2xf32> to vector<2x1xf32>
    %c0_19 = arith.constant 0 : index
    %c0_20 = arith.constant 0 : index
    %c0_21 = arith.constant 0 : index
    %26 = vector.load %arg9[%c0_19, %c0_20, %c0_21] : memref<1x2x2xf32, #tpu.memory_space<vmem>>, vector<1x2x1xf32>
    %27 = vector.shape_cast %26 : vector<1x2x1xf32> to vector<2x1xf32>
    %28 = vector.shape_cast %25 : vector<2x1xf32> to vector<1x2x1xf32>
    tpu.vector_store %arg9[%c0_19, %c0_20, %c0_21], %28 {strides = array<i32>} : memref<1x2x2xf32, #tpu.memory_space<vmem>>, vector<1x2x1xf32>,
    %29 = vector.extract_strided_slice %20 {offsets = [1, 0], sizes = [1, 1536], strides = [1, 1]} : vector<2x1536xf32> to vector<1x1536xf32>
    %30 = vector.broadcast %29 : vector<1x1536xf32> to vector<2x1536xf32>
    %31 = arith.mulf %18, %30 : vector<2x1536xf32>
    %cst_22 = arith.constant dense<0.000000e+00> : vector<2xf32>
    %32 = vector.multi_reduction <add>, %31, %cst_22 [1] : vector<2x1536xf32> to vector<2xf32>
    %33 = vector.shape_cast %32 : vector<2xf32> to vector<2x1xf32>
    %c0_23 = arith.constant 0 : index
    %c0_24 = arith.constant 0 : index
    %c1 = arith.constant 1 : index
    %34 = vector.load %arg9[%c0_23, %c0_24, %c1] : memref<1x2x2xf32, #tpu.memory_space<vmem>>, vector<1x2x1xf32>
    %35 = vector.shape_cast %34 : vector<1x2x1xf32> to vector<2x1xf32>
    %36 = vector.shape_cast %33 : vector<2x1xf32> to vector<1x2x1xf32>
    tpu.vector_store %arg9[%c0_23, %c0_24, %c1], %36 {strides = array<i32>} : memref<1x2x2xf32, #tpu.memory_space<vmem>>, vector<1x2x1xf32>,
    return
  }
  func.func @transform_0(%arg0: i32) -> (i32, i32) {
    %c0_i32 = arith.constant 0 : i32
    %c0_i32_0 = arith.constant 0 : i32
    %c0_i32_1 = arith.constant 0 : i32
    return %c0_i32, %c0_i32_0 : i32, i32
  }
  func.func @transform_1(%arg0: i32) -> (i32, i32) {
    %c0_i32 = arith.constant 0 : i32
    %c0_i32_0 = arith.constant 0 : i32
    %c0_i32_1 = arith.constant 0 : i32
    return %c0_i32, %c0_i32_0 : i32, i32
  }
  func.func @transform_2(%arg0: i32) -> (i32, i32) {
    %c0_i32 = arith.constant 0 : i32
    %c0_i32_0 = arith.constant 0 : i32
    %c0_i32_1 = arith.constant 0 : i32
    return %c0_i32, %c0_i32_0 : i32, i32
  }
  func.func @transform_3(%arg0: i32) -> (i32, i32) {
    %c0_i32 = arith.constant 0 : i32
    %c0_i32_0 = arith.constant 0 : i32
    return %c0_i32, %arg0 : i32, i32
  }
  func.func @transform_4(%arg0: i32) -> (i32, i32) {
    %c0_i32 = arith.constant 0 : i32
    %c0_i32_0 = arith.constant 0 : i32
    return %c0_i32, %arg0 : i32, i32
  }
  func.func @transform_5(%arg0: i32) -> (i32, i32) {
    %c0_i32 = arith.constant 0 : i32
    %c0_i32_0 = arith.constant 0 : i32
    return %c0_i32, %arg0 : i32, i32
  }
  func.func @transform_6(%arg0: i32) -> (i32, i32) {
    %c0_i32 = arith.constant 0 : i32
    %c0_i32_0 = arith.constant 0 : i32
    return %c0_i32, %arg0 : i32, i32
  }
  func.func @transform_7(%arg0: i32) -> (i32, i32) {
    %c0_i32 = arith.constant 0 : i32
    %c0_i32_0 = arith.constant 0 : i32
    return %c0_i32, %arg0 : i32, i32
  }
  func.func @transform_8(%arg0: i32) -> (i32, i32, i32) {
    %c0_i32 = arith.constant 0 : i32
    %c0_i32_0 = arith.constant 0 : i32
    %c0_i32_1 = arith.constant 0 : i32
    return %arg0, %c0_i32, %c0_i32_0 : i32, i32, i32
  }
}

</mosaic_0001>

<bundles_post_ra>
// kernel: tpu_custom_call.1
= control target key start
LH: loop header
LB: loop body
LE: loop exit
PB: predicated region body
PF: predicated region fallthrough
CT: control target
= control target key end

     0   :  { %13 = vsyncpa [#allocation3], 0  ;;  %s12953_s0 = inlined_call_operand.hbm [shape: f32[2,640], index: 0, kind: input, shape index: {}]   ;;  %s12954_s1 = inlined_call_operand.hbm [shape: f32[2,512], index: 1, kind: input, shape index: {}]   ;;  %s12955_s2 = inlined_call_operand.hbm [shape: f32[2,384], index: 2, kind: input, shape index: {}]   ;;  %s12956_s3 = inlined_call_operand.hbm [shape: bf16[640,1536], index: 3, kind: input, shape index: {}]   ;;  %s12957_s4 = inlined_call_operand.hbm [shape: bf16[512,1536], index: 4, kind: input, shape index: {}]   ;;  %s12958_s5 = inlined_call_operand.hbm [shape: bf16[384,1536], index: 5, kind: input, shape index: {}]   ;;  %s12959_s6 = inlined_call_operand.hbm [shape: f32[1,1536], index: 6, kind: input, shape index: {}]   ;;  %s12960_s7 = inlined_call_operand.hbm [shape: bf16[2,1536], index: 7, kind: input, shape index: {}]   ;;  %s12961_s8 = inlined_call_operand.hbm [shape: f32[1,2,2], index: 8, kind: output, shape index: {}]  }
   0x1   :  { %14 = vsyncpa [#allocation6], 0 }
   0x2   :  { %15 = vsyncpa [#allocation9], 0 }
   0x3   :  { %16 = vsyncpa [#allocation12], 0 }
   0x4   :  { %17 = vsyncpa [#allocation15], 0 }
   0x5   :  { %18 = vsyncpa [#allocation4], 0  ;;  %s12382_s27 = smov [#allocation5]   ;;  %s12383_s29 = smov [#allocation8]  }
   0x6   :  { %s35_s28 = sshll.u32 %s12382_s27, 4  ;;  %s54_s30 = sshll.u32 %s12383_s29, 4  ;;  %s36_s28 = int_to_ptr.vmem [resolvable:$true] %s35_s28  ;;  %s12440_s30 = int_to_ptr.vmem [resolvable:$true] %s54_s30 }
   0x7   :  { %s12172_s11 = scalar_lea.hbm %s12954_s1, 128 }
   0x8   :  { %p12173_p0 = scmp.ne.s32.totalorder %s12954_s1, %s12172_s11  ;;  %p12176_p1 = scmp.lt.u32.totalorder %s12172_s11, %s12954_s1 }
   0xa   :  { %p12178_p2 = pnand %p12176_p1, %p12173_p0 }
   0xc   :  { %12181 = shalt.err (!%p12178_p2)
}
   0xd   :  { %s12182_s16 = scalar_lea.vmem %s36_s28, 128  ;;  %p12187_p4 = scmp.lt.s32.totalorder %s36_s28, %s36_s28 }
   0xe   :  { %p12183_p3 = scmp.ne.s32.totalorder %s36_s28, %s12182_s16  ;;  %p12188_p5 = scmp.lt.s32.totalorder %s12182_s16, %s12182_s16 }
  0x10   :  { %p12189_p6 = por %p12188_p5, %p12187_p4 }
  0x12   :  { %p12190_p7 = pnand %p12189_p6, %p12183_p3 }
  0x14   :  { %12193 = shalt.err (!%p12190_p7)
}
  0x15   :  { %38 = dma.hbm_to_vmem [thread:$0]  %s12954_s1, 128, %s36_s28, [#allocation6]  }
  0x16   :  { %s12194_s21 = scalar_lea.hbm %s12956_s3, 61440 }
  0x17   :  { %p12195_p8 = scmp.ne.s32.totalorder %s12956_s3, %s12194_s21  ;;  %p12198_p9 = scmp.lt.u32.totalorder %s12194_s21, %s12956_s3 }
  0x19   :  { %p12200_p10 = pnand %p12198_p9, %p12195_p8 }
  0x1b   :  { %12203 = shalt.err (!%p12200_p10)
}
  0x1c   :  { %s12204_s26 = scalar_lea.vmem %s12440_s30, 61440  ;;  %p12209_p12 = scmp.lt.s32.totalorder %s12440_s30, %s12440_s30 }
  0x1d   :  { %p12205_p11 = scmp.ne.s32.totalorder %s12440_s30, %s12204_s26  ;;  %p12210_p13 = scmp.lt.s32.totalorder %s12204_s26, %s12204_s26 }
  0x1f   :  { %p12211_p0 = por %p12210_p13, %p12209_p12 }
  0x21   :  { %p12212_p1 = pnand %p12211_p0, %p12205_p11 }
  0x23   :  { %12215 = shalt.err (!%p12212_p1)
}
  0x24   :  { %s12384_s1 = smov 768   ;;  %s12385_s27 = smov 48  }
  0x25   :  { %60 = dma.hbm_to_vmem [thread:$0]  %s12956_s3, 61440, %s12440_s30, [#allocation9], %s12384_s1, %s12384_s1, %s12385_s27  }
  0x26   :  { %s12386_s9 = smov [#allocation11]   ;;  %s12387_s11 = smov [#allocation2]  }
  0x27   :  { %s78_s10 = sshll.u32 %s12386_s9, 4  ;;  %s25_s12 = sshll.u32 %s12387_s11, 4  ;;  %s79_s10 = int_to_ptr.vmem [resolvable:$true] %s78_s10  ;;  %s26_s12 = int_to_ptr.vmem [resolvable:$true] %s25_s12 }
  0x28   :  { %s12216_s15 = scalar_lea.hbm %s12958_s5, 36864 }
  0x29   :  { %p12217_p2 = scmp.ne.s32.totalorder %s12958_s5, %s12216_s15  ;;  %p12220_p3 = scmp.lt.u32.totalorder %s12216_s15, %s12958_s5 }
  0x2b   :  { %p12222_p4 = pnand %p12220_p3, %p12217_p2 }
  0x2d   :  { %12225 = shalt.err (!%p12222_p4)
}
  0x2e   :  { %s12226_s3 = scalar_lea.vmem %s79_s10, 36864  ;;  %p12231_p6 = scmp.lt.s32.totalorder %s79_s10, %s79_s10 }
  0x2f   :  { %p12227_p5 = scmp.ne.s32.totalorder %s79_s10, %s12226_s3  ;;  %p12232_p7 = scmp.lt.s32.totalorder %s12226_s3, %s12226_s3 }
  0x31   :  { %p12233_p8 = por %p12232_p7, %p12231_p6 }
  0x33   :  { %p12234_p9 = pnand %p12233_p8, %p12227_p5 }
  0x35   :  { %12237 = shalt.err (!%p12234_p9)
}
  0x36   :  { %84 = dma.hbm_to_vmem [thread:$0]  %s12958_s5, 36864, %s79_s10, [#allocation12], %s12384_s1, %s12384_s1, %s12385_s27  }
  0x37   :  { %s12238_s23 = scalar_lea.hbm %s12953_s0, 160 }
  0x38   :  { %p12239_p10 = scmp.ne.s32.totalorder %s12953_s0, %s12238_s23  ;;  %p12242_p11 = scmp.lt.u32.totalorder %s12238_s23, %s12953_s0 }
  0x3a   :  { %p12244_p12 = pnand %p12242_p11, %p12239_p10 }
  0x3c   :  { %12247 = shalt.err (!%p12244_p12)
}
  0x3d   :  { %s12248_s29 = scalar_lea.vmem %s26_s12, 160  ;;  %p12253_p0 = scmp.lt.s32.totalorder %s26_s12, %s26_s12 }
  0x3e   :  { %p12249_p13 = scmp.ne.s32.totalorder %s26_s12, %s12248_s29  ;;  %p12254_p1 = scmp.lt.s32.totalorder %s12248_s29, %s12248_s29 }
  0x40   :  { %p12255_p2 = por %p12254_p1, %p12253_p0 }
  0x42   :  { %p12256_p3 = pnand %p12255_p2, %p12249_p13 }
  0x44   :  { %12259 = shalt.err (!%p12256_p3)
}
  0x45   :  { %28 = dma.hbm_to_vmem [thread:$0]  %s12953_s0, 160, %s26_s12, [#allocation3]  }
  0x46   :  { %s12388_s10 = smov [#allocation7]   ;;  %s12389_s13 = smov [#allocation10]  }
  0x47   :  { %s45_s11 = sshll.u32 %s12388_s10, 4  ;;  %s66_s14 = sshll.u32 %s12389_s13, 4  ;;  %s46_s11 = int_to_ptr.vmem [resolvable:$true] %s45_s11  ;;  %s12501_s14 = int_to_ptr.vmem [resolvable:$true] %s66_s14 }
  0x48   :  { %s12260_s17 = scalar_lea.hbm %s12955_s2, 96 }
  0x49   :  { %p12261_p4 = scmp.ne.s32.totalorder %s12955_s2, %s12260_s17  ;;  %p12264_p5 = scmp.lt.u32.totalorder %s12260_s17, %s12955_s2 }
  0x4b   :  { %p12266_p6 = pnand %p12264_p5, %p12261_p4 }
  0x4d   :  { %12269 = shalt.err (!%p12266_p6)
}
  0x4e   :  { %s12270_s0 = scalar_lea.vmem %s46_s11, 96  ;;  %p12275_p8 = scmp.lt.s32.totalorder %s46_s11, %s46_s11 }
  0x4f   :  { %p12271_p7 = scmp.ne.s32.totalorder %s46_s11, %s12270_s0  ;;  %p12276_p9 = scmp.lt.s32.totalorder %s12270_s0, %s12270_s0 }
  0x51   :  { %p12277_p10 = por %p12276_p9, %p12275_p8 }
  0x53   :  { %p12278_p11 = pnand %p12277_p10, %p12271_p7 }
  0x55   :  { %12281 = shalt.err (!%p12278_p11)
}
  0x56   :  { %48 = dma.hbm_to_vmem [thread:$0]  %s12955_s2, 96, %s46_s11, [#allocation6]  }
  0x57   :  { %s12282_s23 = scalar_lea.hbm %s12957_s4, 49152 }
  0x58   :  { %p12283_p12 = scmp.ne.s32.totalorder %s12957_s4, %s12282_s23  ;;  %p12286_p13 = scmp.lt.u32.totalorder %s12282_s23, %s12957_s4 }
  0x5a   :  { %p12288_p0 = pnand %p12286_p13, %p12283_p12 }
  0x5c   :  { %12291 = shalt.err (!%p12288_p0)
}
  0x5d   :  { %s12292_s29 = scalar_lea.vmem %s12501_s14, 49152  ;;  %p12297_p2 = scmp.lt.s32.totalorder %s12501_s14, %s12501_s14 }
  0x5e   :  { %p12293_p1 = scmp.ne.s32.totalorder %s12501_s14, %s12292_s29  ;;  %p12298_p3 = scmp.lt.s32.totalorder %s12292_s29, %s12292_s29 }
  0x60   :  { %p12299_p4 = por %p12298_p3, %p12297_p2 }
  0x62   :  { %p12300_p5 = pnand %p12299_p4, %p12293_p1 }
  0x64   :  { %12303 = shalt.err (!%p12300_p5)
}
  0x65   :  { %72 = dma.hbm_to_vmem [thread:$0]  %s12957_s4, 49152, %s12501_s14, [#allocation9], %s12384_s1, %s12384_s1, %s12385_s27  }
  0x66   :  { %s12390_s9 = smov [#allocation13]   ;;  %s12391_s11 = smov [#allocation14]  }
  0x67   :  { %s91_s10 = sshll.u32 %s12390_s9, 4  ;;  %s101_s13 = sshll.u32 %s12391_s11, 4  ;;  %s92_s10 = int_to_ptr.vmem [resolvable:$true] %s91_s10  ;;  %s102_s13 = int_to_ptr.vmem [resolvable:$true] %s101_s13 }
  0x68   :  { %s12304_s17 = scalar_lea.hbm %s12959_s6, 192 }
  0x69   :  { %p12305_p6 = scmp.ne.s32.totalorder %s12959_s6, %s12304_s17  ;;  %p12308_p7 = scmp.lt.u32.totalorder %s12304_s17, %s12959_s6 }
  0x6b   :  { %p12310_p8 = pnand %p12308_p7, %p12305_p6 }
  0x6d   :  { %12313 = shalt.err (!%p12310_p8)
}
  0x6e   :  { %s12314_s4 = scalar_lea.vmem %s92_s10, 192  ;;  %p12319_p10 = scmp.lt.s32.totalorder %s92_s10, %s92_s10 }
  0x6f   :  { %p12315_p9 = scmp.ne.s32.totalorder %s92_s10, %s12314_s4  ;;  %p12320_p11 = scmp.lt.s32.totalorder %s12314_s4, %s12314_s4 }
  0x71   :  { %p12321_p12 = por %p12320_p11, %p12319_p10 }
  0x73   :  { %p12322_p13 = pnand %p12321_p12, %p12315_p9 }
  0x75   :  { %12325 = shalt.err (!%p12322_p13)
}
  0x76   :  { %94 = dma.hbm_to_vmem [thread:$0]  %s12959_s6, 192, %s92_s10, [#allocation12]  }
  0x77   :  { %s12326_s12 = scalar_lea.hbm %s12960_s7, 192 }
  0x78   :  { %p12327_p0 = scmp.ne.s32.totalorder %s12960_s7, %s12326_s12  ;;  %p12330_p1 = scmp.lt.u32.totalorder %s12326_s12, %s12960_s7 }
  0x7a   :  { %p12332_p2 = pnand %p12330_p1, %p12327_p0 }
  0x7c   :  { %12335 = shalt.err (!%p12332_p2)
}
  0x7d   :  { %s12336_s24 = scalar_lea.vmem %s102_s13, 192  ;;  %p12341_p4 = scmp.lt.s32.totalorder %s102_s13, %s102_s13 }
  0x7e   :  { %p12337_p3 = scmp.ne.s32.totalorder %s102_s13, %s12336_s24  ;;  %p12342_p5 = scmp.lt.s32.totalorder %s12336_s24, %s12336_s24 }
  0x80   :  { %p12343_p6 = por %p12342_p5, %p12341_p4 }
  0x82   :  { %p12344_p7 = pnand %p12343_p6, %p12337_p3 }
  0x84   :  { %12347 = shalt.err (!%p12344_p7)
}
  0x85   :  { %104 = dma.hbm_to_vmem [thread:$0]  %s12960_s7, 192, %s102_s13, [#allocation15]  }
  0x86   :  { %12370 = dma.done.wait [#allocation3], 160  }
  0x87   :  { %12371 = vsyncadd [#allocation3], 4294967136 }
  0x88   :  { %12372 = dma.done.wait [#allocation6], 224  }
  0x89   :  { %12373 = vsyncadd [#allocation6], 4294967072 }
  0x8a   :  { %12374 = dma.done.wait [#allocation9], 110592  }
  0x8b   :  { %12375 = vsyncadd [#allocation9], 4294856704 }
  0x8c   :  { %12376 = dma.done.wait [#allocation12], 37056  }
  0x8d   :  { %12377 = vsyncadd [#allocation12], 4294930240 }
  0x8e   :  { %12378 = dma.done.wait [#allocation15], 192  }
  0x8f   :  { %12379 = vsyncadd [#allocation15], 4294967104  ;;  %v10441_v0 = vld [vmem:[#allocation10 + $0x4] ss:$48 sps:$4 sm:$0xff]   ;;  %v10445_v2 = vld [vmem:[#allocation10] ss:$48 sps:$4 sm:$0xff]   ;;  %v138_v38 = vlaneseq }
  0x90   :  { %v10443_v1 = vld [vmem:[#allocation10 + $0x604] ss:$48 sps:$4 sm:$0xff]   ;;  %2979 = vmatprep.subr.bf16.mxu0 %v10441_v0  ;;  %v10446_v3 = vld [vmem:[#allocation10 + $0x600] ss:$48 sps:$4 sm:$0xff]   ;;  %v12392_v36 = vmov 1983009808  }
  0x91   :  { %3020 = vmatprep.subr.bf16.mxu1 %v10443_v1  ;;  %v10447_v4 = vld [vmem:[#allocation10 + $0x64] ss:$48 sps:$4 sm:$0xff]   ;;  %2980 = vmatpush1.bf16.msra.mxu0 %v10445_v2  ;;  %v10451_v6 = vld [vmem:[#allocation10 + $0x60] ss:$48 sps:$4 sm:$0xff]   ;;  %v136_v37 = vunpack.c.l.s4 %v12392_v36  ;;  %v12559_v43 = vshrl.u32 %v138_v38, 7  ;;  %vm9081_vm0 = vcmask 1041408  }
  0x92   :  { %3021 = vmatpush1.bf16.msra.mxu1 %v10446_v3  ;;  %v10449_v5 = vld [vmem:[#allocation10 + $0x664] ss:$48 sps:$4 sm:$0xff]   ;;  %2981 = vmatprep.subr.bf16.mxu0 %v10447_v4  ;;  %v10452_v7 = vld [vmem:[#allocation10 + $0x660] ss:$48 sps:$4 sm:$0xff]   ;;  %v10570_v36 = vld [vmem:[#allocation10 + $0x1ec] ss:$48 sps:$4 sm:$0xff]  }
  0x93   :  { %3022 = vmatprep.subr.bf16.mxu1 %v10449_v5  ;;  %v10453_v8 = vld [vmem:[#allocation10 + $0xc4] ss:$48 sps:$4 sm:$0xff]   ;;  %v10457_v10 = vld [vmem:[#allocation10 + $0xc0] ss:$48 sps:$4 sm:$0xff]   ;;  %v137_v42 = vunpack.c.0.s8 %v136_v37  ;;  %v10573_v37 = vld [vmem:[#allocation10 + $0x7ec] ss:$48 sps:$4 sm:$0xff]  }
  0x94   :  { %v10455_v9 = vld [vmem:[#allocation10 + $0x6c4] ss:$48 sps:$4 sm:$0xff]   ;;  %v10458_v11 = vld [vmem:[#allocation10 + $0x6c0] ss:$48 sps:$4 sm:$0xff]   ;;  %v10568_v38 = vld [vmem:[#allocation10 + $0x1e8] ss:$48 sps:$4 sm:$0xff]  }
  0x95   :  { %2982 = vmatpush1.bf16.msra.mxu0 %v10451_v6  ;;  %v10459_v12 = vld [vmem:[#allocation10 + $0x124] ss:$48 sps:$4 sm:$0xff]   ;;  %v10463_v14 = vld [vmem:[#allocation10 + $0x120] ss:$48 sps:$4 sm:$0xff]   ;;  %v12562_v49 = vsub.s32 %v137_v42, %v12559_v43  ;;  %v10574_v42 = vld [vmem:[#allocation10 + $0x248] ss:$48 sps:$4 sm:$0xff]  }
  0x96   :  { %3023 = vmatpush1.bf16.msra.mxu1 %v10452_v7  ;;  %2983 = vmatprep.subr.bf16.mxu0 %v10453_v8  ;;  %v10461_v13 = vld [vmem:[#allocation10 + $0x724] ss:$48 sps:$4 sm:$0xff]   ;;  %v10464_v15 = vld [vmem:[#allocation10 + $0x720] ss:$48 sps:$4 sm:$0xff]   ;;  %vm9107_vm1 = vcmask 1024   ;;  %s12394_s7 = smov [#allocation16]  }
  0x97   :  { %3024 = vmatprep.subr.bf16.mxu1 %v10455_v9  ;;  %v10465_v16 = vld [vmem:[#allocation10 + $0x184] ss:$48 sps:$4 sm:$0xff]   ;;  %v10469_v18 = vld [vmem:[#allocation10 + $0x180] ss:$48 sps:$4 sm:$0xff]   ;;  %s9262_s26 = sshll.u32 %s12394_s7, 4  ;;  %vm9254_vm2 = vcmask 9224   ;;  %s9263_s26 = int_to_ptr.vmem [resolvable:$true] %s9262_s26 }
  0x98   :  { %v10467_v17 = vld [vmem:[#allocation10 + $0x784] ss:$48 sps:$4 sm:$0xff]   ;;  %v10470_v19 = vld [vmem:[#allocation10 + $0x780] ss:$48 sps:$4 sm:$0xff]   ;;  %s12348_s28 = scalar_lea.vmem %s9263_s26, 32  ;;  %p12353_p9 = scmp.lt.s32.totalorder %s9263_s26, %s9263_s26 }
  0x99   :  { %2984 = vmatpush1.bf16.msra.mxu0 %v10457_v10  ;;  %v10471_v20 = vld [vmem:[#allocation10 + $0x1e4] ss:$48 sps:$4 sm:$0xff]   ;;  %v10475_v22 = vld [vmem:[#allocation10 + $0x1e0] ss:$48 sps:$4 sm:$0xff]   ;;  %p12349_p8 = scmp.ne.s32.totalorder %s9263_s26, %s12348_s28  ;;  %p12354_p10 = scmp.lt.s32.totalorder %s12348_s28, %s12348_s28 }
  0x9a   :  { %3025 = vmatpush1.bf16.msra.mxu1 %v10458_v11  ;;  %2985 = vmatprep.subr.bf16.mxu0 %v10459_v12  ;;  %v10473_v21 = vld [vmem:[#allocation10 + $0x7e4] ss:$48 sps:$4 sm:$0xff]   ;;  %v10476_v23 = vld [vmem:[#allocation10 + $0x7e0] ss:$48 sps:$4 sm:$0xff]  }
  0x9b   :  { %3026 = vmatprep.subr.bf16.mxu1 %v10461_v13  ;;  %v10477_v24 = vld [vmem:[#allocation10 + $0x244] ss:$48 sps:$4 sm:$0xff]   ;;  %v10481_v26 = vld [vmem:[#allocation10 + $0x240] ss:$48 sps:$4 sm:$0xff]   ;;  %p12355_p11 = por %p12354_p10, %p12353_p9 }
  0x9c   :  { %v10479_v25 = vld [vmem:[#allocation10 + $0x844] ss:$48 sps:$4 sm:$0xff]   ;;  %v10482_v27 = vld [vmem:[#allocation10 + $0x840] ss:$48 sps:$4 sm:$0xff]  }
  0x9d   :  { %2986 = vmatpush1.bf16.msra.mxu0 %v10463_v14  ;;  %v10483_v28 = vld [vmem:[#allocation10 + $0x2a4] ss:$48 sps:$4 sm:$0xff]   ;;  %v10487_v30 = vld [vmem:[#allocation10 + $0x2a0] ss:$48 sps:$4 sm:$0xff]   ;;  %v10540_v14 = vld [vmem:[#allocation10 + $0xc] ss:$48 sps:$4 sm:$0xff]   ;;  %p12356_p12 = pnand %p12355_p11, %p12349_p8 }
  0x9e   :  { %3027 = vmatpush1.bf16.msra.mxu1 %v10464_v15  ;;  %2987 = vmatprep.subr.bf16.mxu0 %v10465_v16  ;;  %v10485_v29 = vld [vmem:[#allocation10 + $0x8a4] ss:$48 sps:$4 sm:$0xff]   ;;  %v10488_v31 = vld [vmem:[#allocation10 + $0x8a0] ss:$48 sps:$4 sm:$0xff]   ;;  %v10543_v15 = vld [vmem:[#allocation10 + $0x60c] ss:$48 sps:$4 sm:$0xff]  }
  0x9f   :  { %3028 = vmatprep.subr.bf16.mxu1 %v10467_v17  ;;  %v10489_v32 = vld [vmem:[#allocation10 + $0x304] ss:$48 sps:$4 sm:$0xff]   ;;  %v10493_v34 = vld [vmem:[#allocation10 + $0x300] ss:$48 sps:$4 sm:$0xff]  }
  0xa0   :  { %v10491_v33 = vld [vmem:[#allocation10 + $0x904] ss:$48 sps:$4 sm:$0xff]   ;;  %v10494_v35 = vld [vmem:[#allocation10 + $0x900] ss:$48 sps:$4 sm:$0xff]  }
  0xa1   :  { %2988 = vmatpush1.bf16.msra.mxu0 %v10469_v18  ;;  %v10495_v39 = vld [vmem:[#allocation10 + $0x364] ss:$48 sps:$4 sm:$0xff]   ;;  %v10499_v41 = vld [vmem:[#allocation10 + $0x360] ss:$48 sps:$4 sm:$0xff]   ;;  %v10538_v18 = vld [vmem:[#allocation10 + $0x8] ss:$48 sps:$4 sm:$0xff]  }
  0xa2   :  { %3029 = vmatpush1.bf16.msra.mxu1 %v10470_v19  ;;  %2989 = vmatprep.subr.bf16.mxu0 %v10471_v20  ;;  %v10497_v40 = vld [vmem:[#allocation10 + $0x964] ss:$48 sps:$4 sm:$0xff]   ;;  %v10500_v44 = vld [vmem:[#allocation10 + $0x960] ss:$48 sps:$4 sm:$0xff]   ;;  %v10541_v19 = vld [vmem:[#allocation10 + $0x608] ss:$48 sps:$4 sm:$0xff]  }
  0xa3   :  { %3030 = vmatprep.subr.bf16.mxu1 %v10473_v21  ;;  %v10501_v45 = vld [vmem:[#allocation10 + $0x3c4] ss:$48 sps:$4 sm:$0xff]   ;;  %v10505_v47 = vld [vmem:[#allocation10 + $0x3c0] ss:$48 sps:$4 sm:$0xff]   ;;  %v10546_v20 = vld [vmem:[#allocation10 + $0x6c] ss:$48 sps:$4 sm:$0xff]  }
  0xa4   :  { %v10503_v46 = vld [vmem:[#allocation10 + $0x9c4] ss:$48 sps:$4 sm:$0xff]   ;;  %v10506_v48 = vld [vmem:[#allocation10 + $0x9c0] ss:$48 sps:$4 sm:$0xff]   ;;  %v10549_v21 = vld [vmem:[#allocation10 + $0x66c] ss:$48 sps:$4 sm:$0xff]  }
  0xa5   :  { %2990 = vmatpush1.bf16.msra.mxu0 %v10475_v22  ;;  %v10507_v50 = vld [vmem:[#allocation10 + $0x424] ss:$48 sps:$4 sm:$0xff]   ;;  %v10511_v53 = vld [vmem:[#allocation10 + $0x420] ss:$48 sps:$4 sm:$0xff]   ;;  %v10544_v22 = vld [vmem:[#allocation10 + $0x68] ss:$48 sps:$4 sm:$0xff]  }
  0xa6   :  { %3031 = vmatpush1.bf16.msra.mxu1 %v10476_v23  ;;  %2991 = vmatprep.subr.bf16.mxu0 %v10477_v24  ;;  %v10509_v51 = vld [vmem:[#allocation10 + $0xa24] ss:$48 sps:$4 sm:$0xff]   ;;  %v10512_v56 = vld [vmem:[#allocation10 + $0xa20] ss:$48 sps:$4 sm:$0xff]   ;;  %v10547_v23 = vld [vmem:[#allocation10 + $0x668] ss:$48 sps:$4 sm:$0xff]  }
  0xa7   :  { %3032 = vmatprep.subr.bf16.mxu1 %v10479_v25  ;;  %v648_v52 = vld [vmem:[#allocation5] sm:$0xff]  ;;  %v10552_v24 = vld [vmem:[#allocation10 + $0xcc] ss:$48 sps:$4 sm:$0xff]  }
  0xa8   :  { %v657_v54 = vrot.slane %v648_v52, %v12562_v49  ;;  %v650_v55 = vcombine.high %v648_v52, %v648_v52  ;;  %v10513_v57 = vld [vmem:[#allocation10 + $0x484] ss:$48 sps:$4 sm:$0xff]   ;;  %v10517_v61 = vld [vmem:[#allocation10 + $0x480] ss:$48 sps:$4 sm:$0xff]   ;;  %v10555_v25 = vld [vmem:[#allocation10 + $0x6cc] ss:$48 sps:$4 sm:$0xff]  }
  0xa9   :  { %2992 = vmatpush1.bf16.msra.mxu0 %v10481_v26  ;;  %v10515_v58 = vld [vmem:[#allocation10 + $0xa84] ss:$48 sps:$4 sm:$0xff]   ;;  %v10518_v0 = vld [vmem:[#allocation10 + $0xa80] ss:$48 sps:$4 sm:$0xff]   ;;  %v10550_v26 = vld [vmem:[#allocation10 + $0xc8] ss:$48 sps:$4 sm:$0xff]  }
  0xaa   :  { %3033 = vmatpush1.bf16.msra.mxu1 %v10482_v27  ;;  %2993 = vmatprep.subr.bf16.mxu0 %v10483_v28  ;;  %v665_v59 = vcombine.high %v657_v54, %v657_v54  ;;  %v664_v60 = vrot.slane %v650_v55, %v12562_v49  ;;  %v10519_v1 = vld [vmem:[#allocation10 + $0x4e4] ss:$48 sps:$4 sm:$0xff]   ;;  %v10523_v4 = vld [vmem:[#allocation10 + $0x4e0] ss:$48 sps:$4 sm:$0xff]   ;;  %v12572_v16 = vpack.c.bf16 %v657_v54, %v657_v54  ;;  %v10553_v27 = vld [vmem:[#allocation10 + $0x6c8] ss:$48 sps:$4 sm:$0xff]  }
  0xab   :  { %3034 = vmatprep.subr.bf16.mxu1 %v10485_v29  ;;  %v10521_v2 = vld [vmem:[#allocation10 + $0xae4] ss:$48 sps:$4 sm:$0xff]   ;;  %v10524_v5 = vld [vmem:[#allocation10 + $0xae0] ss:$48 sps:$4 sm:$0xff]   ;;  %v10558_v28 = vld [vmem:[#allocation10 + $0x12c] ss:$48 sps:$4 sm:$0xff]  }
  0xac   :  { %v12566_v62 = vpack.c.bf16 %v665_v59, %v665_v59  ;;  %v666_v63 = vcombine.high %v664_v60, %v664_v60  ;;  %v10525_v6 = vld [vmem:[#allocation10 + $0x544] ss:$48 sps:$4 sm:$0xff]   ;;  %v10529_v8 = vld [vmem:[#allocation10 + $0x540] ss:$48 sps:$4 sm:$0xff]   ;;  %v12574_v17 = vpack.c.bf16 %v664_v60, %v664_v60  ;;  %v10561_v29 = vld [vmem:[#allocation10 + $0x72c] ss:$48 sps:$4 sm:$0xff]  }
  0xad   :  { %2994 = vmatpush1.bf16.msra.mxu0 %v10487_v30  ;;  %v10527_v7 = vld [vmem:[#allocation10 + $0xb44] ss:$48 sps:$4 sm:$0xff]   ;;  %v10530_v9 = vld [vmem:[#allocation10 + $0xb40] ss:$48 sps:$4 sm:$0xff]   ;;  %v10556_v30 = vld [vmem:[#allocation10 + $0x128] ss:$48 sps:$4 sm:$0xff]  }
  0xae   :  { %3035 = vmatpush1.bf16.msra.mxu1 %v10488_v31  ;;  %2995 = vmatprep.subr.bf16.mxu0 %v10489_v32  ;;  %v12568_v3 = vpack.c.bf16 %v666_v63, %v666_v63  ;;  %v10531_v10 = vld [vmem:[#allocation10 + $0x5a4] ss:$48 sps:$4 sm:$0xff]   ;;  %v10535_v12 = vld [vmem:[#allocation10 + $0x5a0] ss:$48 sps:$4 sm:$0xff]   ;;  %v10559_v31 = vld [vmem:[#allocation10 + $0x728] ss:$48 sps:$4 sm:$0xff]  }
  0xaf   :  { %3036 = vmatprep.subr.bf16.mxu1 %v10491_v33  ;;  %3011 = vmatprep.mubr.bf16.mxu0 %v12566_v62  ;;  %v10533_v11 = vld [vmem:[#allocation10 + $0xba4] ss:$48 sps:$4 sm:$0xff]   ;;  %v10536_v13 = vld [vmem:[#allocation10 + $0xba0] ss:$48 sps:$4 sm:$0xff]   ;;  %v10564_v32 = vld [vmem:[#allocation10 + $0x18c] ss:$48 sps:$4 sm:$0xff]  }
  0xb0   :  { %3052 = vmatprep.mubr.bf16.mxu1 %v12568_v3  ;;  %v10567_v33 = vld [vmem:[#allocation10 + $0x78c] ss:$48 sps:$4 sm:$0xff]   ;;  %v10586_v52 = vld [vmem:[#allocation10 + $0x308] ss:$48 sps:$4 sm:$0xff]  }
  0xb1   :  { %2996 = vmatpush1.bf16.msra.mxu0 %v10493_v34  ;;  %v10562_v34 = vld [vmem:[#allocation10 + $0x188] ss:$48 sps:$4 sm:$0xff]   ;;  %v10594_v54 = vld [vmem:[#allocation10 + $0x36c] ss:$48 sps:$4 sm:$0xff]  }
  0xb2   :  { %3037 = vmatpush1.bf16.msra.mxu1 %v10494_v35  ;;  %2997 = vmatprep.subr.bf16.mxu0 %v10495_v39  ;;  %v10565_v35 = vld [vmem:[#allocation10 + $0x788] ss:$48 sps:$4 sm:$0xff]   ;;  %v10597_v55 = vld [vmem:[#allocation10 + $0x96c] ss:$48 sps:$4 sm:$0xff]  }
  0xb3   :  { %3038 = vmatprep.subr.bf16.mxu1 %v10497_v40  ;;  %v10571_v39 = vld [vmem:[#allocation10 + $0x7e8] ss:$48 sps:$4 sm:$0xff]   ;;  %v10576_v40 = vld [vmem:[#allocation10 + $0x24c] ss:$48 sps:$4 sm:$0xff]  }
  0xb4   :  { %v10603_v59 = vld [vmem:[#allocation10 + $0x9cc] ss:$48 sps:$4 sm:$0xff]   ;;  %v10598_v60 = vld [vmem:[#allocation10 + $0x3c8] ss:$48 sps:$4 sm:$0xff]  }
  0xb5   :  { %2998 = vmatpush1.bf16.msra.mxu0 %v10499_v41  ;;  %v10579_v41 = vld [vmem:[#allocation10 + $0x84c] ss:$48 sps:$4 sm:$0xff]  }
  0xb6   :  { %3039 = vmatpush1.bf16.msra.mxu1 %v10500_v44  ;;  %2999 = vmatprep.subr.bf16.mxu0 %v10501_v45  ;;  %v10577_v44 = vld [vmem:[#allocation10 + $0x848] ss:$48 sps:$4 sm:$0xff]   ;;  %v10582_v45 = vld [vmem:[#allocation10 + $0x2ac] ss:$48 sps:$4 sm:$0xff]  }
  0xb7   :  { %3040 = vmatprep.subr.bf16.mxu1 %v10503_v46  ;;  %v10585_v46 = vld [vmem:[#allocation10 + $0x8ac] ss:$48 sps:$4 sm:$0xff]  }
  0xb8   :  { %v10606_v63 = vld [vmem:[#allocation10 + $0x42c] ss:$48 sps:$4 sm:$0xff]  }
  0xb9   :  { %3000 = vmatpush1.bf16.msra.mxu0 %v10505_v47  ;;  %v10580_v47 = vld [vmem:[#allocation10 + $0x2a8] ss:$48 sps:$4 sm:$0xff]  }
  0xba   :  { %3041 = vmatpush1.bf16.msra.mxu1 %v10506_v48  ;;  %3001 = vmatprep.subr.bf16.mxu0 %v10507_v50  ;;  %v10583_v48 = vld [vmem:[#allocation10 + $0x8a8] ss:$48 sps:$4 sm:$0xff]   ;;  %v10588_v50 = vld [vmem:[#allocation10 + $0x30c] ss:$48 sps:$4 sm:$0xff]  }
  0xbb   :  { %3042 = vmatprep.subr.bf16.mxu1 %v10509_v51  ;;  %v10591_v51 = vld [vmem:[#allocation10 + $0x90c] ss:$48 sps:$4 sm:$0xff]  }
  0xbd   :  { %3002 = vmatpush1.bf16.msra.mxu0 %v10511_v53  ;;  %v10589_v53 = vld [vmem:[#allocation10 + $0x908] ss:$48 sps:$4 sm:$0xff]  }
  0xbe   :  { %3043 = vmatpush1.bf16.msra.mxu1 %v10512_v56  ;;  %3003 = vmatprep.subr.bf16.mxu0 %v10513_v57  ;;  %v10592_v56 = vld [vmem:[#allocation10 + $0x368] ss:$48 sps:$4 sm:$0xff]  }
  0xbf   :  { %3044 = vmatprep.subr.bf16.mxu1 %v10515_v58  ;;  %v10595_v57 = vld [vmem:[#allocation10 + $0x968] ss:$48 sps:$4 sm:$0xff]   ;;  %v10600_v58 = vld [vmem:[#allocation10 + $0x3cc] ss:$48 sps:$4 sm:$0xff]  }
  0xc1   :  { %3004 = vmatpush1.bf16.msra.mxu0 %v10517_v61  ;;  %v10601_v61 = vld [vmem:[#allocation10 + $0x9c8] ss:$48 sps:$4 sm:$0xff]  }
  0xc2   :  { %3045 = vmatpush1.bf16.msra.mxu1 %v10518_v0  ;;  %3005 = vmatprep.subr.bf16.mxu0 %v10519_v1  ;;  %v10609_v0 = vld [vmem:[#allocation10 + $0xa2c] ss:$48 sps:$4 sm:$0xff]   ;;  %v10604_v1 = vld [vmem:[#allocation10 + $0x428] ss:$48 sps:$4 sm:$0xff]  }
  0xc3   :  { %3046 = vmatprep.subr.bf16.mxu1 %v10521_v2  ;;  %v10607_v2 = vld [vmem:[#allocation10 + $0xa28] ss:$48 sps:$4 sm:$0xff]  }
  0xc5   :  { %3006 = vmatpush1.bf16.msra.mxu0 %v10523_v4  ;;  %v10612_v4 = vld [vmem:[#allocation10 + $0x48c] ss:$48 sps:$4 sm:$0xff]  }
  0xc6   :  { %3047 = vmatpush1.bf16.msra.mxu1 %v10524_v5  ;;  %3007 = vmatprep.subr.bf16.mxu0 %v10525_v6  ;;  %v10615_v5 = vld [vmem:[#allocation10 + $0xa8c] ss:$48 sps:$4 sm:$0xff]   ;;  %v10610_v6 = vld [vmem:[#allocation10 + $0x488] ss:$48 sps:$4 sm:$0xff]  }
  0xc7   :  { %3048 = vmatprep.subr.bf16.mxu1 %v10527_v7  ;;  %v10613_v7 = vld [vmem:[#allocation10 + $0xa88] ss:$48 sps:$4 sm:$0xff]  }
  0xc9   :  { %3008 = vmatpush1.bf16.msra.mxu0 %v10529_v8  ;;  %v10618_v8 = vld [vmem:[#allocation10 + $0x4ec] ss:$48 sps:$4 sm:$0xff]  }
  0xca   :  { %3049 = vmatpush1.bf16.msra.mxu1 %v10530_v9  ;;  %3009 = vmatprep.subr.bf16.mxu0 %v10531_v10  ;;  %v10621_v9 = vld [vmem:[#allocation10 + $0xaec] ss:$48 sps:$4 sm:$0xff]   ;;  %v10616_v10 = vld [vmem:[#allocation10 + $0x4e8] ss:$48 sps:$4 sm:$0xff]  }
  0xcb   :  { %3050 = vmatprep.subr.bf16.mxu1 %v10533_v11  ;;  %v10619_v11 = vld [vmem:[#allocation10 + $0xae8] ss:$48 sps:$4 sm:$0xff]  }
  0xcd   :  { %3010 = vmatpush1.bf16.msra.mxu0 %v10535_v12  ;;  %v10624_v12 = vld [vmem:[#allocation10 + $0x54c] ss:$48 sps:$4 sm:$0xff]  }
  0xce   :  { %3051 = vmatpush1.bf16.msra.mxu1 %v10536_v13  ;;  %3061 = vmatprep.subr.bf16.mxu0 %v10540_v14  ;;  %v10627_v13 = vld [vmem:[#allocation10 + $0xb4c] ss:$48 sps:$4 sm:$0xff]   ;;  %v10622_v14 = vld [vmem:[#allocation10 + $0x548] ss:$48 sps:$4 sm:$0xff]  }
  0xcf   :  { %3102 = vmatprep.subr.bf16.mxu1 %v10543_v15  ;;  %v10625_v15 = vld [vmem:[#allocation10 + $0xb48] ss:$48 sps:$4 sm:$0xff]  }
  0xd0   :  { %3012 = vmatmul.mubr.bf16.vlgmr.msra.gmra.mrb[0].mxu0 %v12572_v16 }
  0xd1   :  { %3053 = vmatmul.mubr.bf16.vlgmr.msra.gmra.mrb[0].mxu1 %v12574_v17  ;;  %3062 = vmatpush1.bf16.msra.mxu0 %v10538_v18  ;;  %v10630_v18 = vld [vmem:[#allocation10 + $0x5ac] ss:$48 sps:$4 sm:$0xff]  }
  0xd2   :  { %3103 = vmatpush1.bf16.msra.mxu1 %v10541_v19  ;;  %3063 = vmatprep.subr.bf16.mxu0 %v10546_v20  ;;  %v10633_v19 = vld [vmem:[#allocation10 + $0xbac] ss:$48 sps:$4 sm:$0xff]   ;;  %v10628_v20 = vld [vmem:[#allocation10 + $0x5a8] ss:$48 sps:$4 sm:$0xff]  }
  0xd3   :  { %3104 = vmatprep.subr.bf16.mxu1 %v10549_v21  ;;  %3093 = vmatprep.mubr.bf16.mxu0 %v12566_v62  ;;  %v10631_v21 = vld [vmem:[#allocation10 + $0xba8] ss:$48 sps:$4 sm:$0xff]  }
  0xd4   :  { %3134 = vmatprep.mubr.bf16.mxu1 %v12568_v3 }
  0xd5   :  { %3064 = vmatpush1.bf16.msra.mxu0 %v10544_v22  ;;  %v10636_v22 = vld [vmem:[#allocation10 + $0x14] ss:$48 sps:$4 sm:$0xff]  }
  0xd6   :  { %3105 = vmatpush1.bf16.msra.mxu1 %v10547_v23  ;;  %3065 = vmatprep.subr.bf16.mxu0 %v10552_v24  ;;  %v10639_v23 = vld [vmem:[#allocation10 + $0x614] ss:$48 sps:$4 sm:$0xff]   ;;  %v10634_v24 = vld [vmem:[#allocation10 + $0x10] ss:$48 sps:$4 sm:$0xff]  }
  0xd7   :  { %3106 = vmatprep.subr.bf16.mxu1 %v10555_v25  ;;  %v10637_v25 = vld [vmem:[#allocation10 + $0x610] ss:$48 sps:$4 sm:$0xff]  }
  0xd9   :  { %3066 = vmatpush1.bf16.msra.mxu0 %v10550_v26  ;;  %v10642_v26 = vld [vmem:[#allocation10 + $0x74] ss:$48 sps:$4 sm:$0xff]  }
  0xda   :  { %3107 = vmatpush1.bf16.msra.mxu1 %v10553_v27  ;;  %3067 = vmatprep.subr.bf16.mxu0 %v10558_v28  ;;  %v10645_v27 = vld [vmem:[#allocation10 + $0x674] ss:$48 sps:$4 sm:$0xff]   ;;  %v10640_v28 = vld [vmem:[#allocation10 + $0x70] ss:$48 sps:$4 sm:$0xff]  }
  0xdb   :  { %3108 = vmatprep.subr.bf16.mxu1 %v10561_v29  ;;  %v10643_v29 = vld [vmem:[#allocation10 + $0x670] ss:$48 sps:$4 sm:$0xff]  }
  0xdd   :  { %3068 = vmatpush1.bf16.msra.mxu0 %v10556_v30  ;;  %v10648_v30 = vld [vmem:[#allocation10 + $0xd4] ss:$48 sps:$4 sm:$0xff]  }
  0xde   :  { %3109 = vmatpush1.bf16.msra.mxu1 %v10559_v31  ;;  %3069 = vmatprep.subr.bf16.mxu0 %v10564_v32  ;;  %v10651_v31 = vld [vmem:[#allocation10 + $0x6d4] ss:$48 sps:$4 sm:$0xff]   ;;  %v10646_v32 = vld [vmem:[#allocation10 + $0xd0] ss:$48 sps:$4 sm:$0xff]  }
  0xdf   :  { %3110 = vmatprep.subr.bf16.mxu1 %v10567_v33  ;;  %v10649_v33 = vld [vmem:[#allocation10 + $0x6d0] ss:$48 sps:$4 sm:$0xff]  }
  0xe1   :  { %3070 = vmatpush1.bf16.msra.mxu0 %v10562_v34  ;;  %v10654_v34 = vld [vmem:[#allocation10 + $0x134] ss:$48 sps:$4 sm:$0xff]  }
  0xe2   :  { %3111 = vmatpush1.bf16.msra.mxu1 %v10565_v35  ;;  %3071 = vmatprep.subr.bf16.mxu0 %v10570_v36  ;;  %v10657_v35 = vld [vmem:[#allocation10 + $0x734] ss:$48 sps:$4 sm:$0xff]   ;;  %v10652_v36 = vld [vmem:[#allocation10 + $0x130] ss:$48 sps:$4 sm:$0xff]  }
  0xe3   :  { %3112 = vmatprep.subr.bf16.mxu1 %v10573_v37  ;;  %v10655_v37 = vld [vmem:[#allocation10 + $0x730] ss:$48 sps:$4 sm:$0xff]  }
  0xe5   :  { %3072 = vmatpush1.bf16.msra.mxu0 %v10568_v38  ;;  %v10660_v38 = vld [vmem:[#allocation10 + $0x194] ss:$48 sps:$4 sm:$0xff]  }
  0xe6   :  { %3113 = vmatpush1.bf16.msra.mxu1 %v10571_v39  ;;  %3073 = vmatprep.subr.bf16.mxu0 %v10576_v40  ;;  %v10663_v39 = vld [vmem:[#allocation10 + $0x794] ss:$48 sps:$4 sm:$0xff]   ;;  %v10658_v40 = vld [vmem:[#allocation10 + $0x190] ss:$48 sps:$4 sm:$0xff]  }
  0xe7   :  { %3114 = vmatprep.subr.bf16.mxu1 %v10579_v41  ;;  %v10661_v41 = vld [vmem:[#allocation10 + $0x790] ss:$48 sps:$4 sm:$0xff]  }
  0xe9   :  { %3074 = vmatpush1.bf16.msra.mxu0 %v10574_v42  ;;  %v10666_v42 = vld [vmem:[#allocation10 + $0x1f4] ss:$48 sps:$4 sm:$0xff]  }
  0xea   :  { %3115 = vmatpush1.bf16.msra.mxu1 %v10577_v44  ;;  %3075 = vmatprep.subr.bf16.mxu0 %v10582_v45  ;;  %v10669_v44 = vld [vmem:[#allocation10 + $0x7f4] ss:$48 sps:$4 sm:$0xff]   ;;  %v10664_v45 = vld [vmem:[#allocation10 + $0x1f0] ss:$48 sps:$4 sm:$0xff]  }
  0xeb   :  { %3116 = vmatprep.subr.bf16.mxu1 %v10585_v46  ;;  %v10667_v46 = vld [vmem:[#allocation10 + $0x7f0] ss:$48 sps:$4 sm:$0xff]  }
  0xed   :  { %3076 = vmatpush1.bf16.msra.mxu0 %v10580_v47  ;;  %v10672_v47 = vld [vmem:[#allocation10 + $0x254] ss:$48 sps:$4 sm:$0xff]  }
  0xee   :  { %3117 = vmatpush1.bf16.msra.mxu1 %v10583_v48  ;;  %3077 = vmatprep.subr.bf16.mxu0 %v10588_v50  ;;  %v10675_v48 = vld [vmem:[#allocation10 + $0x854] ss:$48 sps:$4 sm:$0xff]   ;;  %v10670_v50 = vld [vmem:[#allocation10 + $0x250] ss:$48 sps:$4 sm:$0xff]  }
  0xef   :  { %3118 = vmatprep.subr.bf16.mxu1 %v10591_v51  ;;  %v10673_v51 = vld [vmem:[#allocation10 + $0x850] ss:$48 sps:$4 sm:$0xff]  }
  0xf1   :  { %3078 = vmatpush1.bf16.msra.mxu0 %v10586_v52  ;;  %v10678_v52 = vld [vmem:[#allocation10 + $0x2b4] ss:$48 sps:$4 sm:$0xff]  }
  0xf2   :  { %3119 = vmatpush1.bf16.msra.mxu1 %v10589_v53  ;;  %3079 = vmatprep.subr.bf16.mxu0 %v10594_v54  ;;  %v10681_v53 = vld [vmem:[#allocation10 + $0x8b4] ss:$48 sps:$4 sm:$0xff]   ;;  %v10676_v54 = vld [vmem:[#allocation10 + $0x2b0] ss:$48 sps:$4 sm:$0xff]  }
  0xf3   :  { %3120 = vmatprep.subr.bf16.mxu1 %v10597_v55  ;;  %v10679_v55 = vld [vmem:[#allocation10 + $0x8b0] ss:$48 sps:$4 sm:$0xff]  }
  0xf5   :  { %3080 = vmatpush1.bf16.msra.mxu0 %v10592_v56  ;;  %v10684_v56 = vld [vmem:[#allocation10 + $0x314] ss:$48 sps:$4 sm:$0xff]  }
  0xf6   :  { %3121 = vmatpush1.bf16.msra.mxu1 %v10595_v57  ;;  %3081 = vmatprep.subr.bf16.mxu0 %v10600_v58  ;;  %v10687_v57 = vld [vmem:[#allocation10 + $0x914] ss:$48 sps:$4 sm:$0xff]   ;;  %v10682_v58 = vld [vmem:[#allocation10 + $0x310] ss:$48 sps:$4 sm:$0xff]  }
  0xf7   :  { %3122 = vmatprep.subr.bf16.mxu1 %v10603_v59  ;;  %v10685_v59 = vld [vmem:[#allocation10 + $0x910] ss:$48 sps:$4 sm:$0xff]  }
  0xf9   :  { %3082 = vmatpush1.bf16.msra.mxu0 %v10598_v60  ;;  %v10690_v60 = vld [vmem:[#allocation10 + $0x374] ss:$48 sps:$4 sm:$0xff]  }
  0xfa   :  { %3123 = vmatpush1.bf16.msra.mxu1 %v10601_v61  ;;  %3083 = vmatprep.subr.bf16.mxu0 %v10606_v63  ;;  %v10693_v61 = vld [vmem:[#allocation10 + $0x974] ss:$48 sps:$4 sm:$0xff]   ;;  %v10688_v63 = vld [vmem:[#allocation10 + $0x370] ss:$48 sps:$4 sm:$0xff]  }
  0xfb   :  { %3124 = vmatprep.subr.bf16.mxu1 %v10609_v0  ;;  %v10691_v0 = vld [vmem:[#allocation10 + $0x970] ss:$48 sps:$4 sm:$0xff]  }
  0xfd   :  { %3084 = vmatpush1.bf16.msra.mxu0 %v10604_v1  ;;  %v10696_v1 = vld [vmem:[#allocation10 + $0x3d4] ss:$48 sps:$4 sm:$0xff]  }
  0xfe   :  { %3125 = vmatpush1.bf16.msra.mxu1 %v10607_v2  ;;  %3085 = vmatprep.subr.bf16.mxu0 %v10612_v4  ;;  %v10699_v2 = vld [vmem:[#allocation10 + $0x9d4] ss:$48 sps:$4 sm:$0xff]   ;;  %v10694_v4 = vld [vmem:[#allocation10 + $0x3d0] ss:$48 sps:$4 sm:$0xff]  }
  0xff   :  { %3126 = vmatprep.subr.bf16.mxu1 %v10615_v5  ;;  %v10697_v5 = vld [vmem:[#allocation10 + $0x9d0] ss:$48 sps:$4 sm:$0xff]  }
 0x101   :  { %3086 = vmatpush1.bf16.msra.mxu0 %v10610_v6  ;;  %v10702_v6 = vld [vmem:[#allocation10 + $0x434] ss:$48 sps:$4 sm:$0xff]  }
 0x102   :  { %3127 = vmatpush1.bf16.msra.mxu1 %v10613_v7  ;;  %3087 = vmatprep.subr.bf16.mxu0 %v10618_v8  ;;  %v10705_v7 = vld [vmem:[#allocation10 + $0xa34] ss:$48 sps:$4 sm:$0xff]   ;;  %v10700_v8 = vld [vmem:[#allocation10 + $0x430] ss:$48 sps:$4 sm:$0xff]  }
 0x103   :  { %3128 = vmatprep.subr.bf16.mxu1 %v10621_v9  ;;  %v10703_v9 = vld [vmem:[#allocation10 + $0xa30] ss:$48 sps:$4 sm:$0xff]  }
 0x105   :  { %3088 = vmatpush1.bf16.msra.mxu0 %v10616_v10  ;;  %v10708_v10 = vld [vmem:[#allocation10 + $0x494] ss:$48 sps:$4 sm:$0xff]  }
 0x106   :  { %3129 = vmatpush1.bf16.msra.mxu1 %v10619_v11  ;;  %3089 = vmatprep.subr.bf16.mxu0 %v10624_v12  ;;  %v10711_v11 = vld [vmem:[#allocation10 + $0xa94] ss:$48 sps:$4 sm:$0xff]   ;;  %v10706_v12 = vld [vmem:[#allocation10 + $0x490] ss:$48 sps:$4 sm:$0xff]  }
 0x107   :  { %3130 = vmatprep.subr.bf16.mxu1 %v10627_v13  ;;  %v10709_v13 = vld [vmem:[#allocation10 + $0xa90] ss:$48 sps:$4 sm:$0xff]  }
 0x109   :  { %3090 = vmatpush1.bf16.msra.mxu0 %v10622_v14  ;;  %v10714_v14 = vld [vmem:[#allocation10 + $0x4f4] ss:$48 sps:$4 sm:$0xff]  }
 0x10a   :  { %3131 = vmatpush1.bf16.msra.mxu1 %v10625_v15  ;;  %3091 = vmatprep.subr.bf16.mxu0 %v10630_v18  ;;  %v10717_v15 = vld [vmem:[#allocation10 + $0xaf4] ss:$48 sps:$4 sm:$0xff]   ;;  %v10712_v18 = vld [vmem:[#allocation10 + $0x4f0] ss:$48 sps:$4 sm:$0xff]  }
 0x10b   :  { %3132 = vmatprep.subr.bf16.mxu1 %v10633_v19  ;;  %v10715_v19 = vld [vmem:[#allocation10 + $0xaf0] ss:$48 sps:$4 sm:$0xff]  }
 0x10d   :  { %3092 = vmatpush1.bf16.msra.mxu0 %v10628_v20  ;;  %v10720_v20 = vld [vmem:[#allocation10 + $0x554] ss:$48 sps:$4 sm:$0xff]  }
 0x10e   :  { %3133 = vmatpush1.bf16.msra.mxu1 %v10631_v21  ;;  %3143 = vmatprep.subr.bf16.mxu0 %v10636_v22  ;;  %v10723_v21 = vld [vmem:[#allocation10 + $0xb54] ss:$48 sps:$4 sm:$0xff]   ;;  %v10718_v22 = vld [vmem:[#allocation10 + $0x550] ss:$48 sps:$4 sm:$0xff]  }
 0x10f   :  { %3184 = vmatprep.subr.bf16.mxu1 %v10639_v23  ;;  %v10721_v23 = vld [vmem:[#allocation10 + $0xb50] ss:$48 sps:$4 sm:$0xff]  }
 0x110   :  { %3094 = vmatmul.mubr.bf16.vlgmr.msra.gmra.mrb[4].mxu0 %v12572_v16 }
 0x111   :  { %3135 = vmatmul.mubr.bf16.vlgmr.msra.gmra.mrb[4].mxu1 %v12574_v17  ;;  %3144 = vmatpush1.bf16.msra.mxu0 %v10634_v24  ;;  %v10726_v24 = vld [vmem:[#allocation10 + $0x5b4] ss:$48 sps:$4 sm:$0xff]  }
 0x112   :  { %3185 = vmatpush1.bf16.msra.mxu1 %v10637_v25  ;;  %3145 = vmatprep.subr.bf16.mxu0 %v10642_v26  ;;  %v10729_v25 = vld [vmem:[#allocation10 + $0xbb4] ss:$48 sps:$4 sm:$0xff]   ;;  %v10724_v26 = vld [vmem:[#allocation10 + $0x5b0] ss:$48 sps:$4 sm:$0xff]  }
 0x113   :  { %3186 = vmatprep.subr.bf16.mxu1 %v10645_v27  ;;  %3175 = vmatprep.mubr.bf16.mxu0 %v12566_v62  ;;  %v10727_v27 = vld [vmem:[#allocation10 + $0xbb0] ss:$48 sps:$4 sm:$0xff]  }
 0x114   :  { %3216 = vmatprep.mubr.bf16.mxu1 %v12568_v3 }
 0x115   :  { %3146 = vmatpush1.bf16.msra.mxu0 %v10640_v28  ;;  %v10732_v28 = vld [vmem:[#allocation10 + $0x1c] ss:$48 sps:$4 sm:$0xff]  }
 0x116   :  { %3187 = vmatpush1.bf16.msra.mxu1 %v10643_v29  ;;  %3147 = vmatprep.subr.bf16.mxu0 %v10648_v30  ;;  %v10735_v29 = vld [vmem:[#allocation10 + $0x61c] ss:$48 sps:$4 sm:$0xff]   ;;  %v10730_v30 = vld [vmem:[#allocation10 + $0x18] ss:$48 sps:$4 sm:$0xff]  }
 0x117   :  { %3188 = vmatprep.subr.bf16.mxu1 %v10651_v31  ;;  %v10733_v31 = vld [vmem:[#allocation10 + $0x618] ss:$48 sps:$4 sm:$0xff]  }
 0x119   :  { %3148 = vmatpush1.bf16.msra.mxu0 %v10646_v32  ;;  %v10738_v32 = vld [vmem:[#allocation10 + $0x7c] ss:$48 sps:$4 sm:$0xff]  }
 0x11a   :  { %3189 = vmatpush1.bf16.msra.mxu1 %v10649_v33  ;;  %3149 = vmatprep.subr.bf16.mxu0 %v10654_v34  ;;  %v10741_v33 = vld [vmem:[#allocation10 + $0x67c] ss:$48 sps:$4 sm:$0xff]   ;;  %v10736_v34 = vld [vmem:[#allocation10 + $0x78] ss:$48 sps:$4 sm:$0xff]  }
 0x11b   :  { %3190 = vmatprep.subr.bf16.mxu1 %v10657_v35  ;;  %v10739_v35 = vld [vmem:[#allocation10 + $0x678] ss:$48 sps:$4 sm:$0xff]  }
 0x11d   :  { %3150 = vmatpush1.bf16.msra.mxu0 %v10652_v36  ;;  %v10744_v36 = vld [vmem:[#allocation10 + $0xdc] ss:$48 sps:$4 sm:$0xff]  }
 0x11e   :  { %3191 = vmatpush1.bf16.msra.mxu1 %v10655_v37  ;;  %3151 = vmatprep.subr.bf16.mxu0 %v10660_v38  ;;  %v10747_v37 = vld [vmem:[#allocation10 + $0x6dc] ss:$48 sps:$4 sm:$0xff]   ;;  %v10742_v38 = vld [vmem:[#allocation10 + $0xd8] ss:$48 sps:$4 sm:$0xff]  }
 0x11f   :  { %3192 = vmatprep.subr.bf16.mxu1 %v10663_v39  ;;  %v10745_v39 = vld [vmem:[#allocation10 + $0x6d8] ss:$48 sps:$4 sm:$0xff]  }
 0x121   :  { %3152 = vmatpush1.bf16.msra.mxu0 %v10658_v40  ;;  %v10750_v40 = vld [vmem:[#allocation10 + $0x13c] ss:$48 sps:$4 sm:$0xff]  }
 0x122   :  { %3193 = vmatpush1.bf16.msra.mxu1 %v10661_v41  ;;  %3153 = vmatprep.subr.bf16.mxu0 %v10666_v42  ;;  %v10753_v41 = vld [vmem:[#allocation10 + $0x73c] ss:$48 sps:$4 sm:$0xff]   ;;  %v10748_v42 = vld [vmem:[#allocation10 + $0x138] ss:$48 sps:$4 sm:$0xff]  }
 0x123   :  { %3194 = vmatprep.subr.bf16.mxu1 %v10669_v44  ;;  %v10751_v44 = vld [vmem:[#allocation10 + $0x738] ss:$48 sps:$4 sm:$0xff]  }
 0x125   :  { %3154 = vmatpush1.bf16.msra.mxu0 %v10664_v45  ;;  %v10756_v45 = vld [vmem:[#allocation10 + $0x19c] ss:$48 sps:$4 sm:$0xff]  }
 0x126   :  { %3195 = vmatpush1.bf16.msra.mxu1 %v10667_v46  ;;  %3155 = vmatprep.subr.bf16.mxu0 %v10672_v47  ;;  %v10759_v46 = vld [vmem:[#allocation10 + $0x79c] ss:$48 sps:$4 sm:$0xff]   ;;  %v10754_v47 = vld [vmem:[#allocation10 + $0x198] ss:$48 sps:$4 sm:$0xff]  }
 0x127   :  { %3196 = vmatprep.subr.bf16.mxu1 %v10675_v48  ;;  %v10757_v48 = vld [vmem:[#allocation10 + $0x798] ss:$48 sps:$4 sm:$0xff]  }
 0x129   :  { %3156 = vmatpush1.bf16.msra.mxu0 %v10670_v50  ;;  %v10762_v50 = vld [vmem:[#allocation10 + $0x1fc] ss:$48 sps:$4 sm:$0xff]  }
 0x12a   :  { %3197 = vmatpush1.bf16.msra.mxu1 %v10673_v51  ;;  %3157 = vmatprep.subr.bf16.mxu0 %v10678_v52  ;;  %v10765_v51 = vld [vmem:[#allocation10 + $0x7fc] ss:$48 sps:$4 sm:$0xff]   ;;  %v10760_v52 = vld [vmem:[#allocation10 + $0x1f8] ss:$48 sps:$4 sm:$0xff]  }
 0x12b   :  { %3198 = vmatprep.subr.bf16.mxu1 %v10681_v53  ;;  %v10763_v53 = vld [vmem:[#allocation10 + $0x7f8] ss:$48 sps:$4 sm:$0xff]  }
 0x12d   :  { %3158 = vmatpush1.bf16.msra.mxu0 %v10676_v54  ;;  %v10768_v54 = vld [vmem:[#allocation10 + $0x25c] ss:$48 sps:$4 sm:$0xff]  }
 0x12e   :  { %3199 = vmatpush1.bf16.msra.mxu1 %v10679_v55  ;;  %3159 = vmatprep.subr.bf16.mxu0 %v10684_v56  ;;  %v10771_v55 = vld [vmem:[#allocation10 + $0x85c] ss:$48 sps:$4 sm:$0xff]   ;;  %v10766_v56 = vld [vmem:[#allocation10 + $0x258] ss:$48 sps:$4 sm:$0xff]  }
 0x12f   :  { %3200 = vmatprep.subr.bf16.mxu1 %v10687_v57  ;;  %v10769_v57 = vld [vmem:[#allocation10 + $0x858] ss:$48 sps:$4 sm:$0xff]  }
 0x131   :  { %3160 = vmatpush1.bf16.msra.mxu0 %v10682_v58  ;;  %v10774_v58 = vld [vmem:[#allocation10 + $0x2bc] ss:$48 sps:$4 sm:$0xff]  }
 0x132   :  { %3201 = vmatpush1.bf16.msra.mxu1 %v10685_v59  ;;  %3161 = vmatprep.subr.bf16.mxu0 %v10690_v60  ;;  %v10777_v59 = vld [vmem:[#allocation10 + $0x8bc] ss:$48 sps:$4 sm:$0xff]   ;;  %v10772_v60 = vld [vmem:[#allocation10 + $0x2b8] ss:$48 sps:$4 sm:$0xff]  }
 0x133   :  { %3202 = vmatprep.subr.bf16.mxu1 %v10693_v61  ;;  %v10775_v61 = vld [vmem:[#allocation10 + $0x8b8] ss:$48 sps:$4 sm:$0xff]  }
 0x135   :  { %3162 = vmatpush1.bf16.msra.mxu0 %v10688_v63  ;;  %v10780_v63 = vld [vmem:[#allocation10 + $0x31c] ss:$48 sps:$4 sm:$0xff]  }
 0x136   :  { %3203 = vmatpush1.bf16.msra.mxu1 %v10691_v0  ;;  %3163 = vmatprep.subr.bf16.mxu0 %v10696_v1  ;;  %v10783_v0 = vld [vmem:[#allocation10 + $0x91c] ss:$48 sps:$4 sm:$0xff]   ;;  %v10778_v1 = vld [vmem:[#allocation10 + $0x318] ss:$48 sps:$4 sm:$0xff]  }
 0x137   :  { %3204 = vmatprep.subr.bf16.mxu1 %v10699_v2  ;;  %v10781_v2 = vld [vmem:[#allocation10 + $0x918] ss:$48 sps:$4 sm:$0xff]  }
 0x139   :  { %3164 = vmatpush1.bf16.msra.mxu0 %v10694_v4  ;;  %v10786_v4 = vld [vmem:[#allocation10 + $0x37c] ss:$48 sps:$4 sm:$0xff]  }
 0x13a   :  { %3205 = vmatpush1.bf16.msra.mxu1 %v10697_v5  ;;  %3165 = vmatprep.subr.bf16.mxu0 %v10702_v6  ;;  %v10789_v5 = vld [vmem:[#allocation10 + $0x97c] ss:$48 sps:$4 sm:$0xff]   ;;  %v10784_v6 = vld [vmem:[#allocation10 + $0x378] ss:$48 sps:$4 sm:$0xff]  }
 0x13b   :  { %3206 = vmatprep.subr.bf16.mxu1 %v10705_v7  ;;  %v10787_v7 = vld [vmem:[#allocation10 + $0x978] ss:$48 sps:$4 sm:$0xff]  }
 0x13d   :  { %3166 = vmatpush1.bf16.msra.mxu0 %v10700_v8  ;;  %v10792_v8 = vld [vmem:[#allocation10 + $0x3dc] ss:$48 sps:$4 sm:$0xff]  }
 0x13e   :  { %3207 = vmatpush1.bf16.msra.mxu1 %v10703_v9  ;;  %3167 = vmatprep.subr.bf16.mxu0 %v10708_v10  ;;  %v10795_v9 = vld [vmem:[#allocation10 + $0x9dc] ss:$48 sps:$4 sm:$0xff]   ;;  %v10790_v10 = vld [vmem:[#allocation10 + $0x3d8] ss:$48 sps:$4 sm:$0xff]  }
 0x13f   :  { %3208 = vmatprep.subr.bf16.mxu1 %v10711_v11  ;;  %v10793_v11 = vld [vmem:[#allocation10 + $0x9d8] ss:$48 sps:$4 sm:$0xff]  }
 0x141   :  { %3168 = vmatpush1.bf16.msra.mxu0 %v10706_v12  ;;  %v10798_v12 = vld [vmem:[#allocation10 + $0x43c] ss:$48 sps:$4 sm:$0xff]  }
 0x142   :  { %3209 = vmatpush1.bf16.msra.mxu1 %v10709_v13  ;;  %3169 = vmatprep.subr.bf16.mxu0 %v10714_v14  ;;  %v10801_v13 = vld [vmem:[#allocation10 + $0xa3c] ss:$48 sps:$4 sm:$0xff]   ;;  %v10796_v14 = vld [vmem:[#allocation10 + $0x438] ss:$48 sps:$4 sm:$0xff]  }
 0x143   :  { %3210 = vmatprep.subr.bf16.mxu1 %v10717_v15  ;;  %v10799_v15 = vld [vmem:[#allocation10 + $0xa38] ss:$48 sps:$4 sm:$0xff]  }
 0x145   :  { %3170 = vmatpush1.bf16.msra.mxu0 %v10712_v18  ;;  %v10804_v18 = vld [vmem:[#allocation10 + $0x49c] ss:$48 sps:$4 sm:$0xff]  }
 0x146   :  { %3211 = vmatpush1.bf16.msra.mxu1 %v10715_v19  ;;  %3171 = vmatprep.subr.bf16.mxu0 %v10720_v20  ;;  %v10807_v19 = vld [vmem:[#allocation10 + $0xa9c] ss:$48 sps:$4 sm:$0xff]   ;;  %v10802_v20 = vld [vmem:[#allocation10 + $0x498] ss:$48 sps:$4 sm:$0xff]  }
 0x147   :  { %3212 = vmatprep.subr.bf16.mxu1 %v10723_v21  ;;  %v10805_v21 = vld [vmem:[#allocation10 + $0xa98] ss:$48 sps:$4 sm:$0xff]  }
 0x149   :  { %3172 = vmatpush1.bf16.msra.mxu0 %v10718_v22  ;;  %v10810_v22 = vld [vmem:[#allocation10 + $0x4fc] ss:$48 sps:$4 sm:$0xff]  }
 0x14a   :  { %3213 = vmatpush1.bf16.msra.mxu1 %v10721_v23  ;;  %3173 = vmatprep.subr.bf16.mxu0 %v10726_v24  ;;  %v10813_v23 = vld [vmem:[#allocation10 + $0xafc] ss:$48 sps:$4 sm:$0xff]   ;;  %v10808_v24 = vld [vmem:[#allocation10 + $0x4f8] ss:$48 sps:$4 sm:$0xff]  }
 0x14b   :  { %3214 = vmatprep.subr.bf16.mxu1 %v10729_v25  ;;  %v10811_v25 = vld [vmem:[#allocation10 + $0xaf8] ss:$48 sps:$4 sm:$0xff]  }
 0x14d   :  { %3174 = vmatpush1.bf16.msra.mxu0 %v10724_v26  ;;  %v10816_v26 = vld [vmem:[#allocation10 + $0x55c] ss:$48 sps:$4 sm:$0xff]  }
 0x14e   :  { %3215 = vmatpush1.bf16.msra.mxu1 %v10727_v27  ;;  %3225 = vmatprep.subr.bf16.mxu0 %v10732_v28  ;;  %v10819_v27 = vld [vmem:[#allocation10 + $0xb5c] ss:$48 sps:$4 sm:$0xff]   ;;  %v10814_v28 = vld [vmem:[#allocation10 + $0x558] ss:$48 sps:$4 sm:$0xff]  }
 0x14f   :  { %3266 = vmatprep.subr.bf16.mxu1 %v10735_v29  ;;  %v10817_v29 = vld [vmem:[#allocation10 + $0xb58] ss:$48 sps:$4 sm:$0xff]  }
 0x150   :  { %3176 = vmatmul.mubr.bf16.vlgmr.msra.gmra.mrb[8].mxu0 %v12572_v16 }
 0x151   :  { %3217 = vmatmul.mubr.bf16.vlgmr.msra.gmra.mrb[8].mxu1 %v12574_v17  ;;  %3226 = vmatpush1.bf16.msra.mxu0 %v10730_v30  ;;  %v10822_v30 = vld [vmem:[#allocation10 + $0x5bc] ss:$48 sps:$4 sm:$0xff]  }
 0x152   :  { %3267 = vmatpush1.bf16.msra.mxu1 %v10733_v31  ;;  %3227 = vmatprep.subr.bf16.mxu0 %v10738_v32  ;;  %v10825_v31 = vld [vmem:[#allocation10 + $0xbbc] ss:$48 sps:$4 sm:$0xff]   ;;  %v10820_v32 = vld [vmem:[#allocation10 + $0x5b8] ss:$48 sps:$4 sm:$0xff]  }
 0x153   :  { %3268 = vmatprep.subr.bf16.mxu1 %v10741_v33  ;;  %3257 = vmatprep.mubr.bf16.mxu0 %v12566_v62  ;;  %v10823_v33 = vld [vmem:[#allocation10 + $0xbb8] ss:$48 sps:$4 sm:$0xff]  }
 0x154   :  { %3298 = vmatprep.mubr.bf16.mxu1 %v12568_v3 }
 0x155   :  { %3228 = vmatpush1.bf16.msra.mxu0 %v10736_v34  ;;  %v10828_v34 = vld [vmem:[#allocation10 + $0x24] ss:$48 sps:$4 sm:$0xff]  }
 0x156   :  { %3269 = vmatpush1.bf16.msra.mxu1 %v10739_v35  ;;  %3229 = vmatprep.subr.bf16.mxu0 %v10744_v36  ;;  %v10831_v35 = vld [vmem:[#allocation10 + $0x624] ss:$48 sps:$4 sm:$0xff]   ;;  %v10826_v36 = vld [vmem:[#allocation10 + $0x20] ss:$48 sps:$4 sm:$0xff]  }
 0x157   :  { %3270 = vmatprep.subr.bf16.mxu1 %v10747_v37  ;;  %v10829_v37 = vld [vmem:[#allocation10 + $0x620] ss:$48 sps:$4 sm:$0xff]  }
 0x159   :  { %3230 = vmatpush1.bf16.msra.mxu0 %v10742_v38  ;;  %v10834_v38 = vld [vmem:[#allocation10 + $0x84] ss:$48 sps:$4 sm:$0xff]  }
 0x15a   :  { %3271 = vmatpush1.bf16.msra.mxu1 %v10745_v39  ;;  %3231 = vmatprep.subr.bf16.mxu0 %v10750_v40  ;;  %v10837_v39 = vld [vmem:[#allocation10 + $0x684] ss:$48 sps:$4 sm:$0xff]   ;;  %v10832_v40 = vld [vmem:[#allocation10 + $0x80] ss:$48 sps:$4 sm:$0xff]  }
 0x15b   :  { %3272 = vmatprep.subr.bf16.mxu1 %v10753_v41  ;;  %v10835_v41 = vld [vmem:[#allocation10 + $0x680] ss:$48 sps:$4 sm:$0xff]  }
 0x15d   :  { %3232 = vmatpush1.bf16.msra.mxu0 %v10748_v42  ;;  %v10840_v42 = vld [vmem:[#allocation10 + $0xe4] ss:$48 sps:$4 sm:$0xff]  }
 0x15e   :  { %3273 = vmatpush1.bf16.msra.mxu1 %v10751_v44  ;;  %3233 = vmatprep.subr.bf16.mxu0 %v10756_v45  ;;  %v10843_v44 = vld [vmem:[#allocation10 + $0x6e4] ss:$48 sps:$4 sm:$0xff]   ;;  %v10838_v45 = vld [vmem:[#allocation10 + $0xe0] ss:$48 sps:$4 sm:$0xff]  }
 0x15f   :  { %3274 = vmatprep.subr.bf16.mxu1 %v10759_v46  ;;  %v10841_v46 = vld [vmem:[#allocation10 + $0x6e0] ss:$48 sps:$4 sm:$0xff]  }
 0x161   :  { %3234 = vmatpush1.bf16.msra.mxu0 %v10754_v47  ;;  %v10846_v47 = vld [vmem:[#allocation10 + $0x144] ss:$48 sps:$4 sm:$0xff]  }
 0x162   :  { %3275 = vmatpush1.bf16.msra.mxu1 %v10757_v48  ;;  %3235 = vmatprep.subr.bf16.mxu0 %v10762_v50  ;;  %v10849_v48 = vld [vmem:[#allocation10 + $0x744] ss:$48 sps:$4 sm:$0xff]   ;;  %v10844_v50 = vld [vmem:[#allocation10 + $0x140] ss:$48 sps:$4 sm:$0xff]  }
 0x163   :  { %3276 = vmatprep.subr.bf16.mxu1 %v10765_v51  ;;  %v10847_v51 = vld [vmem:[#allocation10 + $0x740] ss:$48 sps:$4 sm:$0xff]  }
 0x165   :  { %3236 = vmatpush1.bf16.msra.mxu0 %v10760_v52  ;;  %v10852_v52 = vld [vmem:[#allocation10 + $0x1a4] ss:$48 sps:$4 sm:$0xff]  }
 0x166   :  { %3277 = vmatpush1.bf16.msra.mxu1 %v10763_v53  ;;  %3237 = vmatprep.subr.bf16.mxu0 %v10768_v54  ;;  %v10855_v53 = vld [vmem:[#allocation10 + $0x7a4] ss:$48 sps:$4 sm:$0xff]   ;;  %v10850_v54 = vld [vmem:[#allocation10 + $0x1a0] ss:$48 sps:$4 sm:$0xff]  }
 0x167   :  { %3278 = vmatprep.subr.bf16.mxu1 %v10771_v55  ;;  %v10853_v55 = vld [vmem:[#allocation10 + $0x7a0] ss:$48 sps:$4 sm:$0xff]  }
 0x169   :  { %3238 = vmatpush1.bf16.msra.mxu0 %v10766_v56  ;;  %v10858_v56 = vld [vmem:[#allocation10 + $0x204] ss:$48 sps:$4 sm:$0xff]  }
 0x16a   :  { %3279 = vmatpush1.bf16.msra.mxu1 %v10769_v57  ;;  %3239 = vmatprep.subr.bf16.mxu0 %v10774_v58  ;;  %v10861_v57 = vld [vmem:[#allocation10 + $0x804] ss:$48 sps:$4 sm:$0xff]   ;;  %v10856_v58 = vld [vmem:[#allocation10 + $0x200] ss:$48 sps:$4 sm:$0xff]  }
 0x16b   :  { %3280 = vmatprep.subr.bf16.mxu1 %v10777_v59  ;;  %v10859_v59 = vld [vmem:[#allocation10 + $0x800] ss:$48 sps:$4 sm:$0xff]  }
 0x16d   :  { %3240 = vmatpush1.bf16.msra.mxu0 %v10772_v60  ;;  %v10864_v60 = vld [vmem:[#allocation10 + $0x264] ss:$48 sps:$4 sm:$0xff]  }
 0x16e   :  { %3281 = vmatpush1.bf16.msra.mxu1 %v10775_v61  ;;  %3241 = vmatprep.subr.bf16.mxu0 %v10780_v63  ;;  %v10867_v61 = vld [vmem:[#allocation10 + $0x864] ss:$48 sps:$4 sm:$0xff]  }
 0x16f   :  { %3282 = vmatprep.subr.bf16.mxu1 %v10783_v0 }
 0x171   :  { %3242 = vmatpush1.bf16.msra.mxu0 %v10778_v1  ;;  %v10862_v1 = vld [vmem:[#allocation10 + $0x260] ss:$48 sps:$4 sm:$0xff]  }
 0x172   :  { %3283 = vmatpush1.bf16.msra.mxu1 %v10781_v2  ;;  %3243 = vmatprep.subr.bf16.mxu0 %v10786_v4  ;;  %v10865_v2 = vld [vmem:[#allocation10 + $0x860] ss:$48 sps:$4 sm:$0xff]  }
 0x173   :  { %3284 = vmatprep.subr.bf16.mxu1 %v10789_v5 }
 0x175   :  { %3244 = vmatpush1.bf16.msra.mxu0 %v10784_v6 }
 0x176   :  { %3285 = vmatpush1.bf16.msra.mxu1 %v10787_v7  ;;  %3245 = vmatprep.subr.bf16.mxu0 %v10792_v8 }
 0x177   :  { %3286 = vmatprep.subr.bf16.mxu1 %v10795_v9 }
 0x179   :  { %3246 = vmatpush1.bf16.msra.mxu0 %v10790_v10 }
 0x17a   :  { %3287 = vmatpush1.bf16.msra.mxu1 %v10793_v11  ;;  %3247 = vmatprep.subr.bf16.mxu0 %v10798_v12  ;;  %v10870_v12 = vld [vmem:[#allocation10 + $0x2c4] ss:$48 sps:$4 sm:$0xff]  }
 0x17b   :  { %3288 = vmatprep.subr.bf16.mxu1 %v10801_v13  ;;  %v10873_v13 = vld [vmem:[#allocation10 + $0x8c4] ss:$48 sps:$4 sm:$0xff]  }
 0x17d   :  { %3248 = vmatpush1.bf16.msra.mxu0 %v10796_v14  ;;  %v10868_v14 = vld [vmem:[#allocation10 + $0x2c0] ss:$48 sps:$4 sm:$0xff]  }
 0x17e   :  { %3289 = vmatpush1.bf16.msra.mxu1 %v10799_v15  ;;  %3249 = vmatprep.subr.bf16.mxu0 %v10804_v18  ;;  %v10871_v15 = vld [vmem:[#allocation10 + $0x8c0] ss:$48 sps:$4 sm:$0xff]   ;;  %v10876_v18 = vld [vmem:[#allocation10 + $0x324] ss:$48 sps:$4 sm:$0xff]  }
 0x17f   :  { %3290 = vmatprep.subr.bf16.mxu1 %v10807_v19  ;;  %v10879_v19 = vld [vmem:[#allocation10 + $0x924] ss:$48 sps:$4 sm:$0xff]  }
 0x181   :  { %3250 = vmatpush1.bf16.msra.mxu0 %v10802_v20  ;;  %v10874_v20 = vld [vmem:[#allocation10 + $0x320] ss:$48 sps:$4 sm:$0xff]  }
 0x182   :  { %3291 = vmatpush1.bf16.msra.mxu1 %v10805_v21  ;;  %3251 = vmatprep.subr.bf16.mxu0 %v10810_v22  ;;  %v10877_v21 = vld [vmem:[#allocation10 + $0x920] ss:$48 sps:$4 sm:$0xff]   ;;  %v10882_v22 = vld [vmem:[#allocation10 + $0x384] ss:$48 sps:$4 sm:$0xff]  }
 0x183   :  { %3292 = vmatprep.subr.bf16.mxu1 %v10813_v23  ;;  %v10885_v23 = vld [vmem:[#allocation10 + $0x984] ss:$48 sps:$4 sm:$0xff]  }
 0x185   :  { %3252 = vmatpush1.bf16.msra.mxu0 %v10808_v24  ;;  %v10880_v24 = vld [vmem:[#allocation10 + $0x380] ss:$48 sps:$4 sm:$0xff]  }
 0x186   :  { %3293 = vmatpush1.bf16.msra.mxu1 %v10811_v25  ;;  %3253 = vmatprep.subr.bf16.mxu0 %v10816_v26  ;;  %v10883_v25 = vld [vmem:[#allocation10 + $0x980] ss:$48 sps:$4 sm:$0xff]   ;;  %v10888_v26 = vld [vmem:[#allocation10 + $0x3e4] ss:$48 sps:$4 sm:$0xff]  }
 0x187   :  { %3294 = vmatprep.subr.bf16.mxu1 %v10819_v27  ;;  %v10891_v27 = vld [vmem:[#allocation10 + $0x9e4] ss:$48 sps:$4 sm:$0xff]  }
 0x189   :  { %3254 = vmatpush1.bf16.msra.mxu0 %v10814_v28  ;;  %v10886_v28 = vld [vmem:[#allocation10 + $0x3e0] ss:$48 sps:$4 sm:$0xff]  }
 0x18a   :  { %3295 = vmatpush1.bf16.msra.mxu1 %v10817_v29  ;;  %3255 = vmatprep.subr.bf16.mxu0 %v10822_v30  ;;  %v10889_v29 = vld [vmem:[#allocation10 + $0x9e0] ss:$48 sps:$4 sm:$0xff]   ;;  %v10894_v30 = vld [vmem:[#allocation10 + $0x444] ss:$48 sps:$4 sm:$0xff]  }
 0x18b   :  { %3296 = vmatprep.subr.bf16.mxu1 %v10825_v31  ;;  %v10897_v31 = vld [vmem:[#allocation10 + $0xa44] ss:$48 sps:$4 sm:$0xff]  }
 0x18d   :  { %3256 = vmatpush1.bf16.msra.mxu0 %v10820_v32  ;;  %v10892_v32 = vld [vmem:[#allocation10 + $0x440] ss:$48 sps:$4 sm:$0xff]  }
 0x18e   :  { %3297 = vmatpush1.bf16.msra.mxu1 %v10823_v33  ;;  %3307 = vmatprep.subr.bf16.mxu0 %v10828_v34  ;;  %v10895_v33 = vld [vmem:[#allocation10 + $0xa40] ss:$48 sps:$4 sm:$0xff]   ;;  %v10900_v34 = vld [vmem:[#allocation10 + $0x4a4] ss:$48 sps:$4 sm:$0xff]  }
 0x18f   :  { %3348 = vmatprep.subr.bf16.mxu1 %v10831_v35  ;;  %v10903_v35 = vld [vmem:[#allocation10 + $0xaa4] ss:$48 sps:$4 sm:$0xff]  }
 0x190   :  { %3258 = vmatmul.mubr.bf16.vlgmr.msra.gmra.mrb[12].mxu0 %v12572_v16 }
 0x191   :  { %3299 = vmatmul.mubr.bf16.vlgmr.msra.gmra.mrb[12].mxu1 %v12574_v17  ;;  %3308 = vmatpush1.bf16.msra.mxu0 %v10826_v36  ;;  %v10898_v36 = vld [vmem:[#allocation10 + $0x4a0] ss:$48 sps:$4 sm:$0xff]  }
 0x192   :  { %3349 = vmatpush1.bf16.msra.mxu1 %v10829_v37  ;;  %3309 = vmatprep.subr.bf16.mxu0 %v10834_v38  ;;  %v10901_v37 = vld [vmem:[#allocation10 + $0xaa0] ss:$48 sps:$4 sm:$0xff]   ;;  %v10906_v38 = vld [vmem:[#allocation10 + $0x504] ss:$48 sps:$4 sm:$0xff]  }
 0x193   :  { %3350 = vmatprep.subr.bf16.mxu1 %v10837_v39  ;;  %3339 = vmatprep.mubr.bf16.mxu0 %v12566_v62  ;;  %v10909_v39 = vld [vmem:[#allocation10 + $0xb04] ss:$48 sps:$4 sm:$0xff]  }
 0x194   :  { %3380 = vmatprep.mubr.bf16.mxu1 %v12568_v3 }
 0x195   :  { %3310 = vmatpush1.bf16.msra.mxu0 %v10832_v40  ;;  %v10904_v40 = vld [vmem:[#allocation10 + $0x500] ss:$48 sps:$4 sm:$0xff]  }
 0x196   :  { %3351 = vmatpush1.bf16.msra.mxu1 %v10835_v41  ;;  %3311 = vmatprep.subr.bf16.mxu0 %v10840_v42  ;;  %v10907_v41 = vld [vmem:[#allocation10 + $0xb00] ss:$48 sps:$4 sm:$0xff]   ;;  %v10912_v42 = vld [vmem:[#allocation10 + $0x564] ss:$48 sps:$4 sm:$0xff]  }
 0x197   :  { %3352 = vmatprep.subr.bf16.mxu1 %v10843_v44  ;;  %v10915_v44 = vld [vmem:[#allocation10 + $0xb64] ss:$48 sps:$4 sm:$0xff]  }
 0x199   :  { %3312 = vmatpush1.bf16.msra.mxu0 %v10838_v45  ;;  %v10910_v45 = vld [vmem:[#allocation10 + $0x560] ss:$48 sps:$4 sm:$0xff]  }
 0x19a   :  { %3353 = vmatpush1.bf16.msra.mxu1 %v10841_v46  ;;  %3313 = vmatprep.subr.bf16.mxu0 %v10846_v47  ;;  %v10913_v46 = vld [vmem:[#allocation10 + $0xb60] ss:$48 sps:$4 sm:$0xff]   ;;  %v10918_v47 = vld [vmem:[#allocation10 + $0x5c4] ss:$48 sps:$4 sm:$0xff]  }
 0x19b   :  { %3354 = vmatprep.subr.bf16.mxu1 %v10849_v48  ;;  %v10921_v48 = vld [vmem:[#allocation10 + $0xbc4] ss:$48 sps:$4 sm:$0xff]  }
 0x19d   :  { %3314 = vmatpush1.bf16.msra.mxu0 %v10844_v50  ;;  %v10916_v50 = vld [vmem:[#allocation10 + $0x5c0] ss:$48 sps:$4 sm:$0xff]  }
 0x19e   :  { %3355 = vmatpush1.bf16.msra.mxu1 %v10847_v51  ;;  %3315 = vmatprep.subr.bf16.mxu0 %v10852_v52  ;;  %v10919_v51 = vld [vmem:[#allocation10 + $0xbc0] ss:$48 sps:$4 sm:$0xff]   ;;  %v10924_v52 = vld [vmem:[#allocation10 + $0x2c] ss:$48 sps:$4 sm:$0xff]  }
 0x19f   :  { %3356 = vmatprep.subr.bf16.mxu1 %v10855_v53  ;;  %v10927_v53 = vld [vmem:[#allocation10 + $0x62c] ss:$48 sps:$4 sm:$0xff]  }
 0x1a1   :  { %3316 = vmatpush1.bf16.msra.mxu0 %v10850_v54  ;;  %v10922_v54 = vld [vmem:[#allocation10 + $0x28] ss:$48 sps:$4 sm:$0xff]  }
 0x1a2   :  { %3357 = vmatpush1.bf16.msra.mxu1 %v10853_v55  ;;  %3317 = vmatprep.subr.bf16.mxu0 %v10858_v56  ;;  %v10925_v55 = vld [vmem:[#allocation10 + $0x628] ss:$48 sps:$4 sm:$0xff]   ;;  %v10930_v56 = vld [vmem:[#allocation10 + $0x8c] ss:$48 sps:$4 sm:$0xff]  }
 0x1a3   :  { %3358 = vmatprep.subr.bf16.mxu1 %v10861_v57  ;;  %v3013_v63 = vpop.f32.mrb[0].mxu0  ;;  %v10933_v57 = vld [vmem:[#allocation10 + $0x68c] ss:$48 sps:$4 sm:$0xff]  }
 0x1a4   :  { %v3054_v0 = vpop.f32.mrb[0].mxu1  ;;  %v3015_v5 = vpop.f32.mrb[1].mxu0 }
 0x1a5   :  { %v12592_v4 = vadd.f32 %v3054_v0, %v3013_v63  ;;  %v3056_v6 = vpop.f32.mrb[1].mxu1  ;;  %v3017_v8 = vpop.f32.mrb[2].mxu0  ;;  %3318 = vmatpush1.bf16.msra.mxu0 %v10856_v58  ;;  %v10928_v58 = vld [vmem:[#allocation10 + $0x88] ss:$48 sps:$4 sm:$0xff]  }
 0x1a6   :  { %v12594_v7 = vadd.f32 %v3056_v6, %v3015_v5  ;;  %v3058_v9 = vpop.f32.mrb[2].mxu1  ;;  %3359 = vmatpush1.bf16.msra.mxu1 %v10859_v59  ;;  %v3018_v10 = vpop.f32.mrb[3].mxu0  ;;  %3319 = vmatprep.subr.bf16.mxu0 %v10864_v60  ;;  %v10931_v59 = vld [vmem:[#allocation10 + $0x688] ss:$48 sps:$4 sm:$0xff]   ;;  %v10936_v60 = vld [vmem:[#allocation10 + $0xec] ss:$48 sps:$4 sm:$0xff]  }
 0x1a7   :  { %v3059_v11 = vpop.f32.mrb[3].mxu1  ;;  %3360 = vmatprep.subr.bf16.mxu1 %v10867_v61  ;;  %v10939_v61 = vld [vmem:[#allocation10 + $0x6ec] ss:$48 sps:$4 sm:$0xff]   ;;  %v10934_v63 = vld [vmem:[#allocation10 + $0xe8] ss:$48 sps:$4 sm:$0xff]  }
 0x1a8   :  { %v10937_v0 = vld [vmem:[#allocation10 + $0x6e8] ss:$48 sps:$4 sm:$0xff]   ;;  %v10948_v8 = vld [vmem:[#allocation10 + $0x1ac] ss:$48 sps:$4 sm:$0xff]  }
 0x1a9   :  { %3320 = vmatpush1.bf16.msra.mxu0 %v10862_v1  ;;  %v10942_v1 = vld [vmem:[#allocation10 + $0x14c] ss:$48 sps:$4 sm:$0xff]   ;;  %v10940_v5 = vld [vmem:[#allocation10 + $0x148] ss:$48 sps:$4 sm:$0xff]  }
 0x1aa   :  { %3361 = vmatpush1.bf16.msra.mxu1 %v10865_v2  ;;  %3321 = vmatprep.subr.bf16.mxu0 %v10870_v12  ;;  %v10945_v2 = vld [vmem:[#allocation10 + $0x74c] ss:$48 sps:$4 sm:$0xff]   ;;  %v10943_v6 = vld [vmem:[#allocation10 + $0x748] ss:$48 sps:$4 sm:$0xff]  }
 0x1ab   :  { %3362 = vmatprep.subr.bf16.mxu1 %v10873_v13  ;;  %v10951_v9 = vld [vmem:[#allocation10 + $0x7ac] ss:$48 sps:$4 sm:$0xff]   ;;  %v10952_v12 = vld [vmem:[#allocation10 + $0x208] ss:$48 sps:$4 sm:$0xff]  }
 0x1ac   :  { %v10954_v10 = vld [vmem:[#allocation10 + $0x20c] ss:$48 sps:$4 sm:$0xff]   ;;  %v10955_v13 = vld [vmem:[#allocation10 + $0x808] ss:$48 sps:$4 sm:$0xff]  }
 0x1ad   :  { %3322 = vmatpush1.bf16.msra.mxu0 %v10868_v14  ;;  %v10957_v11 = vld [vmem:[#allocation10 + $0x80c] ss:$48 sps:$4 sm:$0xff]  }
 0x1ae   :  { %3363 = vmatpush1.bf16.msra.mxu1 %v10871_v15  ;;  %3323 = vmatprep.subr.bf16.mxu0 %v10876_v18  ;;  %v10960_v14 = vld [vmem:[#allocation10 + $0x26c] ss:$48 sps:$4 sm:$0xff]  }
 0x1af   :  { %3364 = vmatprep.subr.bf16.mxu1 %v10879_v19  ;;  %v10963_v15 = vld [vmem:[#allocation10 + $0x86c] ss:$48 sps:$4 sm:$0xff]  }
 0x1b1   :  { %3324 = vmatpush1.bf16.msra.mxu0 %v10874_v20  ;;  %v10958_v20 = vld [vmem:[#allocation10 + $0x268] ss:$48 sps:$4 sm:$0xff]  }
 0x1b2   :  { %3365 = vmatpush1.bf16.msra.mxu1 %v10877_v21  ;;  %3325 = vmatprep.subr.bf16.mxu0 %v10882_v22  ;;  %v10961_v21 = vld [vmem:[#allocation10 + $0x868] ss:$48 sps:$4 sm:$0xff]  }
 0x1b3   :  { %3366 = vmatprep.subr.bf16.mxu1 %v10885_v23 }
 0x1b5   :  { %3326 = vmatpush1.bf16.msra.mxu0 %v10880_v24 }
 0x1b6   :  { %3367 = vmatpush1.bf16.msra.mxu1 %v10883_v25  ;;  %3327 = vmatprep.subr.bf16.mxu0 %v10888_v26 }
 0x1b7   :  { %3368 = vmatprep.subr.bf16.mxu1 %v10891_v27 }
 0x1b9   :  { %3328 = vmatpush1.bf16.msra.mxu0 %v10886_v28 }
 0x1ba   :  { %3369 = vmatpush1.bf16.msra.mxu1 %v10889_v29  ;;  %3329 = vmatprep.subr.bf16.mxu0 %v10894_v30  ;;  %v10966_v30 = vld [vmem:[#allocation10 + $0x2cc] ss:$48 sps:$4 sm:$0xff]  }
 0x1bb   :  { %3370 = vmatprep.subr.bf16.mxu1 %v10897_v31  ;;  %v10969_v31 = vld [vmem:[#allocation10 + $0x8cc] ss:$48 sps:$4 sm:$0xff]  }
 0x1bd   :  { %3330 = vmatpush1.bf16.msra.mxu0 %v10892_v32  ;;  %v10964_v32 = vld [vmem:[#allocation10 + $0x2c8] ss:$48 sps:$4 sm:$0xff]  }
 0x1be   :  { %3371 = vmatpush1.bf16.msra.mxu1 %v10895_v33  ;;  %3331 = vmatprep.subr.bf16.mxu0 %v10900_v34  ;;  %v10967_v33 = vld [vmem:[#allocation10 + $0x8c8] ss:$48 sps:$4 sm:$0xff]   ;;  %v10972_v34 = vld [vmem:[#allocation10 + $0x32c] ss:$48 sps:$4 sm:$0xff]  }
 0x1bf   :  { %3372 = vmatprep.subr.bf16.mxu1 %v10903_v35  ;;  %v10975_v35 = vld [vmem:[#allocation10 + $0x92c] ss:$48 sps:$4 sm:$0xff]  }
 0x1c1   :  { %3332 = vmatpush1.bf16.msra.mxu0 %v10898_v36  ;;  %v10970_v36 = vld [vmem:[#allocation10 + $0x328] ss:$48 sps:$4 sm:$0xff]  }
 0x1c2   :  { %3373 = vmatpush1.bf16.msra.mxu1 %v10901_v37  ;;  %3333 = vmatprep.subr.bf16.mxu0 %v10906_v38  ;;  %v10973_v37 = vld [vmem:[#allocation10 + $0x928] ss:$48 sps:$4 sm:$0xff]   ;;  %v10978_v38 = vld [vmem:[#allocation10 + $0x38c] ss:$48 sps:$4 sm:$0xff]  }
 0x1c3   :  { %3374 = vmatprep.subr.bf16.mxu1 %v10909_v39  ;;  %v10981_v39 = vld [vmem:[#allocation10 + $0x98c] ss:$48 sps:$4 sm:$0xff]  }
 0x1c5   :  { %3334 = vmatpush1.bf16.msra.mxu0 %v10904_v40  ;;  %v10976_v40 = vld [vmem:[#allocation10 + $0x388] ss:$48 sps:$4 sm:$0xff]  }
 0x1c6   :  { %3375 = vmatpush1.bf16.msra.mxu1 %v10907_v41  ;;  %3335 = vmatprep.subr.bf16.mxu0 %v10912_v42  ;;  %v10979_v41 = vld [vmem:[#allocation10 + $0x988] ss:$48 sps:$4 sm:$0xff]   ;;  %v10984_v42 = vld [vmem:[#allocation10 + $0x3ec] ss:$48 sps:$4 sm:$0xff]  }
 0x1c7   :  { %3376 = vmatprep.subr.bf16.mxu1 %v10915_v44  ;;  %v10987_v44 = vld [vmem:[#allocation10 + $0x9ec] ss:$48 sps:$4 sm:$0xff]  }
 0x1c9   :  { %3336 = vmatpush1.bf16.msra.mxu0 %v10910_v45  ;;  %v10982_v45 = vld [vmem:[#allocation10 + $0x3e8] ss:$48 sps:$4 sm:$0xff]  }
 0x1ca   :  { %3377 = vmatpush1.bf16.msra.mxu1 %v10913_v46  ;;  %3337 = vmatprep.subr.bf16.mxu0 %v10918_v47  ;;  %v10985_v46 = vld [vmem:[#allocation10 + $0x9e8] ss:$48 sps:$4 sm:$0xff]   ;;  %v10990_v47 = vld [vmem:[#allocation10 + $0x44c] ss:$48 sps:$4 sm:$0xff]  }
 0x1cb   :  { %3378 = vmatprep.subr.bf16.mxu1 %v10921_v48  ;;  %v10993_v48 = vld [vmem:[#allocation10 + $0xa4c] ss:$48 sps:$4 sm:$0xff]  }
 0x1cd   :  { %3338 = vmatpush1.bf16.msra.mxu0 %v10916_v50  ;;  %v10988_v50 = vld [vmem:[#allocation10 + $0x448] ss:$48 sps:$4 sm:$0xff]  }
 0x1ce   :  { %3379 = vmatpush1.bf16.msra.mxu1 %v10919_v51  ;;  %3389 = vmatprep.subr.bf16.mxu0 %v10924_v52  ;;  %v10991_v51 = vld [vmem:[#allocation10 + $0xa48] ss:$48 sps:$4 sm:$0xff]   ;;  %v10996_v52 = vld [vmem:[#allocation10 + $0x4ac] ss:$48 sps:$4 sm:$0xff]  }
 0x1cf   :  { %3430 = vmatprep.subr.bf16.mxu1 %v10927_v53  ;;  %v10999_v53 = vld [vmem:[#allocation10 + $0xaac] ss:$48 sps:$4 sm:$0xff]  }
 0x1d0   :  { %3340 = vmatmul.mubr.bf16.vlgmr.msra.gmra.mrb[16].mxu0 %v12572_v16 }
 0x1d1   :  { %3381 = vmatmul.mubr.bf16.vlgmr.msra.gmra.mrb[16].mxu1 %v12574_v17  ;;  %3390 = vmatpush1.bf16.msra.mxu0 %v10922_v54  ;;  %v10994_v54 = vld [vmem:[#allocation10 + $0x4a8] ss:$48 sps:$4 sm:$0xff]  }
 0x1d2   :  { %3431 = vmatpush1.bf16.msra.mxu1 %v10925_v55  ;;  %3391 = vmatprep.subr.bf16.mxu0 %v10930_v56  ;;  %v10997_v55 = vld [vmem:[#allocation10 + $0xaa8] ss:$48 sps:$4 sm:$0xff]   ;;  %v11002_v56 = vld [vmem:[#allocation10 + $0x50c] ss:$48 sps:$4 sm:$0xff]  }
 0x1d3   :  { %3432 = vmatprep.subr.bf16.mxu1 %v10933_v57  ;;  %3421 = vmatprep.mubr.bf16.mxu0 %v12566_v62  ;;  %v10946_v62 = vld [vmem:[#allocation10 + $0x1a8] ss:$48 sps:$4 sm:$0xff]   ;;  %v11005_v57 = vld [vmem:[#allocation10 + $0xb0c] ss:$48 sps:$4 sm:$0xff]  }
 0x1d4   :  { %3462 = vmatprep.mubr.bf16.mxu1 %v12568_v3  ;;  %v10949_v3 = vld [vmem:[#allocation10 + $0x7a8] ss:$48 sps:$4 sm:$0xff]  }
 0x1d5   :  { %3392 = vmatpush1.bf16.msra.mxu0 %v10928_v58  ;;  %v130_v58 = vld [vmem:[#allocation2] sm:$0xff] }
 0x1d6   :  { %3433 = vmatpush1.bf16.msra.mxu1 %v10931_v59  ;;  %3393 = vmatprep.subr.bf16.mxu0 %v10936_v60  ;;  %v11000_v59 = vld [vmem:[#allocation10 + $0x508] ss:$48 sps:$4 sm:$0xff]  }
 0x1d7   :  { %3434 = vmatprep.subr.bf16.mxu1 %v10939_v61  ;;  %v11003_v60 = vld [vmem:[#allocation10 + $0xb08] ss:$48 sps:$4 sm:$0xff]   ;;  %v11008_v61 = vld [vmem:[#allocation10 + $0x56c] ss:$48 sps:$4 sm:$0xff]  }
 0x1d9   :  { %3394 = vmatpush1.bf16.msra.mxu0 %v10934_v63  ;;  %v11011_v63 = vld [vmem:[#allocation10 + $0xb6c] ss:$48 sps:$4 sm:$0xff]  }
 0x1da   :  { %3435 = vmatpush1.bf16.msra.mxu1 %v10937_v0  ;;  %3395 = vmatprep.subr.bf16.mxu0 %v10942_v1  ;;  %v134_v0 = vcombine.high %v130_v58, %v130_v58  ;;  %v11006_v1 = vld [vmem:[#allocation10 + $0x568] ss:$48 sps:$4 sm:$0xff]  }
 0x1db   :  { %3436 = vmatprep.subr.bf16.mxu1 %v10945_v2  ;;  %v11009_v2 = vld [vmem:[#allocation10 + $0xb68] ss:$48 sps:$4 sm:$0xff]  }
 0x1dd   :  { %3396 = vmatpush1.bf16.msra.mxu0 %v10940_v5  ;;  %v11014_v5 = vld [vmem:[#allocation10 + $0x5cc] ss:$48 sps:$4 sm:$0xff]  }
 0x1de   :  { %3437 = vmatpush1.bf16.msra.mxu1 %v10943_v6  ;;  %3397 = vmatprep.subr.bf16.mxu0 %v10948_v8  ;;  %v11017_v6 = vld [vmem:[#allocation10 + $0xbcc] ss:$48 sps:$4 sm:$0xff]   ;;  %v12605_v8 = vrot.slane %v130_v58, %v12562_v49  ;;  %v11060_v58 = vld [vmem:[#allocation8 + $0x2a0] ss:$48 sps:$4 sm:$0xff]  }
 0x1df   :  { %3438 = vmatprep.subr.bf16.mxu1 %v10951_v9  ;;  %v12608_v9 = vrot.slane %v134_v0, %v12562_v49  ;;  %v11069_v0 = vld [vmem:[#allocation8 + $0x900] ss:$48 sps:$4 sm:$0xff]  }
 0x1e1   :  { %3398 = vmatpush1.bf16.msra.mxu0 %v10946_v62  ;;  %v11012_v62 = vld [vmem:[#allocation10 + $0x5c8] ss:$48 sps:$4 sm:$0xff]  }
 0x1e2   :  { %3439 = vmatpush1.bf16.msra.mxu1 %v10949_v3  ;;  %3399 = vmatprep.subr.bf16.mxu0 %v10954_v10  ;;  %v11015_v3 = vld [vmem:[#allocation10 + $0xbc8] ss:$48 sps:$4 sm:$0xff]   ;;  %v11020_v10 = vld [vmem:[#allocation8 + $0x4] ss:$48 sps:$4 sm:$0xff]  }
 0x1e3   :  { %3440 = vmatprep.subr.bf16.mxu1 %v10957_v11  ;;  %v3095_v18 = vpop.f32.mrb[4].mxu0  ;;  %v11023_v11 = vld [vmem:[#allocation8 + $0x604] ss:$48 sps:$4 sm:$0xff]  }
 0x1e4   :  { %v3136_v19 = vpop.f32.mrb[4].mxu1  ;;  %v3097_v23 = vpop.f32.mrb[5].mxu0 }
 0x1e5   :  { %v12600_v22 = vadd.f32 %v3136_v19, %v3095_v18  ;;  %v3138_v24 = vpop.f32.mrb[5].mxu1  ;;  %v3099_v26 = vpop.f32.mrb[6].mxu0  ;;  %3400 = vmatpush1.bf16.msra.mxu0 %v10952_v12  ;;  %v11018_v12 = vld [vmem:[#allocation8] ss:$48 sps:$4 sm:$0xff]   ;;  %v11026_v18 = vld [vmem:[#allocation8 + $0x64] ss:$48 sps:$4 sm:$0xff]  }
 0x1e6   :  { %v12602_v25 = vadd.f32 %v3138_v24, %v3097_v23  ;;  %v3140_v27 = vpop.f32.mrb[6].mxu1  ;;  %3441 = vmatpush1.bf16.msra.mxu1 %v10955_v13  ;;  %v3100_v28 = vpop.f32.mrb[7].mxu0  ;;  %3401 = vmatprep.subr.bf16.mxu0 %v10960_v14  ;;  %v11021_v13 = vld [vmem:[#allocation8 + $0x600] ss:$48 sps:$4 sm:$0xff]   ;;  %v149_v14 = vcombine.high %v12605_v8, %v12605_v8  ;;  %v11029_v19 = vld [vmem:[#allocation8 + $0x664] ss:$48 sps:$4 sm:$0xff]  }
 0x1e7   :  { %v3141_v29 = vpop.f32.mrb[7].mxu1  ;;  %3442 = vmatprep.subr.bf16.mxu1 %v10963_v15  ;;  %v150_v15 = vcombine.high %v12608_v9, %v12608_v9  ;;  %v11024_v23 = vld [vmem:[#allocation8 + $0x60] ss:$48 sps:$4 sm:$0xff]   ;;  %v11032_v26 = vld [vmem:[#allocation8 + $0xc4] ss:$48 sps:$4 sm:$0xff]  }
 0x1e8   :  { %v11027_v24 = vld [vmem:[#allocation8 + $0x660] ss:$48 sps:$4 sm:$0xff]   ;;  %v11035_v27 = vld [vmem:[#allocation8 + $0x6c4] ss:$48 sps:$4 sm:$0xff]  }
 0x1e9   :  { %3402 = vmatpush1.bf16.msra.mxu0 %v10958_v20  ;;  %v12614_v20 = vpack.c.bf16 %v149_v14, %v149_v14  ;;  %v11030_v28 = vld [vmem:[#allocation8 + $0xc0] ss:$48 sps:$4 sm:$0xff]  }
 0x1ea   :  { %3443 = vmatpush1.bf16.msra.mxu1 %v10961_v21  ;;  %3403 = vmatprep.subr.bf16.mxu0 %v10966_v30  ;;  %v12616_v21 = vpack.c.bf16 %v150_v15, %v150_v15  ;;  %v11033_v29 = vld [vmem:[#allocation8 + $0x6c0] ss:$48 sps:$4 sm:$0xff]  }
 0x1eb   :  { %3444 = vmatprep.subr.bf16.mxu1 %v10969_v31  ;;  %v11036_v30 = vld [vmem:[#allocation8 + $0x120] ss:$48 sps:$4 sm:$0xff]  }
 0x1ec   :  { %v11039_v31 = vld [vmem:[#allocation8 + $0x720] ss:$48 sps:$4 sm:$0xff]  }
 0x1ed   :  { %3404 = vmatpush1.bf16.msra.mxu0 %v10964_v32  ;;  %v11044_v32 = vld [vmem:[#allocation8 + $0x184] ss:$48 sps:$4 sm:$0xff]   ;;  %v11084_v14 = vld [vmem:[#allocation8 + $0x420] ss:$48 sps:$4 sm:$0xff]  }
 0x1ee   :  { %3445 = vmatpush1.bf16.msra.mxu1 %v10967_v33  ;;  %3405 = vmatprep.subr.bf16.mxu0 %v10972_v34  ;;  %v11047_v33 = vld [vmem:[#allocation8 + $0x784] ss:$48 sps:$4 sm:$0xff]   ;;  %v11042_v34 = vld [vmem:[#allocation8 + $0x180] ss:$48 sps:$4 sm:$0xff]  }
 0x1ef   :  { %3446 = vmatprep.subr.bf16.mxu1 %v10975_v35  ;;  %v11045_v35 = vld [vmem:[#allocation8 + $0x780] ss:$48 sps:$4 sm:$0xff]  }
 0x1f0   :  { %v11087_v15 = vld [vmem:[#allocation8 + $0xa20] ss:$48 sps:$4 sm:$0xff]  }
 0x1f1   :  { %3406 = vmatpush1.bf16.msra.mxu0 %v10970_v36  ;;  %v11050_v36 = vld [vmem:[#allocation8 + $0x1e4] ss:$48 sps:$4 sm:$0xff]  }
 0x1f2   :  { %3447 = vmatpush1.bf16.msra.mxu1 %v10973_v37  ;;  %3407 = vmatprep.subr.bf16.mxu0 %v10978_v38  ;;  %v11053_v37 = vld [vmem:[#allocation8 + $0x7e4] ss:$48 sps:$4 sm:$0xff]   ;;  %v11048_v38 = vld [vmem:[#allocation8 + $0x1e0] ss:$48 sps:$4 sm:$0xff]  }
 0x1f3   :  { %3448 = vmatprep.subr.bf16.mxu1 %v10981_v39  ;;  %v11051_v39 = vld [vmem:[#allocation8 + $0x7e0] ss:$48 sps:$4 sm:$0xff]  }
 0x1f5   :  { %3408 = vmatpush1.bf16.msra.mxu0 %v10976_v40  ;;  %v11056_v40 = vld [vmem:[#allocation8 + $0x244] ss:$48 sps:$4 sm:$0xff]  }
 0x1f6   :  { %3449 = vmatpush1.bf16.msra.mxu1 %v10979_v41  ;;  %3409 = vmatprep.subr.bf16.mxu0 %v10984_v42  ;;  %v11059_v41 = vld [vmem:[#allocation8 + $0x844] ss:$48 sps:$4 sm:$0xff]  }
 0x1f7   :  { %3450 = vmatprep.subr.bf16.mxu1 %v10987_v44 }
 0x1f9   :  { %3410 = vmatpush1.bf16.msra.mxu0 %v10982_v45  ;;  %v11054_v45 = vld [vmem:[#allocation8 + $0x240] ss:$48 sps:$4 sm:$0xff]  }
 0x1fa   :  { %3451 = vmatpush1.bf16.msra.mxu1 %v10985_v46  ;;  %3411 = vmatprep.subr.bf16.mxu0 %v10990_v47  ;;  %v11057_v46 = vld [vmem:[#allocation8 + $0x840] ss:$48 sps:$4 sm:$0xff]  }
 0x1fb   :  { %3452 = vmatprep.subr.bf16.mxu1 %v10993_v48 }
 0x1fd   :  { %3412 = vmatpush1.bf16.msra.mxu0 %v10988_v50 }
 0x1fe   :  { %3453 = vmatpush1.bf16.msra.mxu1 %v10991_v51  ;;  %3413 = vmatprep.subr.bf16.mxu0 %v10996_v52 }
 0x1ff   :  { %3454 = vmatprep.subr.bf16.mxu1 %v10999_v53 }
 0x201   :  { %3414 = vmatpush1.bf16.msra.mxu0 %v10994_v54 }
 0x202   :  { %3455 = vmatpush1.bf16.msra.mxu1 %v10997_v55  ;;  %3415 = vmatprep.subr.bf16.mxu0 %v11002_v56  ;;  %v11062_v56 = vld [vmem:[#allocation8 + $0x2a4] ss:$48 sps:$4 sm:$0xff]  }
 0x203   :  { %3456 = vmatprep.subr.bf16.mxu1 %v11005_v57  ;;  %v11065_v57 = vld [vmem:[#allocation8 + $0x8a4] ss:$48 sps:$4 sm:$0xff]  }
 0x205   :  { %3416 = vmatpush1.bf16.msra.mxu0 %v11000_v59  ;;  %v11063_v59 = vld [vmem:[#allocation8 + $0x8a0] ss:$48 sps:$4 sm:$0xff]  }
 0x206   :  { %3457 = vmatpush1.bf16.msra.mxu1 %v11003_v60  ;;  %3417 = vmatprep.subr.bf16.mxu0 %v11008_v61  ;;  %v11068_v60 = vld [vmem:[#allocation8 + $0x304] ss:$48 sps:$4 sm:$0xff]  }
 0x207   :  { %3458 = vmatprep.subr.bf16.mxu1 %v11011_v63  ;;  %v11071_v61 = vld [vmem:[#allocation8 + $0x904] ss:$48 sps:$4 sm:$0xff]   ;;  %v11066_v63 = vld [vmem:[#allocation8 + $0x300] ss:$48 sps:$4 sm:$0xff]  }
 0x209   :  { %3418 = vmatpush1.bf16.msra.mxu0 %v11006_v1  ;;  %v11074_v1 = vld [vmem:[#allocation8 + $0x364] ss:$48 sps:$4 sm:$0xff]  }
 0x20a   :  { %3459 = vmatpush1.bf16.msra.mxu1 %v11009_v2  ;;  %3419 = vmatprep.subr.bf16.mxu0 %v11014_v5  ;;  %v11077_v2 = vld [vmem:[#allocation8 + $0x964] ss:$48 sps:$4 sm:$0xff]   ;;  %v11072_v5 = vld [vmem:[#allocation8 + $0x360] ss:$48 sps:$4 sm:$0xff]  }
 0x20b   :  { %3460 = vmatprep.subr.bf16.mxu1 %v11017_v6  ;;  %v11075_v6 = vld [vmem:[#allocation8 + $0x960] ss:$48 sps:$4 sm:$0xff]  }
 0x20d   :  { %3420 = vmatpush1.bf16.msra.mxu0 %v11012_v62  ;;  %v11080_v62 = vld [vmem:[#allocation8 + $0x3c4] ss:$48 sps:$4 sm:$0xff]  }
 0x20e   :  { %3461 = vmatpush1.bf16.msra.mxu1 %v11015_v3  ;;  %5871 = vmatprep.subr.bf16.mxu0 %v11020_v10  ;;  %v11083_v3 = vld [vmem:[#allocation8 + $0x9c4] ss:$48 sps:$4 sm:$0xff]   ;;  %v11078_v10 = vld [vmem:[#allocation8 + $0x3c0] ss:$48 sps:$4 sm:$0xff]  }
 0x20f   :  { %5912 = vmatprep.subr.bf16.mxu1 %v11023_v11  ;;  %v11081_v11 = vld [vmem:[#allocation8 + $0x9c0] ss:$48 sps:$4 sm:$0xff]  }
 0x210   :  { %3422 = vmatmul.mubr.bf16.vlgmr.msra.gmra.mrb[20].mxu0 %v12572_v16  ;;  %v11038_v16 = vld [vmem:[#allocation8 + $0x124] ss:$48 sps:$4 sm:$0xff]  }
 0x211   :  { %3463 = vmatmul.mubr.bf16.vlgmr.msra.gmra.mrb[20].mxu1 %v12574_v17  ;;  %5872 = vmatpush1.bf16.msra.mxu0 %v11018_v12  ;;  %v11041_v17 = vld [vmem:[#allocation8 + $0x724] ss:$48 sps:$4 sm:$0xff]  }
 0x212   :  { %5913 = vmatpush1.bf16.msra.mxu1 %v11021_v13  ;;  %5873 = vmatprep.subr.bf16.mxu0 %v11026_v18  ;;  %v11086_v12 = vld [vmem:[#allocation8 + $0x424] ss:$48 sps:$4 sm:$0xff]  }
 0x213   :  { %5914 = vmatprep.subr.bf16.mxu1 %v11029_v19  ;;  %5903 = vmatprep.mubr.bf16.mxu0 %v12614_v20  ;;  %v11089_v13 = vld [vmem:[#allocation8 + $0xa24] ss:$48 sps:$4 sm:$0xff]  }
 0x214   :  { %5944 = vmatprep.mubr.bf16.mxu1 %v12616_v21  ;;  %v11092_v18 = vld [vmem:[#allocation8 + $0x484] ss:$48 sps:$4 sm:$0xff]  }
 0x215   :  { %5874 = vmatpush1.bf16.msra.mxu0 %v11024_v23  ;;  %v11095_v19 = vld [vmem:[#allocation8 + $0xa84] ss:$48 sps:$4 sm:$0xff]   ;;  %v11090_v23 = vld [vmem:[#allocation8 + $0x480] ss:$48 sps:$4 sm:$0xff]  }
 0x216   :  { %5915 = vmatpush1.bf16.msra.mxu1 %v11027_v24  ;;  %5875 = vmatprep.subr.bf16.mxu0 %v11032_v26  ;;  %v11093_v24 = vld [vmem:[#allocation8 + $0xa80] ss:$48 sps:$4 sm:$0xff]   ;;  %v11098_v26 = vld [vmem:[#allocation8 + $0x4e4] ss:$48 sps:$4 sm:$0xff]  }
 0x217   :  { %5916 = vmatprep.subr.bf16.mxu1 %v11035_v27  ;;  %v11101_v27 = vld [vmem:[#allocation8 + $0xae4] ss:$48 sps:$4 sm:$0xff]  }
 0x219   :  { %5876 = vmatpush1.bf16.msra.mxu0 %v11030_v28  ;;  %v11096_v28 = vld [vmem:[#allocation8 + $0x4e0] ss:$48 sps:$4 sm:$0xff]  }
 0x21a   :  { %5917 = vmatpush1.bf16.msra.mxu1 %v11033_v29  ;;  %5877 = vmatprep.subr.bf16.mxu0 %v11038_v16  ;;  %v11099_v29 = vld [vmem:[#allocation8 + $0xae0] ss:$48 sps:$4 sm:$0xff]   ;;  %v11104_v16 = vld [vmem:[#allocation8 + $0x544] ss:$48 sps:$4 sm:$0xff]  }
 0x21b   :  { %5918 = vmatprep.subr.bf16.mxu1 %v11041_v17  ;;  %v11107_v17 = vld [vmem:[#allocation8 + $0xb44] ss:$48 sps:$4 sm:$0xff]  }
 0x21d   :  { %5878 = vmatpush1.bf16.msra.mxu0 %v11036_v30  ;;  %v11102_v30 = vld [vmem:[#allocation8 + $0x540] ss:$48 sps:$4 sm:$0xff]  }
 0x21e   :  { %5919 = vmatpush1.bf16.msra.mxu1 %v11039_v31  ;;  %5879 = vmatprep.subr.bf16.mxu0 %v11044_v32  ;;  %v11105_v31 = vld [vmem:[#allocation8 + $0xb40] ss:$48 sps:$4 sm:$0xff]   ;;  %v11110_v32 = vld [vmem:[#allocation8 + $0x5a4] ss:$48 sps:$4 sm:$0xff]  }
 0x21f   :  { %5920 = vmatprep.subr.bf16.mxu1 %v11047_v33  ;;  %v11113_v33 = vld [vmem:[#allocation8 + $0xba4] ss:$48 sps:$4 sm:$0xff]  }
 0x221   :  { %5880 = vmatpush1.bf16.msra.mxu0 %v11042_v34  ;;  %v11108_v34 = vld [vmem:[#allocation8 + $0x5a0] ss:$48 sps:$4 sm:$0xff]  }
 0x222   :  { %5921 = vmatpush1.bf16.msra.mxu1 %v11045_v35  ;;  %5881 = vmatprep.subr.bf16.mxu0 %v11050_v36  ;;  %v11111_v35 = vld [vmem:[#allocation8 + $0xba0] ss:$48 sps:$4 sm:$0xff]   ;;  %v11117_v36 = vld [vmem:[#allocation8 + $0xc04] ss:$48 sps:$4 sm:$0xff]  }
 0x223   :  { %5922 = vmatprep.subr.bf16.mxu1 %v11053_v37  ;;  %v3177_v42 = vpop.f32.mrb[8].mxu0  ;;  %v11120_v37 = vld [vmem:[#allocation8 + $0xc] ss:$48 sps:$4 sm:$0xff]  }
 0x224   :  { %v3218_v44 = vpop.f32.mrb[8].mxu1  ;;  %v3179_v48 = vpop.f32.mrb[9].mxu0 }
 0x225   :  { %v12622_v47 = vadd.f32 %v3218_v44, %v3177_v42  ;;  %v3220_v50 = vpop.f32.mrb[9].mxu1  ;;  %v3181_v52 = vpop.f32.mrb[10].mxu0  ;;  %5882 = vmatpush1.bf16.msra.mxu0 %v11048_v38  ;;  %v12628_v38 = vpack.c.bf16 %v12605_v8, %v12605_v8  ;;  %v11123_v42 = vld [vmem:[#allocation8 + $0xc64] ss:$48 sps:$4 sm:$0xff]   ;;  %v11126_v44 = vld [vmem:[#allocation8 + $0x6c] ss:$48 sps:$4 sm:$0xff]  }
 0x226   :  { %v12624_v51 = vadd.f32 %v3220_v50, %v3179_v48  ;;  %v3222_v53 = vpop.f32.mrb[10].mxu1  ;;  %5923 = vmatpush1.bf16.msra.mxu1 %v11051_v39  ;;  %v3182_v54 = vpop.f32.mrb[11].mxu0  ;;  %5883 = vmatprep.subr.bf16.mxu0 %v11056_v40  ;;  %v12632_v39 = vpack.c.bf16 %v12608_v9, %v12608_v9  ;;  %v11115_v40 = vld [vmem:[#allocation8 + $0xc00] ss:$48 sps:$4 sm:$0xff]   ;;  %v11129_v9 = vld [vmem:[#allocation8 + $0xcc4] ss:$48 sps:$4 sm:$0xff]  }
 0x227   :  { %v3223_v55 = vpop.f32.mrb[11].mxu1  ;;  %5924 = vmatprep.subr.bf16.mxu1 %v11059_v41  ;;  %v11118_v41 = vld [vmem:[#allocation8 + $0x8] ss:$48 sps:$4 sm:$0xff]   ;;  %v11121_v8 = vld [vmem:[#allocation8 + $0xc60] ss:$48 sps:$4 sm:$0xff]   ;;  %v12393_v48 = vmov 0  }
 0x228   :  { %v11127_v50 = vld [vmem:[#allocation8 + $0xcc0] ss:$48 sps:$4 sm:$0xff]   ;;  %v11130_v52 = vld [vmem:[#allocation8 + $0xc8] ss:$48 sps:$4 sm:$0xff]   ;;  %v11135_v53 = vld [vmem:[#allocation8 + $0xd24] ss:$48 sps:$4 sm:$0xff]  }
 0x229   :  { %5884 = vmatpush1.bf16.msra.mxu0 %v11054_v45  ;;  %v11124_v45 = vld [vmem:[#allocation8 + $0x68] ss:$48 sps:$4 sm:$0xff]   ;;  %v11138_v54 = vld [vmem:[#allocation8 + $0x12c] ss:$48 sps:$4 sm:$0xff]   ;;  %v11133_v55 = vld [vmem:[#allocation8 + $0xd20] ss:$48 sps:$4 sm:$0xff]  }
 0x22a   :  { %5925 = vmatpush1.bf16.msra.mxu1 %v11057_v46  ;;  %5885 = vmatprep.subr.bf16.mxu0 %v11062_v56  ;;  %v11132_v46 = vld [vmem:[#allocation8 + $0xcc] ss:$48 sps:$4 sm:$0xff]   ;;  %v11136_v56 = vld [vmem:[#allocation8 + $0x128] ss:$48 sps:$4 sm:$0xff]  }
 0x22b   :  { %5926 = vmatprep.subr.bf16.mxu1 %v11065_v57  ;;  %v11141_v57 = vld [vmem:[#allocation8 + $0xd84] ss:$48 sps:$4 sm:$0xff]  }
 0x22d   :  { %5886 = vmatpush1.bf16.msra.mxu0 %v11060_v58  ;;  %v11144_v58 = vld [vmem:[#allocation8 + $0x18c] ss:$48 sps:$4 sm:$0xff]  }
 0x22e   :  { %5927 = vmatpush1.bf16.msra.mxu1 %v11063_v59  ;;  %5887 = vmatprep.subr.bf16.mxu0 %v11068_v60  ;;  %v11139_v59 = vld [vmem:[#allocation8 + $0xd80] ss:$48 sps:$4 sm:$0xff]   ;;  %v11142_v60 = vld [vmem:[#allocation8 + $0x188] ss:$48 sps:$4 sm:$0xff]  }
 0x22f   :  { %5928 = vmatprep.subr.bf16.mxu1 %v11071_v61  ;;  %v11147_v61 = vld [vmem:[#allocation8 + $0xde4] ss:$48 sps:$4 sm:$0xff]  }
 0x231   :  { %5888 = vmatpush1.bf16.msra.mxu0 %v11066_v63  ;;  %v11150_v63 = vld [vmem:[#allocation8 + $0x1ec] ss:$48 sps:$4 sm:$0xff]  }
 0x232   :  { %5929 = vmatpush1.bf16.msra.mxu1 %v11069_v0  ;;  %5889 = vmatprep.subr.bf16.mxu0 %v11074_v1  ;;  %v11145_v0 = vld [vmem:[#allocation8 + $0xde0] ss:$48 sps:$4 sm:$0xff]   ;;  %v11148_v1 = vld [vmem:[#allocation8 + $0x1e8] ss:$48 sps:$4 sm:$0xff]  }
 0x233   :  { %5930 = vmatprep.subr.bf16.mxu1 %v11077_v2  ;;  %v11153_v2 = vld [vmem:[#allocation8 + $0xe44] ss:$48 sps:$4 sm:$0xff]  }
 0x235   :  { %5890 = vmatpush1.bf16.msra.mxu0 %v11072_v5  ;;  %v11156_v5 = vld [vmem:[#allocation8 + $0x24c] ss:$48 sps:$4 sm:$0xff]  }
 0x236   :  { %5931 = vmatpush1.bf16.msra.mxu1 %v11075_v6  ;;  %5891 = vmatprep.subr.bf16.mxu0 %v11080_v62 }
 0x237   :  { %5932 = vmatprep.subr.bf16.mxu1 %v11083_v3  ;;  %v11151_v3 = vld [vmem:[#allocation8 + $0xe40] ss:$48 sps:$4 sm:$0xff]  }
 0x239   :  { %5892 = vmatpush1.bf16.msra.mxu0 %v11078_v10  ;;  %v11154_v10 = vld [vmem:[#allocation8 + $0x248] ss:$48 sps:$4 sm:$0xff]  }
 0x23a   :  { %5933 = vmatpush1.bf16.msra.mxu1 %v11081_v11  ;;  %5893 = vmatprep.subr.bf16.mxu0 %v11086_v12 }
 0x23b   :  { %5934 = vmatprep.subr.bf16.mxu1 %v11089_v13 }
 0x23d   :  { %5894 = vmatpush1.bf16.msra.mxu0 %v11084_v14 }
 0x23e   :  { %5935 = vmatpush1.bf16.msra.mxu1 %v11087_v15  ;;  %5895 = vmatprep.subr.bf16.mxu0 %v11092_v18 }
 0x23f   :  { %5936 = vmatprep.subr.bf16.mxu1 %v11095_v19 }
 0x241   :  { %5896 = vmatpush1.bf16.msra.mxu0 %v11090_v23 }
 0x242   :  { %5937 = vmatpush1.bf16.msra.mxu1 %v11093_v24  ;;  %5897 = vmatprep.subr.bf16.mxu0 %v11098_v26  ;;  %v11159_v24 = vld [vmem:[#allocation8 + $0xea4] ss:$48 sps:$4 sm:$0xff]   ;;  %v11162_v26 = vld [vmem:[#allocation8 + $0x2ac] ss:$48 sps:$4 sm:$0xff]  }
 0x243   :  { %5938 = vmatprep.subr.bf16.mxu1 %v11101_v27  ;;  %v11157_v27 = vld [vmem:[#allocation8 + $0xea0] ss:$48 sps:$4 sm:$0xff]  }
 0x245   :  { %5898 = vmatpush1.bf16.msra.mxu0 %v11096_v28  ;;  %v11160_v28 = vld [vmem:[#allocation8 + $0x2a8] ss:$48 sps:$4 sm:$0xff]  }
 0x246   :  { %5939 = vmatpush1.bf16.msra.mxu1 %v11099_v29  ;;  %5899 = vmatprep.subr.bf16.mxu0 %v11104_v16  ;;  %v9275_v29 = vld.sshfl [vmem:[#allocation2 + $0x8] sm:$0x3 pattern:$0x76325410]  ;;  %v11165_v16 = vld [vmem:[#allocation8 + $0x30c] ss:$48 sps:$4 sm:$0xff]  }
 0x247   :  { %5940 = vmatprep.subr.bf16.mxu1 %v11107_v17  ;;  %v11168_v17 = vld [vmem:[#allocation8 + $0x60c] ss:$48 sps:$4 sm:$0xff]  }
 0x249   :  { %5900 = vmatpush1.bf16.msra.mxu0 %v11102_v30  ;;  %v11163_v30 = vld [vmem:[#allocation8 + $0x308] ss:$48 sps:$4 sm:$0xff]  }
 0x24a   :  { %5941 = vmatpush1.bf16.msra.mxu1 %v11105_v31  ;;  %5901 = vmatprep.subr.bf16.mxu0 %v11110_v32  ;;  %v11166_v31 = vld [vmem:[#allocation8 + $0x608] ss:$48 sps:$4 sm:$0xff]   ;;  %v12642_v32 = vpack.c.bf16 %v9275_v29, %v9275_v29 }
 0x24b   :  { %5942 = vmatprep.subr.bf16.mxu1 %v11113_v33  ;;  %v11171_v33 = vld [vmem:[#allocation8 + $0x36c] ss:$48 sps:$4 sm:$0xff]   ;;  %v11232_v29 = vld [vmem:[#allocation8 + $0xd28] ss:$48 sps:$4 sm:$0xff]  }
 0x24d   :  { %5902 = vmatpush1.bf16.msra.mxu0 %v11108_v34  ;;  %v11174_v34 = vld [vmem:[#allocation8 + $0x66c] ss:$48 sps:$4 sm:$0xff]  }
 0x24e   :  { %5943 = vmatpush1.bf16.msra.mxu1 %v11111_v35  ;;  %5953 = vmatprep.subr.bf16.mxu0 %v11117_v36  ;;  %v11169_v35 = vld [vmem:[#allocation8 + $0x368] ss:$48 sps:$4 sm:$0xff]  }
 0x24f   :  { %5994 = vmatprep.subr.bf16.mxu1 %v11120_v37  ;;  %v11172_v36 = vld [vmem:[#allocation8 + $0x668] ss:$48 sps:$4 sm:$0xff]   ;;  %v11177_v37 = vld [vmem:[#allocation8 + $0x3cc] ss:$48 sps:$4 sm:$0xff]  }
 0x250   :  { %5904 = vmatmul.mubr.bf16.vlgmr.msra.gmra.mrb[24].mxu0 %v12628_v38 }
 0x251   :  { %5945 = vmatmul.mubr.bf16.vlgmr.msra.gmra.mrb[24].mxu1 %v12632_v39  ;;  %5954 = vmatpush1.bf16.msra.mxu0 %v11115_v40  ;;  %v11180_v40 = vld [vmem:[#allocation8 + $0x6cc] ss:$48 sps:$4 sm:$0xff]  }
 0x252   :  { %5995 = vmatpush1.bf16.msra.mxu1 %v11118_v41  ;;  %5955 = vmatprep.subr.bf16.mxu0 %v11123_v42  ;;  %v11175_v41 = vld [vmem:[#allocation8 + $0x3c8] ss:$48 sps:$4 sm:$0xff]  }
 0x253   :  { %5996 = vmatprep.subr.bf16.mxu1 %v11126_v44  ;;  %5985 = vmatprep.mubr.bf16.mxu0 %v12393_v48  ;;  %v11178_v42 = vld [vmem:[#allocation8 + $0x6c8] ss:$48 sps:$4 sm:$0xff]   ;;  %v11183_v44 = vld [vmem:[#allocation8 + $0x42c] ss:$48 sps:$4 sm:$0xff]  }
 0x254   :  { %6026 = vmatprep.mubr.bf16.mxu1 %v12614_v20 }
 0x255   :  { %5956 = vmatpush1.bf16.msra.mxu0 %v11121_v8  ;;  %v11186_v8 = vld [vmem:[#allocation8 + $0x72c] ss:$48 sps:$4 sm:$0xff]  }
 0x256   :  { %5997 = vmatpush1.bf16.msra.mxu1 %v11124_v45  ;;  %5957 = vmatprep.subr.bf16.mxu0 %v11129_v9  ;;  %v11181_v45 = vld [vmem:[#allocation8 + $0x428] ss:$48 sps:$4 sm:$0xff]  }
 0x257   :  { %5998 = vmatprep.subr.bf16.mxu1 %v11132_v46  ;;  %v11184_v9 = vld [vmem:[#allocation8 + $0x728] ss:$48 sps:$4 sm:$0xff]   ;;  %v11189_v46 = vld [vmem:[#allocation8 + $0x48c] ss:$48 sps:$4 sm:$0xff]  }
 0x259   :  { %5958 = vmatpush1.bf16.msra.mxu0 %v11127_v50  ;;  %v11192_v50 = vld [vmem:[#allocation8 + $0x78c] ss:$48 sps:$4 sm:$0xff]  }
 0x25a   :  { %5999 = vmatpush1.bf16.msra.mxu1 %v11130_v52  ;;  %5959 = vmatprep.subr.bf16.mxu0 %v11135_v53  ;;  %v11187_v52 = vld [vmem:[#allocation8 + $0x488] ss:$48 sps:$4 sm:$0xff]  }
 0x25b   :  { %6000 = vmatprep.subr.bf16.mxu1 %v11138_v54  ;;  %v11190_v53 = vld [vmem:[#allocation8 + $0x788] ss:$48 sps:$4 sm:$0xff]   ;;  %v11195_v54 = vld [vmem:[#allocation8 + $0x4ec] ss:$48 sps:$4 sm:$0xff]  }
 0x25d   :  { %5960 = vmatpush1.bf16.msra.mxu0 %v11133_v55  ;;  %v11198_v55 = vld [vmem:[#allocation8 + $0x7ec] ss:$48 sps:$4 sm:$0xff]  }
 0x25e   :  { %6001 = vmatpush1.bf16.msra.mxu1 %v11136_v56  ;;  %5961 = vmatprep.subr.bf16.mxu0 %v11141_v57  ;;  %v11193_v56 = vld [vmem:[#allocation8 + $0x4e8] ss:$48 sps:$4 sm:$0xff]  }
 0x25f   :  { %6002 = vmatprep.subr.bf16.mxu1 %v11144_v58  ;;  %v11196_v57 = vld [vmem:[#allocation8 + $0x7e8] ss:$48 sps:$4 sm:$0xff]   ;;  %v11201_v58 = vld [vmem:[#allocation8 + $0x54c] ss:$48 sps:$4 sm:$0xff]  }
 0x261   :  { %5962 = vmatpush1.bf16.msra.mxu0 %v11139_v59  ;;  %v11204_v59 = vld [vmem:[#allocation8 + $0x84c] ss:$48 sps:$4 sm:$0xff]  }
 0x262   :  { %6003 = vmatpush1.bf16.msra.mxu1 %v11142_v60  ;;  %5963 = vmatprep.subr.bf16.mxu0 %v11147_v61  ;;  %v11199_v60 = vld [vmem:[#allocation8 + $0x548] ss:$48 sps:$4 sm:$0xff]  }
 0x263   :  { %6004 = vmatprep.subr.bf16.mxu1 %v11150_v63  ;;  %v3259_v6 = vpop.f32.mrb[12].mxu0  ;;  %v11202_v61 = vld [vmem:[#allocation8 + $0x848] ss:$48 sps:$4 sm:$0xff]   ;;  %v11207_v63 = vld [vmem:[#allocation8 + $0x5ac] ss:$48 sps:$4 sm:$0xff]  }
 0x264   :  { %v3300_v62 = vpop.f32.mrb[12].mxu1  ;;  %v3261_v12 = vpop.f32.mrb[13].mxu0 }
 0x265   :  { %v12638_v11 = vadd.f32 %v3300_v62, %v3259_v6  ;;  %v3302_v13 = vpop.f32.mrb[13].mxu1  ;;  %v3263_v15 = vpop.f32.mrb[14].mxu0  ;;  %5964 = vmatpush1.bf16.msra.mxu0 %v11145_v0  ;;  %v11210_v0 = vld [vmem:[#allocation8 + $0x8ac] ss:$48 sps:$4 sm:$0xff]   ;;  %v11211_v62 = vld [vmem:[#allocation8 + $0x908] ss:$48 sps:$4 sm:$0xff]  }
 0x266   :  { %v12640_v14 = vadd.f32 %v3302_v13, %v3261_v12  ;;  %v3304_v18 = vpop.f32.mrb[14].mxu1  ;;  %6005 = vmatpush1.bf16.msra.mxu1 %v11148_v1  ;;  %v3264_v19 = vpop.f32.mrb[15].mxu0  ;;  %5965 = vmatprep.subr.bf16.mxu0 %v11153_v2  ;;  %v11205_v1 = vld [vmem:[#allocation8 + $0x5a8] ss:$48 sps:$4 sm:$0xff]   ;;  %v11216_v6 = vld [vmem:[#allocation8 + $0xc0c] ss:$48 sps:$4 sm:$0xff]  }
 0x267   :  { %v3305_v23 = vpop.f32.mrb[15].mxu1  ;;  %6006 = vmatprep.subr.bf16.mxu1 %v11156_v5  ;;  %v11208_v2 = vld [vmem:[#allocation8 + $0x8a8] ss:$48 sps:$4 sm:$0xff]   ;;  %v11213_v5 = vld [vmem:[#allocation8 + $0x90c] ss:$48 sps:$4 sm:$0xff]  }
 0x268   :  { %v11222_v12 = vld [vmem:[#allocation8 + $0xc6c] ss:$48 sps:$4 sm:$0xff]   ;;  %v11217_v13 = vld [vmem:[#allocation8 + $0x968] ss:$48 sps:$4 sm:$0xff]  }
 0x269   :  { %5966 = vmatpush1.bf16.msra.mxu0 %v11151_v3  ;;  %v11214_v3 = vld [vmem:[#allocation8 + $0xc08] ss:$48 sps:$4 sm:$0xff]   ;;  %v11225_v18 = vld [vmem:[#allocation8 + $0x9cc] ss:$48 sps:$4 sm:$0xff]  }
 0x26a   :  { %6007 = vmatpush1.bf16.msra.mxu1 %v11154_v10  ;;  %5967 = vmatprep.subr.bf16.mxu0 %v11159_v24  ;;  %v11219_v10 = vld [vmem:[#allocation8 + $0x96c] ss:$48 sps:$4 sm:$0xff]   ;;  %v11220_v15 = vld [vmem:[#allocation8 + $0xc68] ss:$48 sps:$4 sm:$0xff]  }
 0x26b   :  { %6008 = vmatprep.subr.bf16.mxu1 %v11162_v26  ;;  %v11228_v19 = vld [vmem:[#allocation8 + $0xccc] ss:$48 sps:$4 sm:$0xff]   ;;  %v11223_v23 = vld [vmem:[#allocation8 + $0x9c8] ss:$48 sps:$4 sm:$0xff]  }
 0x26c   :  { %v11226_v24 = vld [vmem:[#allocation8 + $0xcc8] ss:$48 sps:$4 sm:$0xff]   ;;  %v11231_v26 = vld [vmem:[#allocation8 + $0xa2c] ss:$48 sps:$4 sm:$0xff]  }
 0x26d   :  { %5968 = vmatpush1.bf16.msra.mxu0 %v11157_v27  ;;  %v11234_v27 = vld [vmem:[#allocation8 + $0xd2c] ss:$48 sps:$4 sm:$0xff]  }
 0x26e   :  { %6009 = vmatpush1.bf16.msra.mxu1 %v11160_v28  ;;  %6035 = vmatprep.subr.bf16.mxu0 %v11168_v17  ;;  %v11229_v28 = vld [vmem:[#allocation8 + $0xa28] ss:$48 sps:$4 sm:$0xff]   ;;  %v11240_v17 = vld [vmem:[#allocation8 + $0xd8c] ss:$48 sps:$4 sm:$0xff]  }
 0x26f   :  { %6010 = vmatprep.subr.bf16.mxu1 %v11165_v16  ;;  %v11237_v16 = vld [vmem:[#allocation8 + $0xa8c] ss:$48 sps:$4 sm:$0xff]  }
 0x270   :  { %5986 = vmatmul.mubr.bf16.vlgmr.msra.gmra.mrb[28].mxu0 %v12642_v32 }
 0x271   :  { %6036 = vmatpush1.bf16.msra.mxu0 %v11166_v31  ;;  %6067 = vmatprep.mubr.bf16.mxu0 %v12616_v21  ;;  %v11238_v31 = vld [vmem:[#allocation8 + $0xd88] ss:$48 sps:$4 sm:$0xff]  }
 0x272   :  { %6011 = vmatpush1.bf16.msra.mxu1 %v11163_v30  ;;  %6037 = vmatprep.subr.bf16.mxu0 %v11174_v34  ;;  %v11235_v30 = vld [vmem:[#allocation8 + $0xa88] ss:$48 sps:$4 sm:$0xff]   ;;  %v11246_v34 = vld [vmem:[#allocation8 + $0xdec] ss:$48 sps:$4 sm:$0xff]  }
 0x273   :  { %6012 = vmatprep.subr.bf16.mxu1 %v11171_v33  ;;  %v11243_v33 = vld [vmem:[#allocation8 + $0xaec] ss:$48 sps:$4 sm:$0xff]  }
 0x275   :  { %6038 = vmatpush1.bf16.msra.mxu0 %v11172_v36  ;;  %v11244_v36 = vld [vmem:[#allocation8 + $0xde8] ss:$48 sps:$4 sm:$0xff]  }
 0x276   :  { %6013 = vmatpush1.bf16.msra.mxu1 %v11169_v35  ;;  %6039 = vmatprep.subr.bf16.mxu0 %v11180_v40  ;;  %v11241_v35 = vld [vmem:[#allocation8 + $0xae8] ss:$48 sps:$4 sm:$0xff]   ;;  %v11252_v40 = vld [vmem:[#allocation8 + $0xe4c] ss:$48 sps:$4 sm:$0xff]  }
 0x277   :  { %6014 = vmatprep.subr.bf16.mxu1 %v11177_v37  ;;  %v11249_v37 = vld [vmem:[#allocation8 + $0xb4c] ss:$48 sps:$4 sm:$0xff]  }
 0x279   :  { %6040 = vmatpush1.bf16.msra.mxu0 %v11178_v42 }
 0x27a   :  { %6015 = vmatpush1.bf16.msra.mxu1 %v11175_v41  ;;  %6041 = vmatprep.subr.bf16.mxu0 %v11186_v8  ;;  %v11250_v8 = vld [vmem:[#allocation8 + $0xe48] ss:$48 sps:$4 sm:$0xff]  }
 0x27b   :  { %6016 = vmatprep.subr.bf16.mxu1 %v11183_v44  ;;  %v11247_v44 = vld [vmem:[#allocation8 + $0xb48] ss:$48 sps:$4 sm:$0xff]  }
 0x27d   :  { %6042 = vmatpush1.bf16.msra.mxu0 %v11184_v9 }
 0x27e   :  { %6017 = vmatpush1.bf16.msra.mxu1 %v11181_v45  ;;  %6043 = vmatprep.subr.bf16.mxu0 %v11192_v50 }
 0x27f   :  { %6018 = vmatprep.subr.bf16.mxu1 %v11189_v46 }
 0x281   :  { %6044 = vmatpush1.bf16.msra.mxu0 %v11190_v53 }
 0x282   :  { %6019 = vmatpush1.bf16.msra.mxu1 %v11187_v52  ;;  %6045 = vmatprep.subr.bf16.mxu0 %v11198_v55 }
 0x283   :  { %6020 = vmatprep.subr.bf16.mxu1 %v11195_v54 }
 0x285   :  { %6046 = vmatpush1.bf16.msra.mxu0 %v11196_v57  ;;  %v11258_v57 = vld [vmem:[#allocation8 + $0xeac] ss:$48 sps:$4 sm:$0xff]  }
 0x286   :  { %6021 = vmatpush1.bf16.msra.mxu1 %v11193_v56  ;;  %6047 = vmatprep.subr.bf16.mxu0 %v11204_v59  ;;  %v11255_v56 = vld [vmem:[#allocation8 + $0xbac] ss:$48 sps:$4 sm:$0xff]   ;;  %v11256_v59 = vld [vmem:[#allocation8 + $0xea8] ss:$48 sps:$4 sm:$0xff]  }
 0x287   :  { %6022 = vmatprep.subr.bf16.mxu1 %v11201_v58  ;;  %v11253_v58 = vld [vmem:[#allocation8 + $0xba8] ss:$48 sps:$4 sm:$0xff]  }
 0x289   :  { %6048 = vmatpush1.bf16.msra.mxu0 %v11202_v61  ;;  %v11264_v61 = vld [vmem:[#allocation8 + $0x614] ss:$48 sps:$4 sm:$0xff]  }
 0x28a   :  { %6023 = vmatpush1.bf16.msra.mxu1 %v11199_v60  ;;  %6049 = vmatprep.subr.bf16.mxu0 %v11210_v0  ;;  %v11261_v60 = vld [vmem:[#allocation8 + $0x14] ss:$48 sps:$4 sm:$0xff]   ;;  %v11262_v0 = vld [vmem:[#allocation8 + $0x610] ss:$48 sps:$4 sm:$0xff]  }
 0x28b   :  { %6024 = vmatprep.subr.bf16.mxu1 %v11207_v63  ;;  %v11259_v63 = vld [vmem:[#allocation8 + $0x10] ss:$48 sps:$4 sm:$0xff]  }
 0x28d   :  { %6050 = vmatpush1.bf16.msra.mxu0 %v11208_v2  ;;  %v11270_v2 = vld [vmem:[#allocation8 + $0x674] ss:$48 sps:$4 sm:$0xff]  }
 0x28e   :  { %6025 = vmatpush1.bf16.msra.mxu1 %v11205_v1  ;;  %6051 = vmatprep.subr.bf16.mxu0 %v11213_v5  ;;  %v11267_v1 = vld [vmem:[#allocation8 + $0x74] ss:$48 sps:$4 sm:$0xff]   ;;  %v11265_v5 = vld [vmem:[#allocation8 + $0x70] ss:$48 sps:$4 sm:$0xff]  }
 0x28f   :  { %6076 = vmatprep.subr.bf16.mxu1 %v11216_v6  ;;  %v11268_v6 = vld [vmem:[#allocation8 + $0x670] ss:$48 sps:$4 sm:$0xff]  }
 0x291   :  { %6027 = vmatmul.mubr.bf16.vlgmr.msra.gmra.mrb[28].mxu1 %v12628_v38  ;;  %6052 = vmatpush1.bf16.msra.mxu0 %v11211_v62  ;;  %v11273_v62 = vld [vmem:[#allocation8 + $0xd4] ss:$48 sps:$4 sm:$0xff]  }
 0x292   :  { %6077 = vmatpush1.bf16.msra.mxu1 %v11214_v3  ;;  %6053 = vmatprep.subr.bf16.mxu0 %v11219_v10  ;;  %v11276_v3 = vld [vmem:[#allocation8 + $0x6d4] ss:$48 sps:$4 sm:$0xff]   ;;  %v11271_v10 = vld [vmem:[#allocation8 + $0xd0] ss:$48 sps:$4 sm:$0xff]  }
 0x293   :  { %6078 = vmatprep.subr.bf16.mxu1 %v11222_v12  ;;  %6108 = vmatprep.mubr.bf16.mxu1 %v12393_v48  ;;  %v11274_v12 = vld [vmem:[#allocation8 + $0x6d0] ss:$48 sps:$4 sm:$0xff]  }
 0x295   :  { %6054 = vmatpush1.bf16.msra.mxu0 %v11217_v13  ;;  %v11279_v13 = vld [vmem:[#allocation8 + $0x134] ss:$48 sps:$4 sm:$0xff]  }
 0x296   :  { %6079 = vmatpush1.bf16.msra.mxu1 %v11220_v15  ;;  %6055 = vmatprep.subr.bf16.mxu0 %v11225_v18  ;;  %v11282_v15 = vld [vmem:[#allocation8 + $0x734] ss:$48 sps:$4 sm:$0xff]   ;;  %v11277_v18 = vld [vmem:[#allocation8 + $0x130] ss:$48 sps:$4 sm:$0xff]  }
 0x297   :  { %6080 = vmatprep.subr.bf16.mxu1 %v11228_v19  ;;  %v11280_v19 = vld [vmem:[#allocation8 + $0x730] ss:$48 sps:$4 sm:$0xff]  }
 0x299   :  { %6056 = vmatpush1.bf16.msra.mxu0 %v11223_v23  ;;  %v11285_v23 = vld [vmem:[#allocation8 + $0x194] ss:$48 sps:$4 sm:$0xff]  }
 0x29a   :  { %6081 = vmatpush1.bf16.msra.mxu1 %v11226_v24  ;;  %6057 = vmatprep.subr.bf16.mxu0 %v11231_v26  ;;  %v11288_v24 = vld [vmem:[#allocation8 + $0x794] ss:$48 sps:$4 sm:$0xff]   ;;  %v11283_v26 = vld [vmem:[#allocation8 + $0x190] ss:$48 sps:$4 sm:$0xff]  }
 0x29b   :  { %6082 = vmatprep.subr.bf16.mxu1 %v11234_v27  ;;  %v11286_v27 = vld [vmem:[#allocation8 + $0x790] ss:$48 sps:$4 sm:$0xff]  }
 0x29d   :  { %6058 = vmatpush1.bf16.msra.mxu0 %v11229_v28  ;;  %v11291_v28 = vld [vmem:[#allocation8 + $0x1f4] ss:$48 sps:$4 sm:$0xff]  }
 0x29e   :  { %6083 = vmatpush1.bf16.msra.mxu1 %v11232_v29  ;;  %6059 = vmatprep.subr.bf16.mxu0 %v11237_v16  ;;  %v11294_v29 = vld [vmem:[#allocation8 + $0x7f4] ss:$48 sps:$4 sm:$0xff]   ;;  %v11289_v16 = vld [vmem:[#allocation8 + $0x1f0] ss:$48 sps:$4 sm:$0xff]  }
 0x29f   :  { %6084 = vmatprep.subr.bf16.mxu1 %v11240_v17  ;;  %v11292_v17 = vld [vmem:[#allocation8 + $0x7f0] ss:$48 sps:$4 sm:$0xff]  }
 0x2a1   :  { %6060 = vmatpush1.bf16.msra.mxu0 %v11235_v30  ;;  %v11297_v30 = vld [vmem:[#allocation8 + $0x254] ss:$48 sps:$4 sm:$0xff]  }
 0x2a2   :  { %6085 = vmatpush1.bf16.msra.mxu1 %v11238_v31  ;;  %6061 = vmatprep.subr.bf16.mxu0 %v11243_v33  ;;  %v11300_v31 = vld [vmem:[#allocation8 + $0x854] ss:$48 sps:$4 sm:$0xff]   ;;  %v11295_v33 = vld [vmem:[#allocation8 + $0x250] ss:$48 sps:$4 sm:$0xff]  }
 0x2a3   :  { %6086 = vmatprep.subr.bf16.mxu1 %v11246_v34  ;;  %v3341_v41 = vpop.f32.mrb[16].mxu0  ;;  %v11298_v34 = vld [vmem:[#allocation8 + $0x850] ss:$48 sps:$4 sm:$0xff]  }
 0x2a4   :  { %v3382_v42 = vpop.f32.mrb[16].mxu1  ;;  %v3343_v9 = vpop.f32.mrb[17].mxu0 }
 0x2a5   :  { %v12648_v45 = vadd.f32 %v3382_v42, %v3341_v41  ;;  %v3384_v46 = vpop.f32.mrb[17].mxu1  ;;  %v3345_v52 = vpop.f32.mrb[18].mxu0  ;;  %6062 = vmatpush1.bf16.msra.mxu0 %v11241_v35  ;;  %v11303_v35 = vld [vmem:[#allocation8 + $0x2b4] ss:$48 sps:$4 sm:$0xff]  }
 0x2a6   :  { %v12650_v50 = vadd.f32 %v3384_v46, %v3343_v9  ;;  %v3386_v53 = vpop.f32.mrb[18].mxu1  ;;  %6087 = vmatpush1.bf16.msra.mxu1 %v11244_v36  ;;  %v3346_v54 = vpop.f32.mrb[19].mxu0  ;;  %6063 = vmatprep.subr.bf16.mxu0 %v11249_v37  ;;  %v11306_v36 = vld [vmem:[#allocation8 + $0x8b4] ss:$48 sps:$4 sm:$0xff]   ;;  %v11301_v37 = vld [vmem:[#allocation8 + $0x2b0] ss:$48 sps:$4 sm:$0xff]  }
 0x2a7   :  { %v3387_v55 = vpop.f32.mrb[19].mxu1  ;;  %6088 = vmatprep.subr.bf16.mxu1 %v11252_v40  ;;  %v11304_v40 = vld [vmem:[#allocation8 + $0x8b0] ss:$48 sps:$4 sm:$0xff]   ;;  %v11309_v41 = vld [vmem:[#allocation8 + $0x314] ss:$48 sps:$4 sm:$0xff]  }
 0x2a8   :  { %v11312_v42 = vld [vmem:[#allocation8 + $0x914] ss:$48 sps:$4 sm:$0xff]   ;;  %v11313_v52 = vld [vmem:[#allocation8 + $0x370] ss:$48 sps:$4 sm:$0xff]  }
 0x2a9   :  { %6064 = vmatpush1.bf16.msra.mxu0 %v11247_v44  ;;  %v11307_v44 = vld [vmem:[#allocation8 + $0x310] ss:$48 sps:$4 sm:$0xff]   ;;  %v11315_v9 = vld [vmem:[#allocation8 + $0x374] ss:$48 sps:$4 sm:$0xff]  }
 0x2aa   :  { %6089 = vmatpush1.bf16.msra.mxu1 %v11250_v8  ;;  %6065 = vmatprep.subr.bf16.mxu0 %v11255_v56  ;;  %v11310_v8 = vld [vmem:[#allocation8 + $0x910] ss:$48 sps:$4 sm:$0xff]   ;;  %v11318_v46 = vld [vmem:[#allocation8 + $0x974] ss:$48 sps:$4 sm:$0xff]  }
 0x2ab   :  { %6090 = vmatprep.subr.bf16.mxu1 %v11258_v57  ;;  %v11316_v53 = vld [vmem:[#allocation8 + $0x970] ss:$48 sps:$4 sm:$0xff]   ;;  %v11321_v54 = vld [vmem:[#allocation8 + $0x3d4] ss:$48 sps:$4 sm:$0xff]  }
 0x2ac   :  { %v11324_v55 = vld [vmem:[#allocation8 + $0x9d4] ss:$48 sps:$4 sm:$0xff]   ;;  %v11319_v56 = vld [vmem:[#allocation8 + $0x3d0] ss:$48 sps:$4 sm:$0xff]  }
 0x2ad   :  { %6066 = vmatpush1.bf16.msra.mxu0 %v11253_v58  ;;  %v11322_v57 = vld [vmem:[#allocation8 + $0x9d0] ss:$48 sps:$4 sm:$0xff]   ;;  %v11327_v58 = vld [vmem:[#allocation8 + $0x434] ss:$48 sps:$4 sm:$0xff]  }
 0x2ae   :  { %6091 = vmatpush1.bf16.msra.mxu1 %v11256_v59  ;;  %6117 = vmatprep.subr.bf16.mxu0 %v11261_v60  ;;  %v11330_v59 = vld [vmem:[#allocation8 + $0xa34] ss:$48 sps:$4 sm:$0xff]   ;;  %v11325_v60 = vld [vmem:[#allocation8 + $0x430] ss:$48 sps:$4 sm:$0xff]  }
 0x2af   :  { %6158 = vmatprep.subr.bf16.mxu1 %v11264_v61  ;;  %v11328_v61 = vld [vmem:[#allocation8 + $0xa30] ss:$48 sps:$4 sm:$0xff]  }
 0x2b0   :  { %6068 = vmatmul.mubr.bf16.vlgmr.msra.gmra.mrb[32].mxu0 %v12632_v39 }
 0x2b1   :  { %6109 = vmatmul.mubr.bf16.vlgmr.msra.gmra.mrb[32].mxu1 %v12642_v32  ;;  %6118 = vmatpush1.bf16.msra.mxu0 %v11259_v63  ;;  %v11333_v63 = vld [vmem:[#allocation8 + $0x494] ss:$48 sps:$4 sm:$0xff]  }
 0x2b2   :  { %6159 = vmatpush1.bf16.msra.mxu1 %v11262_v0  ;;  %6119 = vmatprep.subr.bf16.mxu0 %v11267_v1  ;;  %v11336_v0 = vld [vmem:[#allocation8 + $0xa94] ss:$48 sps:$4 sm:$0xff]   ;;  %v11331_v1 = vld [vmem:[#allocation8 + $0x490] ss:$48 sps:$4 sm:$0xff]  }
 0x2b3   :  { %6160 = vmatprep.subr.bf16.mxu1 %v11270_v2  ;;  %6149 = vmatprep.mubr.bf16.mxu0 %v12614_v20  ;;  %v11334_v2 = vld [vmem:[#allocation8 + $0xa90] ss:$48 sps:$4 sm:$0xff]  }
 0x2b4   :  { %6190 = vmatprep.mubr.bf16.mxu1 %v12616_v21 }
 0x2b5   :  { %6120 = vmatpush1.bf16.msra.mxu0 %v11265_v5  ;;  %v11339_v5 = vld [vmem:[#allocation8 + $0x4f4] ss:$48 sps:$4 sm:$0xff]  }
 0x2b6   :  { %6161 = vmatpush1.bf16.msra.mxu1 %v11268_v6  ;;  %6121 = vmatprep.subr.bf16.mxu0 %v11273_v62  ;;  %v11342_v6 = vld [vmem:[#allocation8 + $0xaf4] ss:$48 sps:$4 sm:$0xff]   ;;  %v11337_v62 = vld [vmem:[#allocation8 + $0x4f0] ss:$48 sps:$4 sm:$0xff]  }
 0x2b7   :  { %6162 = vmatprep.subr.bf16.mxu1 %v11276_v3  ;;  %v11340_v3 = vld [vmem:[#allocation8 + $0xaf0] ss:$48 sps:$4 sm:$0xff]  }
 0x2b9   :  { %6122 = vmatpush1.bf16.msra.mxu0 %v11271_v10  ;;  %v11345_v10 = vld [vmem:[#allocation8 + $0x554] ss:$48 sps:$4 sm:$0xff]  }
 0x2ba   :  { %6163 = vmatpush1.bf16.msra.mxu1 %v11274_v12  ;;  %6123 = vmatprep.subr.bf16.mxu0 %v11279_v13  ;;  %v11348_v12 = vld [vmem:[#allocation8 + $0xb54] ss:$48 sps:$4 sm:$0xff]  }
 0x2bb   :  { %6164 = vmatprep.subr.bf16.mxu1 %v11282_v15 }
 0x2bd   :  { %6124 = vmatpush1.bf16.msra.mxu0 %v11277_v18  ;;  %v11343_v18 = vld [vmem:[#allocation8 + $0x550] ss:$48 sps:$4 sm:$0xff]  }
 0x2be   :  { %6165 = vmatpush1.bf16.msra.mxu1 %v11280_v19  ;;  %6125 = vmatprep.subr.bf16.mxu0 %v11285_v23  ;;  %v11346_v19 = vld [vmem:[#allocation8 + $0xb50] ss:$48 sps:$4 sm:$0xff]  }
 0x2bf   :  { %6166 = vmatprep.subr.bf16.mxu1 %v11288_v24 }
 0x2c1   :  { %6126 = vmatpush1.bf16.msra.mxu0 %v11283_v26 }
 0x2c2   :  { %6167 = vmatpush1.bf16.msra.mxu1 %v11286_v27  ;;  %6127 = vmatprep.subr.bf16.mxu0 %v11291_v28 }
 0x2c3   :  { %6168 = vmatprep.subr.bf16.mxu1 %v11294_v29 }
 0x2c5   :  { %6128 = vmatpush1.bf16.msra.mxu0 %v11289_v16 }
 0x2c6   :  { %6169 = vmatpush1.bf16.msra.mxu1 %v11292_v17  ;;  %6129 = vmatprep.subr.bf16.mxu0 %v11297_v30  ;;  %v11351_v30 = vld [vmem:[#allocation8 + $0x5b4] ss:$48 sps:$4 sm:$0xff]  }
 0x2c7   :  { %6170 = vmatprep.subr.bf16.mxu1 %v11300_v31  ;;  %v11354_v31 = vld [vmem:[#allocation8 + $0xbb4] ss:$48 sps:$4 sm:$0xff]  }
 0x2c9   :  { %6130 = vmatpush1.bf16.msra.mxu0 %v11295_v33  ;;  %v11349_v33 = vld [vmem:[#allocation8 + $0x5b0] ss:$48 sps:$4 sm:$0xff]  }
 0x2ca   :  { %6171 = vmatpush1.bf16.msra.mxu1 %v11298_v34  ;;  %6131 = vmatprep.subr.bf16.mxu0 %v11303_v35  ;;  %v11352_v34 = vld [vmem:[#allocation8 + $0xbb0] ss:$48 sps:$4 sm:$0xff]   ;;  %v11357_v35 = vld [vmem:[#allocation8 + $0xc14] ss:$48 sps:$4 sm:$0xff]  }
 0x2cb   :  { %6172 = vmatprep.subr.bf16.mxu1 %v11306_v36  ;;  %v11360_v36 = vld [vmem:[#allocation8 + $0x1c] ss:$48 sps:$4 sm:$0xff]  }
 0x2cd   :  { %6132 = vmatpush1.bf16.msra.mxu0 %v11301_v37  ;;  %v11355_v37 = vld [vmem:[#allocation8 + $0xc10] ss:$48 sps:$4 sm:$0xff]  }
 0x2ce   :  { %6173 = vmatpush1.bf16.msra.mxu1 %v11304_v40  ;;  %6133 = vmatprep.subr.bf16.mxu0 %v11309_v41  ;;  %v11358_v40 = vld [vmem:[#allocation8 + $0x18] ss:$48 sps:$4 sm:$0xff]   ;;  %v11363_v41 = vld [vmem:[#allocation8 + $0xc74] ss:$48 sps:$4 sm:$0xff]  }
 0x2cf   :  { %6174 = vmatprep.subr.bf16.mxu1 %v11312_v42  ;;  %v11366_v42 = vld [vmem:[#allocation8 + $0x7c] ss:$48 sps:$4 sm:$0xff]  }
 0x2d1   :  { %6134 = vmatpush1.bf16.msra.mxu0 %v11307_v44  ;;  %v11361_v44 = vld [vmem:[#allocation8 + $0xc70] ss:$48 sps:$4 sm:$0xff]  }
 0x2d2   :  { %6175 = vmatpush1.bf16.msra.mxu1 %v11310_v8  ;;  %6135 = vmatprep.subr.bf16.mxu0 %v11315_v9  ;;  %v11364_v8 = vld [vmem:[#allocation8 + $0x78] ss:$48 sps:$4 sm:$0xff]   ;;  %v11369_v9 = vld [vmem:[#allocation8 + $0xcd4] ss:$48 sps:$4 sm:$0xff]  }
 0x2d3   :  { %6176 = vmatprep.subr.bf16.mxu1 %v11318_v46  ;;  %v11372_v46 = vld [vmem:[#allocation8 + $0xdc] ss:$48 sps:$4 sm:$0xff]  }
 0x2d5   :  { %6136 = vmatpush1.bf16.msra.mxu0 %v11313_v52  ;;  %v11367_v52 = vld [vmem:[#allocation8 + $0xcd0] ss:$48 sps:$4 sm:$0xff]  }
 0x2d6   :  { %6177 = vmatpush1.bf16.msra.mxu1 %v11316_v53  ;;  %6137 = vmatprep.subr.bf16.mxu0 %v11321_v54  ;;  %v11370_v53 = vld [vmem:[#allocation8 + $0xd8] ss:$48 sps:$4 sm:$0xff]   ;;  %v11375_v54 = vld [vmem:[#allocation8 + $0xd34] ss:$48 sps:$4 sm:$0xff]  }
 0x2d7   :  { %6178 = vmatprep.subr.bf16.mxu1 %v11324_v55  ;;  %v11378_v55 = vld [vmem:[#allocation8 + $0x13c] ss:$48 sps:$4 sm:$0xff]  }
 0x2d9   :  { %6138 = vmatpush1.bf16.msra.mxu0 %v11319_v56  ;;  %v11373_v56 = vld [vmem:[#allocation8 + $0xd30] ss:$48 sps:$4 sm:$0xff]  }
 0x2da   :  { %6179 = vmatpush1.bf16.msra.mxu1 %v11322_v57  ;;  %6139 = vmatprep.subr.bf16.mxu0 %v11327_v58  ;;  %v11376_v57 = vld [vmem:[#allocation8 + $0x138] ss:$48 sps:$4 sm:$0xff]   ;;  %v11381_v58 = vld [vmem:[#allocation8 + $0xd94] ss:$48 sps:$4 sm:$0xff]  }
 0x2db   :  { %6180 = vmatprep.subr.bf16.mxu1 %v11330_v59  ;;  %v11384_v59 = vld [vmem:[#allocation8 + $0x19c] ss:$48 sps:$4 sm:$0xff]  }
 0x2dd   :  { %6140 = vmatpush1.bf16.msra.mxu0 %v11325_v60  ;;  %v11379_v60 = vld [vmem:[#allocation8 + $0xd90] ss:$48 sps:$4 sm:$0xff]  }
 0x2de   :  { %6181 = vmatpush1.bf16.msra.mxu1 %v11328_v61  ;;  %6141 = vmatprep.subr.bf16.mxu0 %v11333_v63  ;;  %v11382_v61 = vld [vmem:[#allocation8 + $0x198] ss:$48 sps:$4 sm:$0xff]   ;;  %v11387_v63 = vld [vmem:[#allocation8 + $0xdf4] ss:$48 sps:$4 sm:$0xff]  }
 0x2df   :  { %6182 = vmatprep.subr.bf16.mxu1 %v11336_v0  ;;  %v11390_v0 = vld [vmem:[#allocation8 + $0x1fc] ss:$48 sps:$4 sm:$0xff]  }
 0x2e1   :  { %6142 = vmatpush1.bf16.msra.mxu0 %v11331_v1  ;;  %v11385_v1 = vld [vmem:[#allocation8 + $0xdf0] ss:$48 sps:$4 sm:$0xff]  }
 0x2e2   :  { %6183 = vmatpush1.bf16.msra.mxu1 %v11334_v2  ;;  %6143 = vmatprep.subr.bf16.mxu0 %v11339_v5  ;;  %v11388_v2 = vld [vmem:[#allocation8 + $0x1f8] ss:$48 sps:$4 sm:$0xff]   ;;  %v11393_v5 = vld [vmem:[#allocation8 + $0xe54] ss:$48 sps:$4 sm:$0xff]  }
 0x2e3   :  { %6184 = vmatprep.subr.bf16.mxu1 %v11342_v6  ;;  %v3423_v13 = vpop.f32.mrb[20].mxu0  ;;  %v11396_v6 = vld [vmem:[#allocation8 + $0x25c] ss:$48 sps:$4 sm:$0xff]  }
 0x2e4   :  { %v3464_v15 = vpop.f32.mrb[20].mxu1  ;;  %v3425_v24 = vpop.f32.mrb[21].mxu0 }
 0x2e5   :  { %v12656_v23 = vadd.f32 %v3464_v15, %v3423_v13  ;;  %v3466_v26 = vpop.f32.mrb[21].mxu1  ;;  %v3427_v28 = vpop.f32.mrb[22].mxu0  ;;  %6144 = vmatpush1.bf16.msra.mxu0 %v11337_v62  ;;  %v11391_v62 = vld [vmem:[#allocation8 + $0xe50] ss:$48 sps:$4 sm:$0xff]   ;;  %v11400_v15 = vld [vmem:[#allocation8 + $0x2b8] ss:$48 sps:$4 sm:$0xff]  }
 0x2e6   :  { %v12658_v27 = vadd.f32 %v3466_v26, %v3425_v24  ;;  %v3468_v29 = vpop.f32.mrb[22].mxu1  ;;  %6185 = vmatpush1.bf16.msra.mxu1 %v11340_v3  ;;  %v3428_v16 = vpop.f32.mrb[23].mxu0  ;;  %6145 = vmatprep.subr.bf16.mxu0 %v11345_v10  ;;  %v11394_v3 = vld [vmem:[#allocation8 + $0x258] ss:$48 sps:$4 sm:$0xff]   ;;  %v11399_v10 = vld [vmem:[#allocation8 + $0xeb4] ss:$48 sps:$4 sm:$0xff]  }
 0x2e7   :  { %v3469_v17 = vpop.f32.mrb[23].mxu1  ;;  %6186 = vmatprep.subr.bf16.mxu1 %v11348_v12  ;;  %v11402_v12 = vld [vmem:[#allocation8 + $0x2bc] ss:$48 sps:$4 sm:$0xff]   ;;  %v11397_v13 = vld [vmem:[#allocation8 + $0xeb0] ss:$48 sps:$4 sm:$0xff]  }
 0x2e8   :  { %v11403_v24 = vld [vmem:[#allocation8 + $0x318] ss:$48 sps:$4 sm:$0xff]   ;;  %v11411_v28 = vld [vmem:[#allocation8 + $0x37c] ss:$48 sps:$4 sm:$0xff]  }
 0x2e9   :  { %6146 = vmatpush1.bf16.msra.mxu0 %v11343_v18  ;;  %v11405_v18 = vld [vmem:[#allocation8 + $0x31c] ss:$48 sps:$4 sm:$0xff]   ;;  %v11406_v26 = vld [vmem:[#allocation8 + $0x618] ss:$48 sps:$4 sm:$0xff]  }
 0x2ea   :  { %6187 = vmatpush1.bf16.msra.mxu1 %v11346_v19  ;;  %6147 = vmatprep.subr.bf16.mxu0 %v11351_v30  ;;  %v11408_v19 = vld [vmem:[#allocation8 + $0x61c] ss:$48 sps:$4 sm:$0xff]   ;;  %v11409_v16 = vld [vmem:[#allocation8 + $0x378] ss:$48 sps:$4 sm:$0xff]  }
 0x2eb   :  { %6188 = vmatprep.subr.bf16.mxu1 %v11354_v31  ;;  %v11414_v29 = vld [vmem:[#allocation8 + $0x67c] ss:$48 sps:$4 sm:$0xff]   ;;  %v11412_v17 = vld [vmem:[#allocation8 + $0x678] ss:$48 sps:$4 sm:$0xff]  }
 0x2ec   :  { %v11417_v30 = vld [vmem:[#allocation8 + $0x3dc] ss:$48 sps:$4 sm:$0xff]  }
 0x2ed   :  { %6148 = vmatpush1.bf16.msra.mxu0 %v11349_v33  ;;  %v11420_v31 = vld [vmem:[#allocation8 + $0x6dc] ss:$48 sps:$4 sm:$0xff]   ;;  %v11415_v33 = vld [vmem:[#allocation8 + $0x3d8] ss:$48 sps:$4 sm:$0xff]  }
 0x2ee   :  { %6189 = vmatpush1.bf16.msra.mxu1 %v11352_v34  ;;  %6199 = vmatprep.subr.bf16.mxu0 %v11357_v35  ;;  %v11418_v34 = vld [vmem:[#allocation8 + $0x6d8] ss:$48 sps:$4 sm:$0xff]   ;;  %v11423_v35 = vld [vmem:[#allocation8 + $0x43c] ss:$48 sps:$4 sm:$0xff]  }
 0x2ef   :  { %6240 = vmatprep.subr.bf16.mxu1 %v11360_v36  ;;  %v11426_v36 = vld [vmem:[#allocation8 + $0x73c] ss:$48 sps:$4 sm:$0xff]  }
 0x2f0   :  { %6150 = vmatmul.mubr.bf16.vlgmr.msra.gmra.mrb[36].mxu0 %v12628_v38 }
 0x2f1   :  { %6191 = vmatmul.mubr.bf16.vlgmr.msra.gmra.mrb[36].mxu1 %v12632_v39  ;;  %6200 = vmatpush1.bf16.msra.mxu0 %v11355_v37  ;;  %v11421_v37 = vld [vmem:[#allocation8 + $0x438] ss:$48 sps:$4 sm:$0xff]  }
 0x2f2   :  { %6241 = vmatpush1.bf16.msra.mxu1 %v11358_v40  ;;  %6201 = vmatprep.subr.bf16.mxu0 %v11363_v41  ;;  %v11424_v40 = vld [vmem:[#allocation8 + $0x738] ss:$48 sps:$4 sm:$0xff]   ;;  %v11429_v41 = vld [vmem:[#allocation8 + $0x49c] ss:$48 sps:$4 sm:$0xff]  }
 0x2f3   :  { %6242 = vmatprep.subr.bf16.mxu1 %v11366_v42  ;;  %6231 = vmatprep.mubr.bf16.mxu0 %v12393_v48  ;;  %v11432_v42 = vld [vmem:[#allocation8 + $0x79c] ss:$48 sps:$4 sm:$0xff]  }
 0x2f4   :  { %6272 = vmatprep.mubr.bf16.mxu1 %v12614_v20 }
 0x2f5   :  { %6202 = vmatpush1.bf16.msra.mxu0 %v11361_v44  ;;  %v11427_v44 = vld [vmem:[#allocation8 + $0x498] ss:$48 sps:$4 sm:$0xff]  }
 0x2f6   :  { %6243 = vmatpush1.bf16.msra.mxu1 %v11364_v8  ;;  %6203 = vmatprep.subr.bf16.mxu0 %v11369_v9  ;;  %v11430_v8 = vld [vmem:[#allocation8 + $0x798] ss:$48 sps:$4 sm:$0xff]   ;;  %v11435_v9 = vld [vmem:[#allocation8 + $0x4fc] ss:$48 sps:$4 sm:$0xff]  }
 0x2f7   :  { %6244 = vmatprep.subr.bf16.mxu1 %v11372_v46  ;;  %v11438_v46 = vld [vmem:[#allocation8 + $0x7fc] ss:$48 sps:$4 sm:$0xff]  }
 0x2f9   :  { %6204 = vmatpush1.bf16.msra.mxu0 %v11367_v52  ;;  %v11433_v52 = vld [vmem:[#allocation8 + $0x4f8] ss:$48 sps:$4 sm:$0xff]  }
 0x2fa   :  { %6245 = vmatpush1.bf16.msra.mxu1 %v11370_v53  ;;  %6205 = vmatprep.subr.bf16.mxu0 %v11375_v54  ;;  %v11436_v53 = vld [vmem:[#allocation8 + $0x7f8] ss:$48 sps:$4 sm:$0xff]   ;;  %v11441_v54 = vld [vmem:[#allocation8 + $0x55c] ss:$48 sps:$4 sm:$0xff]  }
 0x2fb   :  { %6246 = vmatprep.subr.bf16.mxu1 %v11378_v55  ;;  %v11444_v55 = vld [vmem:[#allocation8 + $0x85c] ss:$48 sps:$4 sm:$0xff]  }
 0x2fd   :  { %6206 = vmatpush1.bf16.msra.mxu0 %v11373_v56 }
 0x2fe   :  { %6247 = vmatpush1.bf16.msra.mxu1 %v11376_v57  ;;  %6207 = vmatprep.subr.bf16.mxu0 %v11381_v58 }
 0x2ff   :  { %6248 = vmatprep.subr.bf16.mxu1 %v11384_v59 }
 0x301   :  { %6208 = vmatpush1.bf16.msra.mxu0 %v11379_v60 }
 0x302   :  { %6249 = vmatpush1.bf16.msra.mxu1 %v11382_v61  ;;  %6209 = vmatprep.subr.bf16.mxu0 %v11387_v63 }
 0x303   :  { %6250 = vmatprep.subr.bf16.mxu1 %v11390_v0 }
 0x305   :  { %6210 = vmatpush1.bf16.msra.mxu0 %v11385_v1  ;;  %v11439_v1 = vld [vmem:[#allocation8 + $0x558] ss:$48 sps:$4 sm:$0xff]  }
 0x306   :  { %6251 = vmatpush1.bf16.msra.mxu1 %v11388_v2  ;;  %6211 = vmatprep.subr.bf16.mxu0 %v11393_v5  ;;  %v11442_v2 = vld [vmem:[#allocation8 + $0x858] ss:$48 sps:$4 sm:$0xff]  }
 0x307   :  { %6252 = vmatprep.subr.bf16.mxu1 %v11396_v6 }
 0x309   :  { %6212 = vmatpush1.bf16.msra.mxu0 %v11391_v62 }
 0x30a   :  { %6253 = vmatpush1.bf16.msra.mxu1 %v11394_v3  ;;  %6213 = vmatprep.subr.bf16.mxu0 %v11399_v10  ;;  %v11447_v3 = vld [vmem:[#allocation8 + $0x5bc] ss:$48 sps:$4 sm:$0xff]  }
 0x30b   :  { %6254 = vmatprep.subr.bf16.mxu1 %v11402_v12  ;;  %v11450_v10 = vld [vmem:[#allocation8 + $0x8bc] ss:$48 sps:$4 sm:$0xff]  }
 0x30d   :  { %6214 = vmatpush1.bf16.msra.mxu0 %v11397_v13  ;;  %v11448_v13 = vld [vmem:[#allocation8 + $0x8b8] ss:$48 sps:$4 sm:$0xff]  }
 0x30e   :  { %6255 = vmatpush1.bf16.msra.mxu1 %v11400_v15  ;;  %6281 = vmatprep.subr.bf16.mxu0 %v11408_v19  ;;  %v11456_v15 = vld [vmem:[#allocation8 + $0xc1c] ss:$48 sps:$4 sm:$0xff]   ;;  %v11454_v19 = vld [vmem:[#allocation8 + $0xc18] ss:$48 sps:$4 sm:$0xff]  }
 0x30f   :  { %6256 = vmatprep.subr.bf16.mxu1 %v11405_v18  ;;  %v11451_v18 = vld [vmem:[#allocation8 + $0x918] ss:$48 sps:$4 sm:$0xff]  }
 0x310   :  { %6232 = vmatmul.mubr.bf16.vlgmr.msra.gmra.mrb[40].mxu0 %v12642_v32 }
 0x311   :  { %6282 = vmatpush1.bf16.msra.mxu0 %v11406_v26  ;;  %6313 = vmatprep.mubr.bf16.mxu0 %v12616_v21  ;;  %v11462_v26 = vld [vmem:[#allocation8 + $0xc7c] ss:$48 sps:$4 sm:$0xff]  }
 0x312   :  { %6257 = vmatpush1.bf16.msra.mxu1 %v11403_v24  ;;  %6283 = vmatprep.subr.bf16.mxu0 %v11414_v29  ;;  %v11459_v24 = vld [vmem:[#allocation8 + $0x97c] ss:$48 sps:$4 sm:$0xff]   ;;  %v11460_v29 = vld [vmem:[#allocation8 + $0xc78] ss:$48 sps:$4 sm:$0xff]  }
 0x313   :  { %6258 = vmatprep.subr.bf16.mxu1 %v11411_v28  ;;  %v11457_v28 = vld [vmem:[#allocation8 + $0x978] ss:$48 sps:$4 sm:$0xff]  }
 0x315   :  { %6284 = vmatpush1.bf16.msra.mxu0 %v11412_v17  ;;  %v11468_v17 = vld [vmem:[#allocation8 + $0xcdc] ss:$48 sps:$4 sm:$0xff]  }
 0x316   :  { %6259 = vmatpush1.bf16.msra.mxu1 %v11409_v16  ;;  %6285 = vmatprep.subr.bf16.mxu0 %v11420_v31  ;;  %v11465_v16 = vld [vmem:[#allocation8 + $0x9dc] ss:$48 sps:$4 sm:$0xff]   ;;  %v11466_v31 = vld [vmem:[#allocation8 + $0xcd8] ss:$48 sps:$4 sm:$0xff]  }
 0x317   :  { %6260 = vmatprep.subr.bf16.mxu1 %v11417_v30  ;;  %v11463_v30 = vld [vmem:[#allocation8 + $0x9d8] ss:$48 sps:$4 sm:$0xff]  }
 0x319   :  { %6286 = vmatpush1.bf16.msra.mxu0 %v11418_v34  ;;  %v11474_v34 = vld [vmem:[#allocation8 + $0xd3c] ss:$48 sps:$4 sm:$0xff]  }
 0x31a   :  { %6261 = vmatpush1.bf16.msra.mxu1 %v11415_v33  ;;  %6287 = vmatprep.subr.bf16.mxu0 %v11426_v36  ;;  %v11471_v33 = vld [vmem:[#allocation8 + $0xa3c] ss:$48 sps:$4 sm:$0xff]   ;;  %v11472_v36 = vld [vmem:[#allocation8 + $0xd38] ss:$48 sps:$4 sm:$0xff]  }
 0x31b   :  { %6262 = vmatprep.subr.bf16.mxu1 %v11423_v35  ;;  %v11469_v35 = vld [vmem:[#allocation8 + $0xa38] ss:$48 sps:$4 sm:$0xff]  }
 0x31d   :  { %6288 = vmatpush1.bf16.msra.mxu0 %v11424_v40  ;;  %v11480_v40 = vld [vmem:[#allocation8 + $0xd9c] ss:$48 sps:$4 sm:$0xff]  }
 0x31e   :  { %6263 = vmatpush1.bf16.msra.mxu1 %v11421_v37  ;;  %6289 = vmatprep.subr.bf16.mxu0 %v11432_v42  ;;  %v11477_v37 = vld [vmem:[#allocation8 + $0xa9c] ss:$48 sps:$4 sm:$0xff]   ;;  %v11478_v42 = vld [vmem:[#allocation8 + $0xd98] ss:$48 sps:$4 sm:$0xff]  }
 0x31f   :  { %6264 = vmatprep.subr.bf16.mxu1 %v11429_v41  ;;  %v11475_v41 = vld [vmem:[#allocation8 + $0xa98] ss:$48 sps:$4 sm:$0xff]  }
 0x321   :  { %6290 = vmatpush1.bf16.msra.mxu0 %v11430_v8  ;;  %v11486_v8 = vld [vmem:[#allocation8 + $0xdfc] ss:$48 sps:$4 sm:$0xff]  }
 0x322   :  { %6265 = vmatpush1.bf16.msra.mxu1 %v11427_v44  ;;  %6291 = vmatprep.subr.bf16.mxu0 %v11438_v46  ;;  %v11483_v44 = vld [vmem:[#allocation8 + $0xafc] ss:$48 sps:$4 sm:$0xff]   ;;  %v11484_v46 = vld [vmem:[#allocation8 + $0xdf8] ss:$48 sps:$4 sm:$0xff]  }
 0x323   :  { %6266 = vmatprep.subr.bf16.mxu1 %v11435_v9  ;;  %v5905_v56 = vpop.f32.mrb[24].mxu0  ;;  %v11481_v9 = vld [vmem:[#allocation8 + $0xaf8] ss:$48 sps:$4 sm:$0xff]  }
 0x324   :  { %v5946_v57 = vpop.f32.mrb[24].mxu1  ;;  %v5906_v58 = vadd.f32 %v5905_v56, %v12592_v4  ;;  %v5907_v59 = vpop.f32.mrb[25].mxu0  ;;  %v11445_v4 = vld [vmem:[#allocation8 + $0x5b8] ss:$48 sps:$4 sm:$0xff]  }
 0x325   :  { %v5948_v60 = vpop.f32.mrb[25].mxu1  ;;  %v5908_v61 = vadd.f32 %v5907_v59, %v12594_v7  ;;  %v5909_v63 = vpop.f32.mrb[26].mxu0  ;;  %6292 = vmatpush1.bf16.msra.mxu0 %v11436_v53  ;;  %v11453_v7 = vld [vmem:[#allocation8 + $0x91c] ss:$48 sps:$4 sm:$0xff]   ;;  %v11487_v59 = vld [vmem:[#allocation8 + $0xb58] ss:$48 sps:$4 sm:$0xff]  }
 0x326   :  { %v5950_v0 = vpop.f32.mrb[26].mxu1  ;;  %6267 = vmatpush1.bf16.msra.mxu1 %v11433_v52  ;;  %v12668_v5 = vadd.f32 %v5946_v57, %v5906_v58  ;;  %v5910_v6 = vpop.f32.mrb[27].mxu0  ;;  %6293 = vmatprep.subr.bf16.mxu0 %v11444_v55  ;;  %v11489_v52 = vld [vmem:[#allocation8 + $0xb5c] ss:$48 sps:$4 sm:$0xff]  }
 0x327   :  { %v5951_v62 = vpop.f32.mrb[27].mxu1  ;;  %6268 = vmatprep.subr.bf16.mxu1 %v11441_v54  ;;  %v5949_v12 = vadd.f32 %v5948_v60, %v5908_v61  ;;  %v11492_v53 = vld [vmem:[#allocation8 + $0xe5c] ss:$48 sps:$4 sm:$0xff]   ;;  %v11490_v60 = vld [vmem:[#allocation8 + $0xe58] ss:$48 sps:$4 sm:$0xff]  }
 0x328   :  { %v11495_v63 = vld [vmem:[#allocation8 + $0xbbc] ss:$48 sps:$4 sm:$0xff]   ;;  %v11504_v6 = vld [vmem:[#allocation8 + $0x624] ss:$48 sps:$4 sm:$0xff]   ;;  %v11499_v62 = vld [vmem:[#allocation8 + $0x20] ss:$48 sps:$4 sm:$0xff]  }
 0x329   :  { %6294 = vmatpush1.bf16.msra.mxu0 %v11442_v2  ;;  %v11498_v0 = vld [vmem:[#allocation8 + $0xebc] ss:$48 sps:$4 sm:$0xff]   ;;  %v11496_v2 = vld [vmem:[#allocation8 + $0xeb8] ss:$48 sps:$4 sm:$0xff]  }
 0x32a   :  { %6269 = vmatpush1.bf16.msra.mxu1 %v11439_v1  ;;  %6295 = vmatprep.subr.bf16.mxu0 %v11450_v10  ;;  %v11493_v1 = vld [vmem:[#allocation8 + $0xbb8] ss:$48 sps:$4 sm:$0xff]   ;;  %v11507_v10 = vld [vmem:[#allocation8 + $0x84] ss:$48 sps:$4 sm:$0xff]  }
 0x32b   :  { %6270 = vmatprep.subr.bf16.mxu1 %v11447_v3  ;;  %v11502_v3 = vld [vmem:[#allocation8 + $0x620] ss:$48 sps:$4 sm:$0xff]  }
 0x32d   :  { %6296 = vmatpush1.bf16.msra.mxu0 %v11448_v13  ;;  %v11508_v13 = vld [vmem:[#allocation8 + $0x680] ss:$48 sps:$4 sm:$0xff]  }
 0x32e   :  { %6271 = vmatpush1.bf16.msra.mxu1 %v11445_v4  ;;  %6297 = vmatprep.subr.bf16.mxu0 %v11453_v7  ;;  %v11505_v4 = vld [vmem:[#allocation8 + $0x80] ss:$48 sps:$4 sm:$0xff]   ;;  %v11513_v7 = vld [vmem:[#allocation8 + $0xe4] ss:$48 sps:$4 sm:$0xff]  }
 0x32f   :  { %6322 = vmatprep.subr.bf16.mxu1 %v11456_v15  ;;  %v11516_v15 = vld [vmem:[#allocation8 + $0x6e4] ss:$48 sps:$4 sm:$0xff]  }
 0x331   :  { %6273 = vmatmul.mubr.bf16.vlgmr.msra.gmra.mrb[40].mxu1 %v12628_v38  ;;  %6298 = vmatpush1.bf16.msra.mxu0 %v11451_v18  ;;  %v11511_v18 = vld [vmem:[#allocation8 + $0xe0] ss:$48 sps:$4 sm:$0xff]  }
 0x332   :  { %6323 = vmatpush1.bf16.msra.mxu1 %v11454_v19  ;;  %6299 = vmatprep.subr.bf16.mxu0 %v11459_v24  ;;  %v11514_v19 = vld [vmem:[#allocation8 + $0x6e0] ss:$48 sps:$4 sm:$0xff]   ;;  %v11519_v24 = vld [vmem:[#allocation8 + $0x144] ss:$48 sps:$4 sm:$0xff]  }
 0x333   :  { %6324 = vmatprep.subr.bf16.mxu1 %v11462_v26  ;;  %6354 = vmatprep.mubr.bf16.mxu1 %v12393_v48  ;;  %v11522_v26 = vld [vmem:[#allocation8 + $0x744] ss:$48 sps:$4 sm:$0xff]  }
 0x335   :  { %6300 = vmatpush1.bf16.msra.mxu0 %v11457_v28  ;;  %v11517_v28 = vld [vmem:[#allocation8 + $0x140] ss:$48 sps:$4 sm:$0xff]  }
 0x336   :  { %6325 = vmatpush1.bf16.msra.mxu1 %v11460_v29  ;;  %6301 = vmatprep.subr.bf16.mxu0 %v11465_v16  ;;  %v11520_v29 = vld [vmem:[#allocation8 + $0x740] ss:$48 sps:$4 sm:$0xff]   ;;  %v11525_v16 = vld [vmem:[#allocation8 + $0x1a4] ss:$48 sps:$4 sm:$0xff]  }
 0x337   :  { %6326 = vmatprep.subr.bf16.mxu1 %v11468_v17  ;;  %v11528_v17 = vld [vmem:[#allocation8 + $0x7a4] ss:$48 sps:$4 sm:$0xff]  }
 0x339   :  { %6302 = vmatpush1.bf16.msra.mxu0 %v11463_v30  ;;  %v11523_v30 = vld [vmem:[#allocation8 + $0x1a0] ss:$48 sps:$4 sm:$0xff]  }
 0x33a   :  { %6327 = vmatpush1.bf16.msra.mxu1 %v11466_v31  ;;  %6303 = vmatprep.subr.bf16.mxu0 %v11471_v33  ;;  %v11526_v31 = vld [vmem:[#allocation8 + $0x7a0] ss:$48 sps:$4 sm:$0xff]   ;;  %v11531_v33 = vld [vmem:[#allocation8 + $0x204] ss:$48 sps:$4 sm:$0xff]  }
 0x33b   :  { %6328 = vmatprep.subr.bf16.mxu1 %v11474_v34  ;;  %v11534_v34 = vld [vmem:[#allocation8 + $0x804] ss:$48 sps:$4 sm:$0xff]  }
 0x33d   :  { %6304 = vmatpush1.bf16.msra.mxu0 %v11469_v35  ;;  %v11529_v35 = vld [vmem:[#allocation8 + $0x200] ss:$48 sps:$4 sm:$0xff]  }
 0x33e   :  { %6329 = vmatpush1.bf16.msra.mxu1 %v11472_v36  ;;  %6305 = vmatprep.subr.bf16.mxu0 %v11477_v37  ;;  %v11532_v36 = vld [vmem:[#allocation8 + $0x800] ss:$48 sps:$4 sm:$0xff]   ;;  %v11537_v37 = vld [vmem:[#allocation8 + $0x264] ss:$48 sps:$4 sm:$0xff]  }
 0x33f   :  { %6330 = vmatprep.subr.bf16.mxu1 %v11480_v40  ;;  %v11540_v40 = vld [vmem:[#allocation8 + $0x864] ss:$48 sps:$4 sm:$0xff]  }
 0x341   :  { %6306 = vmatpush1.bf16.msra.mxu0 %v11475_v41 }
 0x342   :  { %6331 = vmatpush1.bf16.msra.mxu1 %v11478_v42  ;;  %6307 = vmatprep.subr.bf16.mxu0 %v11483_v44 }
 0x343   :  { %6332 = vmatprep.subr.bf16.mxu1 %v11486_v8  ;;  %v5987_v54 = vpop.f32.mrb[28].mxu0 }
 0x344   :  { %v12673_v55 = vadd.f32 %v5987_v54, %v12668_v5  ;;  %v5989_v56 = vpop.f32.mrb[29].mxu0  ;;  %v11501_v5 = vld [vmem:[#allocation8 + $0x24] ss:$48 sps:$4 sm:$0xff]  }
 0x345   :  { %v12675_v57 = vadd.f32 %v5989_v56, %v5949_v12  ;;  %v5991_v58 = vpop.f32.mrb[30].mxu0  ;;  %6308 = vmatpush1.bf16.msra.mxu0 %v11481_v9  ;;  %v11510_v12 = vld [vmem:[#allocation8 + $0x684] ss:$48 sps:$4 sm:$0xff]  }
 0x346   :  { %6333 = vmatpush1.bf16.msra.mxu1 %v11484_v46  ;;  %v5992_v61 = vpop.f32.mrb[31].mxu0  ;;  %6309 = vmatprep.subr.bf16.mxu0 %v11489_v52  ;;  %v11535_v46 = vld [vmem:[#allocation8 + $0x260] ss:$48 sps:$4 sm:$0xff]   ;;  %v11543_v54 = vld [vmem:[#allocation8 + $0x2c4] ss:$48 sps:$4 sm:$0xff]  }
 0x347   :  { %6334 = vmatprep.subr.bf16.mxu1 %v11492_v53  ;;  %v11538_v52 = vld [vmem:[#allocation8 + $0x860] ss:$48 sps:$4 sm:$0xff]   ;;  %v11546_v56 = vld [vmem:[#allocation8 + $0x8c4] ss:$48 sps:$4 sm:$0xff]  }
 0x348   :  { %v11541_v58 = vld [vmem:[#allocation8 + $0x2c0] ss:$48 sps:$4 sm:$0xff]  }
 0x349   :  { %6310 = vmatpush1.bf16.msra.mxu0 %v11487_v59  ;;  %v11544_v59 = vld [vmem:[#allocation8 + $0x8c0] ss:$48 sps:$4 sm:$0xff]  }
 0x34a   :  { %6335 = vmatpush1.bf16.msra.mxu1 %v11490_v60  ;;  %6311 = vmatprep.subr.bf16.mxu0 %v11495_v63  ;;  %v11552_v60 = vld [vmem:[#allocation8 + $0x924] ss:$48 sps:$4 sm:$0xff]   ;;  %v11550_v61 = vld [vmem:[#allocation8 + $0x920] ss:$48 sps:$4 sm:$0xff]  }
 0x34b   :  { %6336 = vmatprep.subr.bf16.mxu1 %v11498_v0  ;;  %v11555_v63 = vld [vmem:[#allocation8 + $0x384] ss:$48 sps:$4 sm:$0xff]  }
 0x34c   :  { %v11558_v0 = vld [vmem:[#allocation8 + $0x984] ss:$48 sps:$4 sm:$0xff]  }
 0x34d   :  { %6312 = vmatpush1.bf16.msra.mxu0 %v11493_v1  ;;  %v11553_v1 = vld [vmem:[#allocation8 + $0x380] ss:$48 sps:$4 sm:$0xff]  }
 0x34e   :  { %6337 = vmatpush1.bf16.msra.mxu1 %v11496_v2  ;;  %6363 = vmatprep.subr.bf16.mxu0 %v11501_v5  ;;  %v11556_v2 = vld [vmem:[#allocation8 + $0x980] ss:$48 sps:$4 sm:$0xff]   ;;  %v11561_v5 = vld [vmem:[#allocation8 + $0x3e4] ss:$48 sps:$4 sm:$0xff]  }
 0x34f   :  { %6404 = vmatprep.subr.bf16.mxu1 %v11504_v6  ;;  %v11564_v6 = vld [vmem:[#allocation8 + $0x9e4] ss:$48 sps:$4 sm:$0xff]  }
 0x350   :  { %6314 = vmatmul.mubr.bf16.vlgmr.msra.gmra.mrb[44].mxu0 %v12632_v39 }
 0x351   :  { %6355 = vmatmul.mubr.bf16.vlgmr.msra.gmra.mrb[44].mxu1 %v12642_v32  ;;  %6364 = vmatpush1.bf16.msra.mxu0 %v11499_v62  ;;  %v11559_v62 = vld [vmem:[#allocation8 + $0x3e0] ss:$48 sps:$4 sm:$0xff]  }
 0x352   :  { %6405 = vmatpush1.bf16.msra.mxu1 %v11502_v3  ;;  %6365 = vmatprep.subr.bf16.mxu0 %v11507_v10  ;;  %v11562_v3 = vld [vmem:[#allocation8 + $0x9e0] ss:$48 sps:$4 sm:$0xff]   ;;  %v11567_v10 = vld [vmem:[#allocation8 + $0x444] ss:$48 sps:$4 sm:$0xff]  }
 0x353   :  { %6406 = vmatprep.subr.bf16.mxu1 %v11510_v12  ;;  %6395 = vmatprep.mubr.bf16.mxu0 %v12614_v20  ;;  %v11570_v12 = vld [vmem:[#allocation8 + $0xa44] ss:$48 sps:$4 sm:$0xff]  }
 0x354   :  { %6436 = vmatprep.mubr.bf16.mxu1 %v12616_v21 }
 0x355   :  { %6366 = vmatpush1.bf16.msra.mxu0 %v11505_v4  ;;  %v11565_v4 = vld [vmem:[#allocation8 + $0x440] ss:$48 sps:$4 sm:$0xff]  }
 0x356   :  { %6407 = vmatpush1.bf16.msra.mxu1 %v11508_v13  ;;  %6367 = vmatprep.subr.bf16.mxu0 %v11513_v7  ;;  %v11568_v13 = vld [vmem:[#allocation8 + $0xa40] ss:$48 sps:$4 sm:$0xff]   ;;  %v11573_v7 = vld [vmem:[#allocation8 + $0x4a4] ss:$48 sps:$4 sm:$0xff]  }
 0x357   :  { %6408 = vmatprep.subr.bf16.mxu1 %v11516_v15  ;;  %v11576_v15 = vld [vmem:[#allocation8 + $0xaa4] ss:$48 sps:$4 sm:$0xff]  }
 0x359   :  { %6368 = vmatpush1.bf16.msra.mxu0 %v11511_v18  ;;  %v11571_v18 = vld [vmem:[#allocation8 + $0x4a0] ss:$48 sps:$4 sm:$0xff]  }
 0x35a   :  { %6409 = vmatpush1.bf16.msra.mxu1 %v11514_v19  ;;  %6369 = vmatprep.subr.bf16.mxu0 %v11519_v24  ;;  %v11574_v19 = vld [vmem:[#allocation8 + $0xaa0] ss:$48 sps:$4 sm:$0xff]   ;;  %v11579_v24 = vld [vmem:[#allocation8 + $0x504] ss:$48 sps:$4 sm:$0xff]  }
 0x35b   :  { %6410 = vmatprep.subr.bf16.mxu1 %v11522_v26  ;;  %v11582_v26 = vld [vmem:[#allocation8 + $0xb04] ss:$48 sps:$4 sm:$0xff]  }
 0x35d   :  { %6370 = vmatpush1.bf16.msra.mxu0 %v11517_v28  ;;  %v11577_v28 = vld [vmem:[#allocation8 + $0x500] ss:$48 sps:$4 sm:$0xff]  }
 0x35e   :  { %6411 = vmatpush1.bf16.msra.mxu1 %v11520_v29  ;;  %6371 = vmatprep.subr.bf16.mxu0 %v11525_v16  ;;  %v11580_v29 = vld [vmem:[#allocation8 + $0xb00] ss:$48 sps:$4 sm:$0xff]   ;;  %v11585_v16 = vld [vmem:[#allocation8 + $0x564] ss:$48 sps:$4 sm:$0xff]  }
 0x35f   :  { %6412 = vmatprep.subr.bf16.mxu1 %v11528_v17  ;;  %v11588_v17 = vld [vmem:[#allocation8 + $0xb64] ss:$48 sps:$4 sm:$0xff]  }
 0x361   :  { %6372 = vmatpush1.bf16.msra.mxu0 %v11523_v30 }
 0x362   :  { %6413 = vmatpush1.bf16.msra.mxu1 %v11526_v31  ;;  %6373 = vmatprep.subr.bf16.mxu0 %v11531_v33 }
 0x363   :  { %6414 = vmatprep.subr.bf16.mxu1 %v11534_v34 }
 0x364   :  { %v6028_v41 = vpop.f32.mrb[28].mxu1 }
 0x365   :  { %v12682_v42 = vadd.f32 %v6028_v41, %v12600_v22  ;;  %v6030_v44 = vpop.f32.mrb[29].mxu1  ;;  %6374 = vmatpush1.bf16.msra.mxu0 %v11529_v35  ;;  %v11549_v22 = vld [vmem:[#allocation8 + $0x324] ss:$48 sps:$4 sm:$0xff]   ;;  %v11583_v41 = vld [vmem:[#allocation8 + $0x560] ss:$48 sps:$4 sm:$0xff]  }
 0x366   :  { %v12685_v8 = vadd.f32 %v6030_v44, %v12602_v25  ;;  %v6032_v9 = vpop.f32.mrb[30].mxu1  ;;  %6415 = vmatpush1.bf16.msra.mxu1 %v11532_v36  ;;  %6375 = vmatprep.subr.bf16.mxu0 %v11537_v37  ;;  %v11547_v25 = vld [vmem:[#allocation8 + $0x320] ss:$48 sps:$4 sm:$0xff]  }
 0x367   :  { %v6033_v53 = vpop.f32.mrb[31].mxu1  ;;  %6416 = vmatprep.subr.bf16.mxu1 %v11540_v40  ;;  %v11586_v44 = vld [vmem:[#allocation8 + $0xb60] ss:$48 sps:$4 sm:$0xff]  }
 0x368   :  { %v11591_v53 = vld [vmem:[#allocation8 + $0x5c4] ss:$48 sps:$4 sm:$0xff]  }
 0x369   :  { %6376 = vmatpush1.bf16.msra.mxu0 %v11535_v46 }
 0x36a   :  { %6417 = vmatpush1.bf16.msra.mxu1 %v11538_v52  ;;  %6377 = vmatprep.subr.bf16.mxu0 %v11543_v54  ;;  %v11594_v54 = vld [vmem:[#allocation8 + $0xbc4] ss:$48 sps:$4 sm:$0xff]  }
 0x36b   :  { %6418 = vmatprep.subr.bf16.mxu1 %v11546_v56 }
 0x36d   :  { %6378 = vmatpush1.bf16.msra.mxu0 %v11541_v58  ;;  %v11597_v58 = vld [vmem:[#allocation8 + $0xc24] ss:$48 sps:$4 sm:$0xff]  }
 0x36e   :  { %6419 = vmatpush1.bf16.msra.mxu1 %v11544_v59  ;;  %6379 = vmatprep.subr.bf16.mxu0 %v11549_v22  ;;  %v11600_v59 = vld [vmem:[#allocation8 + $0x2c] ss:$48 sps:$4 sm:$0xff]   ;;  %v11595_v22 = vld [vmem:[#allocation8 + $0xc20] ss:$48 sps:$4 sm:$0xff]  }
 0x36f   :  { %6420 = vmatprep.subr.bf16.mxu1 %v11552_v60  ;;  %v11598_v60 = vld [vmem:[#allocation8 + $0x28] ss:$48 sps:$4 sm:$0xff]  }
 0x371   :  { %6380 = vmatpush1.bf16.msra.mxu0 %v11547_v25  ;;  %v11603_v25 = vld [vmem:[#allocation8 + $0xc84] ss:$48 sps:$4 sm:$0xff]  }
 0x372   :  { %6421 = vmatpush1.bf16.msra.mxu1 %v11550_v61  ;;  %6381 = vmatprep.subr.bf16.mxu0 %v11555_v63  ;;  %v11606_v61 = vld [vmem:[#allocation8 + $0x8c] ss:$48 sps:$4 sm:$0xff]   ;;  %v11601_v63 = vld [vmem:[#allocation8 + $0xc80] ss:$48 sps:$4 sm:$0xff]  }
 0x373   :  { %6422 = vmatprep.subr.bf16.mxu1 %v11558_v0  ;;  %v11604_v0 = vld [vmem:[#allocation8 + $0x88] ss:$48 sps:$4 sm:$0xff]  }
 0x375   :  { %6382 = vmatpush1.bf16.msra.mxu0 %v11553_v1  ;;  %v11609_v1 = vld [vmem:[#allocation8 + $0xce4] ss:$48 sps:$4 sm:$0xff]  }
 0x376   :  { %6423 = vmatpush1.bf16.msra.mxu1 %v11556_v2  ;;  %6383 = vmatprep.subr.bf16.mxu0 %v11561_v5  ;;  %v11612_v2 = vld [vmem:[#allocation8 + $0xec] ss:$48 sps:$4 sm:$0xff]   ;;  %v11607_v5 = vld [vmem:[#allocation8 + $0xce0] ss:$48 sps:$4 sm:$0xff]  }
 0x377   :  { %6424 = vmatprep.subr.bf16.mxu1 %v11564_v6  ;;  %v11610_v6 = vld [vmem:[#allocation8 + $0xe8] ss:$48 sps:$4 sm:$0xff]  }
 0x379   :  { %6384 = vmatpush1.bf16.msra.mxu0 %v11559_v62  ;;  %v11615_v62 = vld [vmem:[#allocation8 + $0xd44] ss:$48 sps:$4 sm:$0xff]  }
 0x37a   :  { %6425 = vmatpush1.bf16.msra.mxu1 %v11562_v3  ;;  %6385 = vmatprep.subr.bf16.mxu0 %v11567_v10  ;;  %v11618_v3 = vld [vmem:[#allocation8 + $0x14c] ss:$48 sps:$4 sm:$0xff]   ;;  %v11613_v10 = vld [vmem:[#allocation8 + $0xd40] ss:$48 sps:$4 sm:$0xff]  }
 0x37b   :  { %6426 = vmatprep.subr.bf16.mxu1 %v11570_v12  ;;  %v11616_v12 = vld [vmem:[#allocation8 + $0x148] ss:$48 sps:$4 sm:$0xff]  }
 0x37d   :  { %6386 = vmatpush1.bf16.msra.mxu0 %v11565_v4  ;;  %v11621_v4 = vld [vmem:[#allocation8 + $0xda4] ss:$48 sps:$4 sm:$0xff]  }
 0x37e   :  { %6427 = vmatpush1.bf16.msra.mxu1 %v11568_v13  ;;  %6387 = vmatprep.subr.bf16.mxu0 %v11573_v7  ;;  %v11624_v13 = vld [vmem:[#allocation8 + $0x1ac] ss:$48 sps:$4 sm:$0xff]   ;;  %v11619_v7 = vld [vmem:[#allocation8 + $0xda0] ss:$48 sps:$4 sm:$0xff]  }
 0x37f   :  { %6428 = vmatprep.subr.bf16.mxu1 %v11576_v15  ;;  %v11627_v15 = vld [vmem:[#allocation8 + $0xe04] ss:$48 sps:$4 sm:$0xff]  }
 0x381   :  { %6388 = vmatpush1.bf16.msra.mxu0 %v11571_v18  ;;  %v11630_v18 = vld [vmem:[#allocation8 + $0x20c] ss:$48 sps:$4 sm:$0xff]  }
 0x382   :  { %6429 = vmatpush1.bf16.msra.mxu1 %v11574_v19  ;;  %6389 = vmatprep.subr.bf16.mxu0 %v11579_v24  ;;  %v11625_v19 = vld [vmem:[#allocation8 + $0xe00] ss:$48 sps:$4 sm:$0xff]   ;;  %v11628_v24 = vld [vmem:[#allocation8 + $0x208] ss:$48 sps:$4 sm:$0xff]  }
 0x383   :  { %6430 = vmatprep.subr.bf16.mxu1 %v11582_v26  ;;  %v6069_v30 = vpop.f32.mrb[32].mxu0  ;;  %v11633_v26 = vld [vmem:[#allocation8 + $0xe64] ss:$48 sps:$4 sm:$0xff]  }
 0x384   :  { %v6110_v31 = vpop.f32.mrb[32].mxu1  ;;  %v6070_v33 = vadd.f32 %v6069_v30, %v12682_v42  ;;  %v6071_v34 = vpop.f32.mrb[33].mxu0  ;;  %v11589_v42 = vld [vmem:[#allocation8 + $0x5c0] ss:$48 sps:$4 sm:$0xff]   ;;  %v11642_v30 = vld [vmem:[#allocation8 + $0x2cc] ss:$48 sps:$4 sm:$0xff]  }
 0x385   :  { %v6112_v35 = vpop.f32.mrb[33].mxu1  ;;  %v6072_v36 = vadd.f32 %v6071_v34, %v12685_v8  ;;  %v6073_v37 = vpop.f32.mrb[34].mxu0  ;;  %6390 = vmatpush1.bf16.msra.mxu0 %v11577_v28  ;;  %v11592_v8 = vld [vmem:[#allocation8 + $0xbc0] ss:$48 sps:$4 sm:$0xff]   ;;  %v11636_v28 = vld [vmem:[#allocation8 + $0x26c] ss:$48 sps:$4 sm:$0xff]  }
 0x386   :  { %v6114_v40 = vpop.f32.mrb[34].mxu1  ;;  %6431 = vmatpush1.bf16.msra.mxu1 %v11580_v29  ;;  %v12689_v9 = vadd.f32 %v6110_v31, %v6070_v33  ;;  %v6074_v46 = vpop.f32.mrb[35].mxu0  ;;  %6391 = vmatprep.subr.bf16.mxu0 %v11585_v16  ;;  %v11631_v29 = vld [vmem:[#allocation8 + $0xe60] ss:$48 sps:$4 sm:$0xff]   ;;  %v11634_v16 = vld [vmem:[#allocation8 + $0x268] ss:$48 sps:$4 sm:$0xff]  }
 0x387   :  { %v6115_v52 = vpop.f32.mrb[35].mxu1  ;;  %6432 = vmatprep.subr.bf16.mxu1 %v11588_v17  ;;  %v12691_v56 = vadd.f32 %v6112_v35, %v6072_v36  ;;  %v11639_v17 = vld [vmem:[#allocation8 + $0xec4] ss:$48 sps:$4 sm:$0xff]   ;;  %v11637_v31 = vld [vmem:[#allocation8 + $0xec0] ss:$48 sps:$4 sm:$0xff]  }
 0x388   :  { %v11640_v33 = vld [vmem:[#allocation8 + $0x2c8] ss:$48 sps:$4 sm:$0xff]   ;;  %v11645_v34 = vld [vmem:[#allocation8 + $0x32c] ss:$48 sps:$4 sm:$0xff]  }
 0x389   :  { %6392 = vmatpush1.bf16.msra.mxu0 %v11583_v41  ;;  %v11648_v35 = vld [vmem:[#allocation8 + $0x62c] ss:$48 sps:$4 sm:$0xff]   ;;  %v11643_v36 = vld [vmem:[#allocation8 + $0x328] ss:$48 sps:$4 sm:$0xff]  }
 0x38a   :  { %6433 = vmatpush1.bf16.msra.mxu1 %v11586_v44  ;;  %6393 = vmatprep.subr.bf16.mxu0 %v11591_v53  ;;  %v11646_v37 = vld [vmem:[#allocation8 + $0x628] ss:$48 sps:$4 sm:$0xff]   ;;  %v11651_v40 = vld [vmem:[#allocation8 + $0x38c] ss:$48 sps:$4 sm:$0xff]  }
 0x38b   :  { %6434 = vmatprep.subr.bf16.mxu1 %v11594_v54  ;;  %v11654_v41 = vld [vmem:[#allocation8 + $0x68c] ss:$48 sps:$4 sm:$0xff]   ;;  %v11649_v44 = vld [vmem:[#allocation8 + $0x388] ss:$48 sps:$4 sm:$0xff]  }
 0x38c   :  { %v11652_v46 = vld [vmem:[#allocation8 + $0x688] ss:$48 sps:$4 sm:$0xff]   ;;  %v11657_v52 = vld [vmem:[#allocation8 + $0x3ec] ss:$48 sps:$4 sm:$0xff]  }
 0x38d   :  { %6394 = vmatpush1.bf16.msra.mxu0 %v11589_v42  ;;  %v11660_v53 = vld [vmem:[#allocation8 + $0x6ec] ss:$48 sps:$4 sm:$0xff]   ;;  %v11655_v54 = vld [vmem:[#allocation8 + $0x3e8] ss:$48 sps:$4 sm:$0xff]  }
 0x38e   :  { %6435 = vmatpush1.bf16.msra.mxu1 %v11592_v8  ;;  %6445 = vmatprep.subr.bf16.mxu0 %v11597_v58  ;;  %v11658_v42 = vld [vmem:[#allocation8 + $0x6e8] ss:$48 sps:$4 sm:$0xff]   ;;  %v11663_v8 = vld [vmem:[#allocation8 + $0x44c] ss:$48 sps:$4 sm:$0xff]  }
 0x38f   :  { %6486 = vmatprep.subr.bf16.mxu1 %v11600_v59  ;;  %v11666_v58 = vld [vmem:[#allocation8 + $0x74c] ss:$48 sps:$4 sm:$0xff]   ;;  %v11661_v59 = vld [vmem:[#allocation8 + $0x448] ss:$48 sps:$4 sm:$0xff]  }
 0x390   :  { %6396 = vmatmul.mubr.bf16.vlgmr.msra.gmra.mrb[48].mxu0 %v12628_v38 }
 0x391   :  { %6437 = vmatmul.mubr.bf16.vlgmr.msra.gmra.mrb[48].mxu1 %v12632_v39  ;;  %6446 = vmatpush1.bf16.msra.mxu0 %v11595_v22  ;;  %v11664_v22 = vld [vmem:[#allocation8 + $0x748] ss:$48 sps:$4 sm:$0xff]  }
 0x392   :  { %6487 = vmatpush1.bf16.msra.mxu1 %v11598_v60  ;;  %6447 = vmatprep.subr.bf16.mxu0 %v11603_v25  ;;  %v11669_v60 = vld [vmem:[#allocation8 + $0x4ac] ss:$48 sps:$4 sm:$0xff]  }
 0x393   :  { %6488 = vmatprep.subr.bf16.mxu1 %v11606_v61  ;;  %6477 = vmatprep.mubr.bf16.mxu0 %v12393_v48  ;;  %v11672_v25 = vld [vmem:[#allocation8 + $0x7ac] ss:$48 sps:$4 sm:$0xff]   ;;  %v11667_v61 = vld [vmem:[#allocation8 + $0x4a8] ss:$48 sps:$4 sm:$0xff]  }
 0x394   :  { %6518 = vmatprep.mubr.bf16.mxu1 %v12614_v20  ;;  %v11622_v20 = vld [vmem:[#allocation8 + $0x1a8] ss:$48 sps:$4 sm:$0xff]  }
 0x395   :  { %6448 = vmatpush1.bf16.msra.mxu0 %v11601_v63  ;;  %v11675_v63 = vld [vmem:[#allocation8 + $0x50c] ss:$48 sps:$4 sm:$0xff]  }
 0x396   :  { %6489 = vmatpush1.bf16.msra.mxu1 %v11604_v0  ;;  %6449 = vmatprep.subr.bf16.mxu0 %v11609_v1  ;;  %v11678_v0 = vld [vmem:[#allocation8 + $0x80c] ss:$48 sps:$4 sm:$0xff]   ;;  %v11673_v1 = vld [vmem:[#allocation8 + $0x508] ss:$48 sps:$4 sm:$0xff]  }
 0x397   :  { %6490 = vmatprep.subr.bf16.mxu1 %v11612_v2  ;;  %v11676_v2 = vld [vmem:[#allocation8 + $0x808] ss:$48 sps:$4 sm:$0xff]  }
 0x399   :  { %6450 = vmatpush1.bf16.msra.mxu0 %v11607_v5  ;;  %v11681_v5 = vld [vmem:[#allocation8 + $0x56c] ss:$48 sps:$4 sm:$0xff]  }
 0x39a   :  { %6491 = vmatpush1.bf16.msra.mxu1 %v11610_v6  ;;  %6451 = vmatprep.subr.bf16.mxu0 %v11615_v62  ;;  %v11684_v6 = vld [vmem:[#allocation8 + $0x86c] ss:$48 sps:$4 sm:$0xff]  }
 0x39b   :  { %6492 = vmatprep.subr.bf16.mxu1 %v11618_v3 }
 0x39d   :  { %6452 = vmatpush1.bf16.msra.mxu0 %v11613_v10 }
 0x39e   :  { %6493 = vmatpush1.bf16.msra.mxu1 %v11616_v12  ;;  %6453 = vmatprep.subr.bf16.mxu0 %v11621_v4 }
 0x39f   :  { %6494 = vmatprep.subr.bf16.mxu1 %v11624_v13 }
 0x3a1   :  { %6454 = vmatpush1.bf16.msra.mxu0 %v11619_v7 }
 0x3a2   :  { %6495 = vmatpush1.bf16.msra.mxu1 %v11622_v20  ;;  %6455 = vmatprep.subr.bf16.mxu0 %v11627_v15  ;;  %v11679_v15 = vld [vmem:[#allocation8 + $0x568] ss:$48 sps:$4 sm:$0xff]  }
 0x3a3   :  { %6496 = vmatprep.subr.bf16.mxu1 %v11630_v18  ;;  %v11682_v18 = vld [vmem:[#allocation8 + $0x868] ss:$48 sps:$4 sm:$0xff]  }
 0x3a5   :  { %6456 = vmatpush1.bf16.msra.mxu0 %v11625_v19 }
 0x3a6   :  { %6497 = vmatpush1.bf16.msra.mxu1 %v11628_v24  ;;  %6457 = vmatprep.subr.bf16.mxu0 %v11633_v26 }
 0x3a7   :  { %6498 = vmatprep.subr.bf16.mxu1 %v11636_v28  ;;  %v11687_v28 = vld [vmem:[#allocation8 + $0x5cc] ss:$48 sps:$4 sm:$0xff]  }
 0x3a9   :  { %6458 = vmatpush1.bf16.msra.mxu0 %v11631_v29  ;;  %v11690_v29 = vld [vmem:[#allocation8 + $0x8cc] ss:$48 sps:$4 sm:$0xff]  }
 0x3aa   :  { %6499 = vmatpush1.bf16.msra.mxu1 %v11634_v16  ;;  %6459 = vmatprep.subr.bf16.mxu0 %v11639_v17  ;;  %v11693_v17 = vld [vmem:[#allocation8 + $0x92c] ss:$48 sps:$4 sm:$0xff]  }
 0x3ab   :  { %6500 = vmatprep.subr.bf16.mxu1 %v11642_v30  ;;  %v11696_v30 = vld [vmem:[#allocation8 + $0xc2c] ss:$48 sps:$4 sm:$0xff]  }
 0x3ad   :  { %6460 = vmatpush1.bf16.msra.mxu0 %v11637_v31  ;;  %v11691_v31 = vld [vmem:[#allocation8 + $0x928] ss:$48 sps:$4 sm:$0xff]  }
 0x3ae   :  { %6501 = vmatpush1.bf16.msra.mxu1 %v11640_v33  ;;  %6527 = vmatprep.subr.bf16.mxu0 %v11648_v35  ;;  %v11694_v33 = vld [vmem:[#allocation8 + $0xc28] ss:$48 sps:$4 sm:$0xff]   ;;  %v11702_v35 = vld [vmem:[#allocation8 + $0xc8c] ss:$48 sps:$4 sm:$0xff]  }
 0x3af   :  { %6502 = vmatprep.subr.bf16.mxu1 %v11645_v34  ;;  %v11699_v34 = vld [vmem:[#allocation8 + $0x98c] ss:$48 sps:$4 sm:$0xff]  }
 0x3b0   :  { %6478 = vmatmul.mubr.bf16.vlgmr.msra.gmra.mrb[52].mxu0 %v12642_v32 }
 0x3b1   :  { %6528 = vmatpush1.bf16.msra.mxu0 %v11646_v37  ;;  %6559 = vmatprep.mubr.bf16.mxu0 %v12616_v21  ;;  %v11670_v21 = vld [vmem:[#allocation8 + $0x7a8] ss:$48 sps:$4 sm:$0xff]  }
 0x3b2   :  { %6503 = vmatpush1.bf16.msra.mxu1 %v11643_v36  ;;  %6529 = vmatprep.subr.bf16.mxu0 %v11654_v41  ;;  %v11697_v36 = vld [vmem:[#allocation8 + $0x988] ss:$48 sps:$4 sm:$0xff]   ;;  %v11708_v41 = vld [vmem:[#allocation8 + $0xcec] ss:$48 sps:$4 sm:$0xff]  }
 0x3b3   :  { %6504 = vmatprep.subr.bf16.mxu1 %v11651_v40  ;;  %v11700_v37 = vld [vmem:[#allocation8 + $0xc88] ss:$48 sps:$4 sm:$0xff]   ;;  %v11705_v40 = vld [vmem:[#allocation8 + $0x9ec] ss:$48 sps:$4 sm:$0xff]  }
 0x3b5   :  { %6530 = vmatpush1.bf16.msra.mxu0 %v11652_v46  ;;  %v11706_v46 = vld [vmem:[#allocation8 + $0xce8] ss:$48 sps:$4 sm:$0xff]  }
 0x3b6   :  { %6505 = vmatpush1.bf16.msra.mxu1 %v11649_v44  ;;  %6531 = vmatprep.subr.bf16.mxu0 %v11660_v53  ;;  %v11703_v44 = vld [vmem:[#allocation8 + $0x9e8] ss:$48 sps:$4 sm:$0xff]   ;;  %v11714_v53 = vld [vmem:[#allocation8 + $0xd4c] ss:$48 sps:$4 sm:$0xff]  }
 0x3b7   :  { %6506 = vmatprep.subr.bf16.mxu1 %v11657_v52  ;;  %v11711_v52 = vld [vmem:[#allocation8 + $0xa4c] ss:$48 sps:$4 sm:$0xff]  }
 0x3b9   :  { %6532 = vmatpush1.bf16.msra.mxu0 %v11658_v42  ;;  %v11717_v42 = vld [vmem:[#allocation8 + $0xaac] ss:$48 sps:$4 sm:$0xff]  }
 0x3ba   :  { %6507 = vmatpush1.bf16.msra.mxu1 %v11655_v54  ;;  %6533 = vmatprep.subr.bf16.mxu0 %v11666_v58  ;;  %v11712_v54 = vld [vmem:[#allocation8 + $0xd48] ss:$48 sps:$4 sm:$0xff]  }
 0x3bb   :  { %6508 = vmatprep.subr.bf16.mxu1 %v11663_v8  ;;  %v11720_v8 = vld [vmem:[#allocation8 + $0xdac] ss:$48 sps:$4 sm:$0xff]   ;;  %v11715_v58 = vld [vmem:[#allocation8 + $0xaa8] ss:$48 sps:$4 sm:$0xff]  }
 0x3bd   :  { %6534 = vmatpush1.bf16.msra.mxu0 %v11664_v22  ;;  %v11723_v22 = vld [vmem:[#allocation8 + $0xb0c] ss:$48 sps:$4 sm:$0xff]  }
 0x3be   :  { %6509 = vmatpush1.bf16.msra.mxu1 %v11661_v59  ;;  %6535 = vmatprep.subr.bf16.mxu0 %v11672_v25  ;;  %v11718_v59 = vld [vmem:[#allocation8 + $0xda8] ss:$48 sps:$4 sm:$0xff]  }
 0x3bf   :  { %6510 = vmatprep.subr.bf16.mxu1 %v11669_v60  ;;  %v11726_v60 = vld [vmem:[#allocation8 + $0xe0c] ss:$48 sps:$4 sm:$0xff]   ;;  %v11721_v25 = vld [vmem:[#allocation8 + $0xb08] ss:$48 sps:$4 sm:$0xff]  }
 0x3c1   :  { %6536 = vmatpush1.bf16.msra.mxu0 %v11670_v21  ;;  %v11729_v21 = vld [vmem:[#allocation8 + $0xb6c] ss:$48 sps:$4 sm:$0xff]  }
 0x3c2   :  { %6511 = vmatpush1.bf16.msra.mxu1 %v11667_v61  ;;  %6537 = vmatprep.subr.bf16.mxu0 %v11678_v0  ;;  %v11724_v61 = vld [vmem:[#allocation8 + $0xe08] ss:$48 sps:$4 sm:$0xff]  }
 0x3c3   :  { %6512 = vmatprep.subr.bf16.mxu1 %v11675_v63  ;;  %v6151_v62 = vpop.f32.mrb[36].mxu0  ;;  %v11732_v63 = vld [vmem:[#allocation8 + $0xe6c] ss:$48 sps:$4 sm:$0xff]  }
 0x3c4   :  { %v6192_v3 = vpop.f32.mrb[36].mxu1  ;;  %v6152_v10 = vadd.f32 %v6151_v62, %v12622_v47  ;;  %v6153_v12 = vpop.f32.mrb[37].mxu0  ;;  %v11685_v47 = vld [vmem:[#allocation8 + $0x5c8] ss:$48 sps:$4 sm:$0xff]  }
 0x3c5   :  { %v6194_v4 = vpop.f32.mrb[37].mxu1  ;;  %v6154_v13 = vadd.f32 %v6153_v12, %v12624_v51  ;;  %v6155_v7 = vpop.f32.mrb[38].mxu0  ;;  %6538 = vmatpush1.bf16.msra.mxu0 %v11676_v2  ;;  %v11688_v51 = vld [vmem:[#allocation8 + $0x8c8] ss:$48 sps:$4 sm:$0xff]  }
 0x3c6   :  { %v6196_v20 = vpop.f32.mrb[38].mxu1  ;;  %6513 = vmatpush1.bf16.msra.mxu1 %v11673_v1  ;;  %v12701_v19 = vadd.f32 %v6192_v3, %v6152_v10  ;;  %v6156_v24 = vpop.f32.mrb[39].mxu0  ;;  %6539 = vmatprep.subr.bf16.mxu0 %v11684_v6  ;;  %v11730_v3 = vld [vmem:[#allocation8 + $0xe68] ss:$48 sps:$4 sm:$0xff]   ;;  %v11735_v10 = vld [vmem:[#allocation8 + $0xbcc] ss:$48 sps:$4 sm:$0xff]  }
 0x3c7   :  { %v6197_v26 = vpop.f32.mrb[39].mxu1  ;;  %6514 = vmatprep.subr.bf16.mxu1 %v11681_v5  ;;  %v12703_v16 = vadd.f32 %v6194_v4, %v6154_v13  ;;  %v11727_v5 = vld [vmem:[#allocation8 + $0xb68] ss:$48 sps:$4 sm:$0xff]   ;;  %v11738_v4 = vld [vmem:[#allocation8 + $0xecc] ss:$48 sps:$4 sm:$0xff]  }
 0x3c8   :  { %v12713_v13 = vld [vmem:[#allocation7] sm:$0x3f]  ;;  %v11739_v26 = vld [vmem:[#allocation11] ss:$48 sps:$4 sm:$0xff]  }
 0x3c9   :  { %6540 = vmatpush1.bf16.msra.mxu0 %v11682_v18  ;;  %v12717_v7 = vrot.slane %v12713_v13, %v12562_v49  ;;  %v11733_v20 = vld [vmem:[#allocation8 + $0xbc8] ss:$48 sps:$4 sm:$0xff]   ;;  %v11741_v18 = vld [vmem:[#allocation11 + $0x4] ss:$48 sps:$4 sm:$0xff]  }
 0x3ca   :  { %6515 = vmatpush1.bf16.msra.mxu1 %v11679_v15  ;;  %6541 = vmatprep.subr.bf16.mxu0 %v11690_v29  ;;  %v11736_v15 = vld [vmem:[#allocation8 + $0xec8] ss:$48 sps:$4 sm:$0xff]   ;;  %v11747_v29 = vld [vmem:[#allocation11 + $0x64] ss:$48 sps:$4 sm:$0xff]  }
 0x3cb   :  { %6516 = vmatprep.subr.bf16.mxu1 %v11687_v28  ;;  %v6626_v24 = vcombine.high %v12717_v7, %v12717_v7  ;;  %v11742_v28 = vld [vmem:[#allocation11 + $0x600] ss:$48 sps:$4 sm:$0xff]  }
 0x3cd   :  { %6542 = vmatpush1.bf16.msra.mxu0 %v11688_v51  ;;  %v11745_v51 = vld [vmem:[#allocation11 + $0x60] ss:$48 sps:$4 sm:$0xff]  }
 0x3ce   :  { %6517 = vmatpush1.bf16.msra.mxu1 %v11685_v47  ;;  %6543 = vmatprep.subr.bf16.mxu0 %v11693_v17  ;;  %v12721_v47 = vpack.c.bf16 %v6626_v24, %v6626_v24  ;;  %v11748_v17 = vld [vmem:[#allocation11 + $0x660] ss:$48 sps:$4 sm:$0xff]  }
 0x3cf   :  { %6568 = vmatprep.subr.bf16.mxu1 %v11696_v30  ;;  %v11753_v30 = vld [vmem:[#allocation11 + $0xc4] ss:$48 sps:$4 sm:$0xff]   ;;  %v11800_v24 = vld [vmem:[#allocation11 + $0x3c0] ss:$48 sps:$4 sm:$0xff]  }
 0x3d1   :  { %6519 = vmatmul.mubr.bf16.vlgmr.msra.gmra.mrb[52].mxu1 %v12628_v38  ;;  %6544 = vmatpush1.bf16.msra.mxu0 %v11691_v31  ;;  %v11709_v38 = vld [vmem:[#allocation8 + $0xa48] ss:$48 sps:$4 sm:$0xff]   ;;  %v11756_v31 = vld [vmem:[#allocation11 + $0x6c4] ss:$48 sps:$4 sm:$0xff]  }
 0x3d2   :  { %6569 = vmatpush1.bf16.msra.mxu1 %v11694_v33  ;;  %6545 = vmatprep.subr.bf16.mxu0 %v11699_v34  ;;  %v11751_v33 = vld [vmem:[#allocation11 + $0xc0] ss:$48 sps:$4 sm:$0xff]  }
 0x3d3   :  { %6570 = vmatprep.subr.bf16.mxu1 %v11702_v35  ;;  %6600 = vmatprep.mubr.bf16.mxu1 %v12393_v48  ;;  %v11754_v34 = vld [vmem:[#allocation11 + $0x6c0] ss:$48 sps:$4 sm:$0xff]  }
 0x3d4   :  { %v11757_v35 = vld [vmem:[#allocation11 + $0x120] ss:$48 sps:$4 sm:$0xff]  }
 0x3d5   :  { %6546 = vmatpush1.bf16.msra.mxu0 %v11697_v36  ;;  %v11760_v36 = vld [vmem:[#allocation11 + $0x720] ss:$48 sps:$4 sm:$0xff]  }
 0x3d6   :  { %6571 = vmatpush1.bf16.msra.mxu1 %v11700_v37  ;;  %6547 = vmatprep.subr.bf16.mxu0 %v11705_v40  ;;  %v11765_v37 = vld [vmem:[#allocation11 + $0x184] ss:$48 sps:$4 sm:$0xff]  }
 0x3d7   :  { %6572 = vmatprep.subr.bf16.mxu1 %v11708_v41  ;;  %v11768_v40 = vld [vmem:[#allocation11 + $0x784] ss:$48 sps:$4 sm:$0xff]   ;;  %v11763_v41 = vld [vmem:[#allocation11 + $0x180] ss:$48 sps:$4 sm:$0xff]  }
 0x3d9   :  { %6548 = vmatpush1.bf16.msra.mxu0 %v11703_v44  ;;  %v11766_v44 = vld [vmem:[#allocation11 + $0x780] ss:$48 sps:$4 sm:$0xff]  }
 0x3da   :  { %6573 = vmatpush1.bf16.msra.mxu1 %v11706_v46  ;;  %6549 = vmatprep.subr.bf16.mxu0 %v11711_v52  ;;  %v11771_v46 = vld [vmem:[#allocation11 + $0x1e4] ss:$48 sps:$4 sm:$0xff]  }
 0x3db   :  { %6574 = vmatprep.subr.bf16.mxu1 %v11714_v53  ;;  %v11774_v52 = vld [vmem:[#allocation11 + $0x7e4] ss:$48 sps:$4 sm:$0xff]   ;;  %v11769_v53 = vld [vmem:[#allocation11 + $0x1e0] ss:$48 sps:$4 sm:$0xff]  }
 0x3dd   :  { %6550 = vmatpush1.bf16.msra.mxu0 %v11709_v38  ;;  %v11772_v38 = vld [vmem:[#allocation11 + $0x7e0] ss:$48 sps:$4 sm:$0xff]  }
 0x3de   :  { %6575 = vmatpush1.bf16.msra.mxu1 %v11712_v54  ;;  %6551 = vmatprep.subr.bf16.mxu0 %v11717_v42  ;;  %v11777_v54 = vld [vmem:[#allocation11 + $0x244] ss:$48 sps:$4 sm:$0xff]  }
 0x3df   :  { %6576 = vmatprep.subr.bf16.mxu1 %v11720_v8  ;;  %v11780_v42 = vld [vmem:[#allocation11 + $0x844] ss:$48 sps:$4 sm:$0xff]  }
 0x3e1   :  { %6552 = vmatpush1.bf16.msra.mxu0 %v11715_v58 }
 0x3e2   :  { %6577 = vmatpush1.bf16.msra.mxu1 %v11718_v59  ;;  %6553 = vmatprep.subr.bf16.mxu0 %v11723_v22  ;;  %v6611_v22 = vcombine.high %v12713_v13, %v12713_v13  ;;  %v11796_v13 = vld [vmem:[#allocation11 + $0x364] ss:$48 sps:$4 sm:$0xff]  }
 0x3e3   :  { %6578 = vmatprep.subr.bf16.mxu1 %v11726_v60  ;;  %v6233_v0 = vpop.f32.mrb[40].mxu0 }
 0x3e4   :  { %v12708_v1 = vadd.f32 %v6233_v0, %v12701_v19  ;;  %v6235_v2 = vpop.f32.mrb[41].mxu0  ;;  %v11744_v19 = vld [vmem:[#allocation11 + $0x604] ss:$48 sps:$4 sm:$0xff]  }
 0x3e5   :  { %v12711_v6 = vadd.f32 %v6235_v2, %v12703_v16  ;;  %v6237_v62 = vpop.f32.mrb[42].mxu0  ;;  %6554 = vmatpush1.bf16.msra.mxu0 %v11721_v25  ;;  %v11750_v16 = vld [vmem:[#allocation11 + $0x664] ss:$48 sps:$4 sm:$0xff]  }
 0x3e6   :  { %6579 = vmatpush1.bf16.msra.mxu1 %v11724_v61  ;;  %v6238_v12 = vpop.f32.mrb[43].mxu0  ;;  %6555 = vmatprep.subr.bf16.mxu0 %v11729_v21  ;;  %v11775_v61 = vld [vmem:[#allocation11 + $0x240] ss:$48 sps:$4 sm:$0xff]   ;;  %v11783_v0 = vld [vmem:[#allocation11 + $0x2a4] ss:$48 sps:$4 sm:$0xff]  }
 0x3e7   :  { %6580 = vmatprep.subr.bf16.mxu1 %v11732_v63  ;;  %v11778_v21 = vld [vmem:[#allocation11 + $0x840] ss:$48 sps:$4 sm:$0xff]   ;;  %v11786_v2 = vld [vmem:[#allocation11 + $0x8a4] ss:$48 sps:$4 sm:$0xff]  }
 0x3e8   :  { %v11784_v62 = vld [vmem:[#allocation11 + $0x8a0] ss:$48 sps:$4 sm:$0xff]  }
 0x3e9   :  { %6556 = vmatpush1.bf16.msra.mxu0 %v11727_v5  ;;  %v11781_v5 = vld [vmem:[#allocation11 + $0x2a0] ss:$48 sps:$4 sm:$0xff]  }
 0x3ea   :  { %6581 = vmatpush1.bf16.msra.mxu1 %v11730_v3  ;;  %6557 = vmatprep.subr.bf16.mxu0 %v11735_v10  ;;  %v11793_v3 = vld [vmem:[#allocation11 + $0xc] ss:$48 sps:$4 sm:$0xff]   ;;  %v11787_v12 = vld [vmem:[#allocation11 + $0x300] ss:$48 sps:$4 sm:$0xff]  }
 0x3eb   :  { %6582 = vmatprep.subr.bf16.mxu1 %v11738_v4  ;;  %v11791_v4 = vld [vmem:[#allocation11 + $0x8] ss:$48 sps:$4 sm:$0xff]  }
 0x3ed   :  { %6558 = vmatpush1.bf16.msra.mxu0 %v11733_v20  ;;  %v11799_v20 = vld [vmem:[#allocation11 + $0x6c] ss:$48 sps:$4 sm:$0xff]  }
 0x3ee   :  { %6583 = vmatpush1.bf16.msra.mxu1 %v11736_v15  ;;  %8361 = vmatprep.subr.bf16.mxu0 %v11741_v18  ;;  %v11797_v15 = vld [vmem:[#allocation11 + $0x68] ss:$48 sps:$4 sm:$0xff]   ;;  %v11802_v18 = vld [vmem:[#allocation11 + $0x3c4] ss:$48 sps:$4 sm:$0xff]  }
 0x3ef   :  { %8402 = vmatprep.subr.bf16.mxu1 %v11744_v19  ;;  %v11805_v19 = vld [vmem:[#allocation11 + $0xcc] ss:$48 sps:$4 sm:$0xff]  }
 0x3f0   :  { %6560 = vmatmul.mubr.bf16.vlgmr.msra.gmra.mrb[56].mxu0 %v12632_v39  ;;  %v11759_v39 = vld [vmem:[#allocation11 + $0x124] ss:$48 sps:$4 sm:$0xff]  }
 0x3f1   :  { %6601 = vmatmul.mubr.bf16.vlgmr.msra.gmra.mrb[56].mxu1 %v12642_v32  ;;  %8362 = vmatpush1.bf16.msra.mxu0 %v11739_v26  ;;  %v11762_v32 = vld [vmem:[#allocation11 + $0x724] ss:$48 sps:$4 sm:$0xff]   ;;  %v11803_v26 = vld [vmem:[#allocation11 + $0xc8] ss:$48 sps:$4 sm:$0xff]  }
 0x3f2   :  { %8403 = vmatpush1.bf16.msra.mxu1 %v11742_v28  ;;  %8363 = vmatprep.subr.bf16.mxu0 %v11747_v29  ;;  %v11808_v28 = vld [vmem:[#allocation11 + $0x424] ss:$48 sps:$4 sm:$0xff]   ;;  %v11811_v29 = vld [vmem:[#allocation11 + $0x12c] ss:$48 sps:$4 sm:$0xff]  }
 0x3f3   :  { %8404 = vmatprep.subr.bf16.mxu1 %v11750_v16  ;;  %8434 = vmatprep.mubr.bf16.mxu1 %v12393_v48  ;;  %v11806_v16 = vld [vmem:[#allocation11 + $0x420] ss:$48 sps:$4 sm:$0xff]  }
 0x3f4   :  { %8393 = vmatprep.mubr.bf16.mxu0 %v12721_v47 }
 0x3f5   :  { %8364 = vmatpush1.bf16.msra.mxu0 %v11745_v51  ;;  %v11809_v51 = vld [vmem:[#allocation11 + $0x128] ss:$48 sps:$4 sm:$0xff]  }
 0x3f6   :  { %8405 = vmatpush1.bf16.msra.mxu1 %v11748_v17  ;;  %8365 = vmatprep.subr.bf16.mxu0 %v11753_v30  ;;  %v11814_v17 = vld [vmem:[#allocation11 + $0x484] ss:$48 sps:$4 sm:$0xff]   ;;  %v11817_v30 = vld [vmem:[#allocation11 + $0x18c] ss:$48 sps:$4 sm:$0xff]  }
 0x3f7   :  { %8406 = vmatprep.subr.bf16.mxu1 %v11756_v31  ;;  %v11812_v31 = vld [vmem:[#allocation11 + $0x480] ss:$48 sps:$4 sm:$0xff]  }
 0x3f9   :  { %8366 = vmatpush1.bf16.msra.mxu0 %v11751_v33  ;;  %v11815_v33 = vld [vmem:[#allocation11 + $0x188] ss:$48 sps:$4 sm:$0xff]  }
 0x3fa   :  { %8407 = vmatpush1.bf16.msra.mxu1 %v11754_v34  ;;  %8367 = vmatprep.subr.bf16.mxu0 %v11759_v39  ;;  %v11820_v34 = vld [vmem:[#allocation11 + $0x4e4] ss:$48 sps:$4 sm:$0xff]   ;;  %v11823_v39 = vld [vmem:[#allocation11 + $0x1ec] ss:$48 sps:$4 sm:$0xff]  }
 0x3fb   :  { %8408 = vmatprep.subr.bf16.mxu1 %v11762_v32  ;;  %v11818_v32 = vld [vmem:[#allocation11 + $0x4e0] ss:$48 sps:$4 sm:$0xff]  }
 0x3fd   :  { %8368 = vmatpush1.bf16.msra.mxu0 %v11757_v35  ;;  %v11821_v35 = vld [vmem:[#allocation11 + $0x1e8] ss:$48 sps:$4 sm:$0xff]  }
 0x3fe   :  { %8409 = vmatpush1.bf16.msra.mxu1 %v11760_v36  ;;  %8369 = vmatprep.subr.bf16.mxu0 %v11765_v37  ;;  %v11826_v36 = vld [vmem:[#allocation11 + $0x544] ss:$48 sps:$4 sm:$0xff]   ;;  %v11829_v37 = vld [vmem:[#allocation11 + $0x24c] ss:$48 sps:$4 sm:$0xff]  }
 0x3ff   :  { %8410 = vmatprep.subr.bf16.mxu1 %v11768_v40 }
 0x401   :  { %8370 = vmatpush1.bf16.msra.mxu0 %v11763_v41 }
 0x402   :  { %8411 = vmatpush1.bf16.msra.mxu1 %v11766_v44  ;;  %8371 = vmatprep.subr.bf16.mxu0 %v11771_v46 }
 0x403   :  { %8412 = vmatprep.subr.bf16.mxu1 %v11774_v52 }
 0x404   :  { %v6274_v8 = vpop.f32.mrb[40].mxu1 }
 0x405   :  { %v12728_v58 = vadd.f32 %v6274_v8, %v12638_v11  ;;  %v6276_v59 = vpop.f32.mrb[41].mxu1  ;;  %8372 = vmatpush1.bf16.msra.mxu0 %v11769_v53  ;;  %v6625_v11 = vrot.slane %v6611_v22, %v12562_v49  ;;  %v11794_v49 = vld [vmem:[#allocation11 + $0x360] ss:$48 sps:$4 sm:$0xff]   ;;  %v11827_v8 = vld [vmem:[#allocation11 + $0x248] ss:$48 sps:$4 sm:$0xff]  }
 0x406   :  { %v12733_v60 = vadd.f32 %v6276_v59, %v12640_v14  ;;  %v6278_v25 = vpop.f32.mrb[42].mxu1  ;;  %8413 = vmatpush1.bf16.msra.mxu1 %v11772_v38  ;;  %8373 = vmatprep.subr.bf16.mxu0 %v11777_v54  ;;  %v11789_v14 = vld [vmem:[#allocation11 + $0x304] ss:$48 sps:$4 sm:$0xff]  }
 0x407   :  { %v6279_v63 = vpop.f32.mrb[43].mxu1  ;;  %8414 = vmatprep.subr.bf16.mxu1 %v11780_v42  ;;  %v12736_v10 = vpack.c.bf16 %v6625_v11, %v6625_v11  ;;  %v11824_v42 = vld [vmem:[#allocation11 + $0x540] ss:$48 sps:$4 sm:$0xff]   ;;  %v12748_v11 = vpack.c.bf16 %v12717_v7, %v12717_v7  ;;  %v11848_v7 = vld [vmem:[#allocation11 + $0x3c8] ss:$48 sps:$4 sm:$0xff]  }
 0x409   :  { %8374 = vmatpush1.bf16.msra.mxu0 %v11775_v61  ;;  %v11832_v61 = vld [vmem:[#allocation11 + $0x5a4] ss:$48 sps:$4 sm:$0xff]  }
 0x40a   :  { %8415 = vmatpush1.bf16.msra.mxu1 %v11778_v21  ;;  %8375 = vmatprep.subr.bf16.mxu0 %v11783_v0  ;;  %v11835_v21 = vld [vmem:[#allocation11 + $0x2ac] ss:$48 sps:$4 sm:$0xff]  }
 0x40b   :  { %8416 = vmatprep.subr.bf16.mxu1 %v11786_v2  ;;  %v11838_v0 = vld [vmem:[#allocation11 + $0x30c] ss:$48 sps:$4 sm:$0xff]  }
 0x40c   :  { %v11841_v2 = vld [vmem:[#allocation11 + $0x60c] ss:$48 sps:$4 sm:$0xff]  }
 0x40d   :  { %8376 = vmatpush1.bf16.msra.mxu0 %v11781_v5  ;;  %v11836_v5 = vld [vmem:[#allocation11 + $0x308] ss:$48 sps:$4 sm:$0xff]  }
 0x40e   :  { %8417 = vmatpush1.bf16.msra.mxu1 %v11784_v62  ;;  %8377 = vmatprep.subr.bf16.mxu0 %v11789_v14  ;;  %v11839_v62 = vld [vmem:[#allocation11 + $0x608] ss:$48 sps:$4 sm:$0xff]   ;;  %v11844_v14 = vld [vmem:[#allocation11 + $0x36c] ss:$48 sps:$4 sm:$0xff]  }
 0x40f   :  { %8443 = vmatprep.subr.bf16.mxu1 %v11793_v3  ;;  %v11847_v3 = vld [vmem:[#allocation11 + $0x66c] ss:$48 sps:$4 sm:$0xff]  }
 0x411   :  { %8435 = vmatmul.mubr.bf16.vlgmr.msra.gmra.mrb[60].mxu1 %v12736_v10  ;;  %8378 = vmatpush1.bf16.msra.mxu0 %v11787_v12  ;;  %v11842_v12 = vld [vmem:[#allocation11 + $0x368] ss:$48 sps:$4 sm:$0xff]  }
 0x412   :  { %8444 = vmatpush1.bf16.msra.mxu1 %v11791_v4  ;;  %8379 = vmatprep.subr.bf16.mxu0 %v11796_v13  ;;  %v11845_v4 = vld [vmem:[#allocation11 + $0x668] ss:$48 sps:$4 sm:$0xff]   ;;  %v11850_v13 = vld [vmem:[#allocation11 + $0x3cc] ss:$48 sps:$4 sm:$0xff]  }
 0x413   :  { %8445 = vmatprep.subr.bf16.mxu1 %v11799_v20  ;;  %8475 = vmatprep.mubr.bf16.mxu1 %v12721_v47  ;;  %v11853_v20 = vld [vmem:[#allocation11 + $0x6cc] ss:$48 sps:$4 sm:$0xff]  }
 0x415   :  { %8380 = vmatpush1.bf16.msra.mxu0 %v11794_v49  ;;  %v11851_v49 = vld [vmem:[#allocation11 + $0x6c8] ss:$48 sps:$4 sm:$0xff]  }
 0x416   :  { %8446 = vmatpush1.bf16.msra.mxu1 %v11797_v15  ;;  %8381 = vmatprep.subr.bf16.mxu0 %v11802_v18  ;;  %v11856_v15 = vld [vmem:[#allocation11 + $0x42c] ss:$48 sps:$4 sm:$0xff]  }
 0x417   :  { %8447 = vmatprep.subr.bf16.mxu1 %v11805_v19  ;;  %v11859_v18 = vld [vmem:[#allocation11 + $0x72c] ss:$48 sps:$4 sm:$0xff]   ;;  %v11854_v19 = vld [vmem:[#allocation11 + $0x428] ss:$48 sps:$4 sm:$0xff]  }
 0x419   :  { %8382 = vmatpush1.bf16.msra.mxu0 %v11800_v24  ;;  %v11857_v24 = vld [vmem:[#allocation11 + $0x728] ss:$48 sps:$4 sm:$0xff]  }
 0x41a   :  { %8448 = vmatpush1.bf16.msra.mxu1 %v11803_v26  ;;  %8383 = vmatprep.subr.bf16.mxu0 %v11808_v28  ;;  %v11862_v26 = vld [vmem:[#allocation11 + $0x48c] ss:$48 sps:$4 sm:$0xff]  }
 0x41b   :  { %8449 = vmatprep.subr.bf16.mxu1 %v11811_v29  ;;  %v11865_v28 = vld [vmem:[#allocation11 + $0x78c] ss:$48 sps:$4 sm:$0xff]   ;;  %v11860_v29 = vld [vmem:[#allocation11 + $0x488] ss:$48 sps:$4 sm:$0xff]  }
 0x41d   :  { %8384 = vmatpush1.bf16.msra.mxu0 %v11806_v16  ;;  %v11863_v16 = vld [vmem:[#allocation11 + $0x788] ss:$48 sps:$4 sm:$0xff]  }
 0x41e   :  { %8450 = vmatpush1.bf16.msra.mxu1 %v11809_v51  ;;  %8385 = vmatprep.subr.bf16.mxu0 %v11814_v17  ;;  %v11868_v51 = vld [vmem:[#allocation11 + $0x4ec] ss:$48 sps:$4 sm:$0xff]  }
 0x41f   :  { %8451 = vmatprep.subr.bf16.mxu1 %v11817_v30  ;;  %v11871_v17 = vld [vmem:[#allocation11 + $0x7ec] ss:$48 sps:$4 sm:$0xff]   ;;  %v11866_v30 = vld [vmem:[#allocation11 + $0x4e8] ss:$48 sps:$4 sm:$0xff]  }
 0x421   :  { %8386 = vmatpush1.bf16.msra.mxu0 %v11812_v31  ;;  %v11869_v31 = vld [vmem:[#allocation11 + $0x7e8] ss:$48 sps:$4 sm:$0xff]  }
 0x422   :  { %8452 = vmatpush1.bf16.msra.mxu1 %v11815_v33  ;;  %8387 = vmatprep.subr.bf16.mxu0 %v11820_v34  ;;  %v11874_v33 = vld [vmem:[#allocation11 + $0x54c] ss:$48 sps:$4 sm:$0xff]  }
 0x423   :  { %8453 = vmatprep.subr.bf16.mxu1 %v11823_v39  ;;  %v6315_v40 = vpop.f32.mrb[44].mxu0  ;;  %v11877_v34 = vld [vmem:[#allocation11 + $0x84c] ss:$48 sps:$4 sm:$0xff]   ;;  %v11872_v39 = vld [vmem:[#allocation11 + $0x548] ss:$48 sps:$4 sm:$0xff]  }
 0x424   :  { %v6356_v41 = vpop.f32.mrb[44].mxu1  ;;  %v6316_v44 = vadd.f32 %v6315_v40, %v12728_v58  ;;  %v6317_v46 = vpop.f32.mrb[45].mxu0  ;;  %v11830_v58 = vld [vmem:[#allocation11 + $0x5a0] ss:$48 sps:$4 sm:$0xff]   ;;  %v11881_v40 = vld [vmem:[#allocation11 + $0x8a8] ss:$48 sps:$4 sm:$0xff]  }
 0x425   :  { %v6358_v52 = vpop.f32.mrb[45].mxu1  ;;  %v6318_v53 = vadd.f32 %v6317_v46, %v12733_v60  ;;  %v6319_v38 = vpop.f32.mrb[46].mxu0  ;;  %8388 = vmatpush1.bf16.msra.mxu0 %v11818_v32  ;;  %v11833_v60 = vld [vmem:[#allocation11 + $0x2a8] ss:$48 sps:$4 sm:$0xff]   ;;  %v11884_v46 = vld [vmem:[#allocation11 + $0x10] ss:$48 sps:$4 sm:$0xff]  }
 0x426   :  { %v6360_v54 = vpop.f32.mrb[46].mxu1  ;;  %8454 = vmatpush1.bf16.msra.mxu1 %v11821_v35  ;;  %v12742_v59 = vadd.f32 %v6356_v41, %v6316_v44  ;;  %v6320_v22 = vpop.f32.mrb[47].mxu0  ;;  %8389 = vmatprep.subr.bf16.mxu0 %v11826_v36  ;;  %v11875_v32 = vld [vmem:[#allocation11 + $0x848] ss:$48 sps:$4 sm:$0xff]   ;;  %v11880_v35 = vld [vmem:[#allocation11 + $0x5ac] ss:$48 sps:$4 sm:$0xff]  }
 0x427   :  { %v6361_v25 = vpop.f32.mrb[47].mxu1  ;;  %8455 = vmatprep.subr.bf16.mxu1 %v11829_v37  ;;  %v12744_v63 = vadd.f32 %v6358_v52, %v6318_v53  ;;  %v11883_v36 = vld [vmem:[#allocation11 + $0x8ac] ss:$48 sps:$4 sm:$0xff]   ;;  %v11878_v37 = vld [vmem:[#allocation11 + $0x5a8] ss:$48 sps:$4 sm:$0xff]  }
 0x428   :  { %v11886_v41 = vld [vmem:[#allocation11 + $0x14] ss:$48 sps:$4 sm:$0xff]   ;;  %v11887_v52 = vld [vmem:[#allocation11 + $0x610] ss:$48 sps:$4 sm:$0xff]  }
 0x429   :  { %8390 = vmatpush1.bf16.msra.mxu0 %v11824_v42  ;;  %v11889_v44 = vld [vmem:[#allocation11 + $0x614] ss:$48 sps:$4 sm:$0xff]   ;;  %v11890_v54 = vld [vmem:[#allocation11 + $0x70] ss:$48 sps:$4 sm:$0xff]  }
 0x42a   :  { %8456 = vmatpush1.bf16.msra.mxu1 %v11827_v8  ;;  %8391 = vmatprep.subr.bf16.mxu0 %v11832_v61  ;;  %v11892_v53 = vld [vmem:[#allocation11 + $0x74] ss:$48 sps:$4 sm:$0xff]   ;;  %v11893_v42 = vld [vmem:[#allocation11 + $0x670] ss:$48 sps:$4 sm:$0xff]  }
 0x42b   :  { %8457 = vmatprep.subr.bf16.mxu1 %v11835_v21  ;;  %v11895_v38 = vld [vmem:[#allocation11 + $0x674] ss:$48 sps:$4 sm:$0xff]   ;;  %v11896_v25 = vld [vmem:[#allocation11 + $0xd0] ss:$48 sps:$4 sm:$0xff]  }
 0x42c   :  { %v11898_v8 = vld [vmem:[#allocation11 + $0xd4] ss:$48 sps:$4 sm:$0xff]   ;;  %v11899_v61 = vld [vmem:[#allocation11 + $0x6d0] ss:$48 sps:$4 sm:$0xff]  }
 0x42d   :  { %8392 = vmatpush1.bf16.msra.mxu0 %v11830_v58  ;;  %v11901_v22 = vld [vmem:[#allocation11 + $0x6d4] ss:$48 sps:$4 sm:$0xff]  }
 0x42e   :  { %8458 = vmatpush1.bf16.msra.mxu1 %v11833_v60  ;;  %8484 = vmatprep.subr.bf16.mxu0 %v11841_v2  ;;  %v11904_v21 = vld [vmem:[#allocation11 + $0x134] ss:$48 sps:$4 sm:$0xff]   ;;  %v11902_v60 = vld [vmem:[#allocation11 + $0x130] ss:$48 sps:$4 sm:$0xff]  }
 0x42f   :  { %8459 = vmatprep.subr.bf16.mxu1 %v11838_v0  ;;  %v11907_v58 = vld [vmem:[#allocation11 + $0x734] ss:$48 sps:$4 sm:$0xff]   ;;  %v11905_v0 = vld [vmem:[#allocation11 + $0x730] ss:$48 sps:$4 sm:$0xff]  }
 0x430   :  { %8394 = vmatmul.mubr.bf16.vlgmr.msra.gmra.mrb[60].mxu0 %v12748_v11  ;;  %v11910_v2 = vld [vmem:[#allocation11 + $0x194] ss:$48 sps:$4 sm:$0xff]  }
 0x431   :  { %8485 = vmatpush1.bf16.msra.mxu0 %v11839_v62  ;;  %8516 = vmatprep.mubr.bf16.mxu0 %v12393_v48  ;;  %v11908_v62 = vld [vmem:[#allocation11 + $0x190] ss:$48 sps:$4 sm:$0xff]  }
 0x432   :  { %8460 = vmatpush1.bf16.msra.mxu1 %v11836_v5  ;;  %8486 = vmatprep.subr.bf16.mxu0 %v11847_v3  ;;  %v11913_v5 = vld [vmem:[#allocation11 + $0x794] ss:$48 sps:$4 sm:$0xff]  }
 0x433   :  { %8461 = vmatprep.subr.bf16.mxu1 %v11844_v14  ;;  %v11911_v14 = vld [vmem:[#allocation11 + $0x790] ss:$48 sps:$4 sm:$0xff]   ;;  %v11916_v3 = vld [vmem:[#allocation11 + $0x1f4] ss:$48 sps:$4 sm:$0xff]  }
 0x435   :  { %8487 = vmatpush1.bf16.msra.mxu0 %v11845_v4  ;;  %v11914_v4 = vld [vmem:[#allocation11 + $0x1f0] ss:$48 sps:$4 sm:$0xff]  }
 0x436   :  { %8462 = vmatpush1.bf16.msra.mxu1 %v11842_v12  ;;  %8488 = vmatprep.subr.bf16.mxu0 %v11853_v20  ;;  %v11919_v12 = vld [vmem:[#allocation11 + $0x7f4] ss:$48 sps:$4 sm:$0xff]  }
 0x437   :  { %8463 = vmatprep.subr.bf16.mxu1 %v11850_v13  ;;  %v11917_v13 = vld [vmem:[#allocation11 + $0x7f0] ss:$48 sps:$4 sm:$0xff]   ;;  %v11922_v20 = vld [vmem:[#allocation11 + $0x254] ss:$48 sps:$4 sm:$0xff]  }
 0x439   :  { %8489 = vmatpush1.bf16.msra.mxu0 %v11851_v49 }
 0x43a   :  { %8464 = vmatpush1.bf16.msra.mxu1 %v11848_v7  ;;  %8490 = vmatprep.subr.bf16.mxu0 %v11859_v18  ;;  %v11925_v7 = vld [vmem:[#allocation11 + $0x854] ss:$48 sps:$4 sm:$0xff]  }
 0x43b   :  { %8465 = vmatprep.subr.bf16.mxu1 %v11856_v15 }
 0x43d   :  { %8491 = vmatpush1.bf16.msra.mxu0 %v11857_v24 }
 0x43e   :  { %8466 = vmatpush1.bf16.msra.mxu1 %v11854_v19  ;;  %8492 = vmatprep.subr.bf16.mxu0 %v11865_v28 }
 0x43f   :  { %8467 = vmatprep.subr.bf16.mxu1 %v11862_v26 }
 0x441   :  { %8493 = vmatpush1.bf16.msra.mxu0 %v11863_v16  ;;  %v11920_v16 = vld [vmem:[#allocation11 + $0x250] ss:$48 sps:$4 sm:$0xff]  }
 0x442   :  { %8468 = vmatpush1.bf16.msra.mxu1 %v11860_v29  ;;  %8494 = vmatprep.subr.bf16.mxu0 %v11871_v17 }
 0x443   :  { %8469 = vmatprep.subr.bf16.mxu1 %v11868_v51  ;;  %v11923_v51 = vld [vmem:[#allocation11 + $0x850] ss:$48 sps:$4 sm:$0xff]  }
 0x445   :  { %8495 = vmatpush1.bf16.msra.mxu0 %v11869_v31 }
 0x446   :  { %8470 = vmatpush1.bf16.msra.mxu1 %v11866_v30  ;;  %8496 = vmatprep.subr.bf16.mxu0 %v11877_v34  ;;  %v11931_v34 = vld [vmem:[#allocation11 + $0x8b4] ss:$48 sps:$4 sm:$0xff]  }
 0x447   :  { %8471 = vmatprep.subr.bf16.mxu1 %v11874_v33  ;;  %v11928_v33 = vld [vmem:[#allocation11 + $0x2b4] ss:$48 sps:$4 sm:$0xff]  }
 0x449   :  { %8497 = vmatpush1.bf16.msra.mxu0 %v11875_v32  ;;  %v11929_v32 = vld [vmem:[#allocation11 + $0x8b0] ss:$48 sps:$4 sm:$0xff]  }
 0x44a   :  { %8472 = vmatpush1.bf16.msra.mxu1 %v11872_v39  ;;  %8498 = vmatprep.subr.bf16.mxu0 %v11883_v36  ;;  %v11932_v36 = vld [vmem:[#allocation11 + $0x310] ss:$48 sps:$4 sm:$0xff]  }
 0x44b   :  { %8473 = vmatprep.subr.bf16.mxu1 %v11880_v35  ;;  %v11937_v35 = vld [vmem:[#allocation11 + $0x1c] ss:$48 sps:$4 sm:$0xff]  }
 0x44d   :  { %8499 = vmatpush1.bf16.msra.mxu0 %v11881_v40  ;;  %v11940_v40 = vld [vmem:[#allocation11 + $0x374] ss:$48 sps:$4 sm:$0xff]  }
 0x44e   :  { %8474 = vmatpush1.bf16.msra.mxu1 %v11878_v37  ;;  %8525 = vmatprep.subr.bf16.mxu0 %v11886_v41  ;;  %v11935_v37 = vld [vmem:[#allocation11 + $0x18] ss:$48 sps:$4 sm:$0xff]   ;;  %v11943_v41 = vld [vmem:[#allocation11 + $0x7c] ss:$48 sps:$4 sm:$0xff]  }
 0x44f   :  { %8566 = vmatprep.subr.bf16.mxu1 %v11889_v44  ;;  %v11938_v44 = vld [vmem:[#allocation11 + $0x370] ss:$48 sps:$4 sm:$0xff]  }
 0x450   :  { %8517 = vmatmul.mubr.bf16.vlgmr.msra.gmra.mrb[64].mxu0 %v12736_v10 }
 0x451   :  { %8476 = vmatmul.mubr.bf16.vlgmr.msra.gmra.mrb[64].mxu1 %v12748_v11  ;;  %8526 = vmatpush1.bf16.msra.mxu0 %v11884_v46  ;;  %v11941_v46 = vld [vmem:[#allocation11 + $0x78] ss:$48 sps:$4 sm:$0xff]  }
 0x452   :  { %8567 = vmatpush1.bf16.msra.mxu1 %v11887_v52  ;;  %8527 = vmatprep.subr.bf16.mxu0 %v11892_v53  ;;  %v11946_v52 = vld [vmem:[#allocation11 + $0x3d4] ss:$48 sps:$4 sm:$0xff]   ;;  %v11949_v53 = vld [vmem:[#allocation11 + $0xdc] ss:$48 sps:$4 sm:$0xff]  }
 0x453   :  { %8568 = vmatprep.subr.bf16.mxu1 %v11895_v38  ;;  %8598 = vmatprep.mubr.bf16.mxu1 %v12393_v48  ;;  %v11944_v38 = vld [vmem:[#allocation11 + $0x3d0] ss:$48 sps:$4 sm:$0xff]  }
 0x454   :  { %8557 = vmatprep.mubr.bf16.mxu0 %v12721_v47 }
 0x455   :  { %8528 = vmatpush1.bf16.msra.mxu0 %v11890_v54  ;;  %v11947_v54 = vld [vmem:[#allocation11 + $0xd8] ss:$48 sps:$4 sm:$0xff]  }
 0x456   :  { %8569 = vmatpush1.bf16.msra.mxu1 %v11893_v42  ;;  %8529 = vmatprep.subr.bf16.mxu0 %v11898_v8  ;;  %v11952_v42 = vld [vmem:[#allocation11 + $0x434] ss:$48 sps:$4 sm:$0xff]   ;;  %v11955_v8 = vld [vmem:[#allocation11 + $0x13c] ss:$48 sps:$4 sm:$0xff]  }
 0x457   :  { %8570 = vmatprep.subr.bf16.mxu1 %v11901_v22  ;;  %v11950_v22 = vld [vmem:[#allocation11 + $0x430] ss:$48 sps:$4 sm:$0xff]  }
 0x459   :  { %8530 = vmatpush1.bf16.msra.mxu0 %v11896_v25  ;;  %v11953_v25 = vld [vmem:[#allocation11 + $0x138] ss:$48 sps:$4 sm:$0xff]  }
 0x45a   :  { %8571 = vmatpush1.bf16.msra.mxu1 %v11899_v61  ;;  %8531 = vmatprep.subr.bf16.mxu0 %v11904_v21  ;;  %v11958_v61 = vld [vmem:[#allocation11 + $0x494] ss:$48 sps:$4 sm:$0xff]   ;;  %v11961_v21 = vld [vmem:[#allocation11 + $0x19c] ss:$48 sps:$4 sm:$0xff]  }
 0x45b   :  { %8572 = vmatprep.subr.bf16.mxu1 %v11907_v58  ;;  %v11956_v58 = vld [vmem:[#allocation11 + $0x490] ss:$48 sps:$4 sm:$0xff]  }
 0x45d   :  { %8532 = vmatpush1.bf16.msra.mxu0 %v11902_v60  ;;  %v11959_v60 = vld [vmem:[#allocation11 + $0x198] ss:$48 sps:$4 sm:$0xff]  }
 0x45e   :  { %8573 = vmatpush1.bf16.msra.mxu1 %v11905_v0  ;;  %8533 = vmatprep.subr.bf16.mxu0 %v11910_v2  ;;  %v11964_v0 = vld [vmem:[#allocation11 + $0x4f4] ss:$48 sps:$4 sm:$0xff]   ;;  %v11967_v2 = vld [vmem:[#allocation11 + $0x1fc] ss:$48 sps:$4 sm:$0xff]  }
 0x45f   :  { %8574 = vmatprep.subr.bf16.mxu1 %v11913_v5  ;;  %v11962_v5 = vld [vmem:[#allocation11 + $0x4f0] ss:$48 sps:$4 sm:$0xff]  }
 0x461   :  { %8534 = vmatpush1.bf16.msra.mxu0 %v11908_v62  ;;  %v11965_v62 = vld [vmem:[#allocation11 + $0x1f8] ss:$48 sps:$4 sm:$0xff]  }
 0x462   :  { %8575 = vmatpush1.bf16.msra.mxu1 %v11911_v14  ;;  %8535 = vmatprep.subr.bf16.mxu0 %v11916_v3  ;;  %v11970_v14 = vld [vmem:[#allocation11 + $0x554] ss:$48 sps:$4 sm:$0xff]   ;;  %v11973_v3 = vld [vmem:[#allocation11 + $0x25c] ss:$48 sps:$4 sm:$0xff]  }
 0x463   :  { %8576 = vmatprep.subr.bf16.mxu1 %v11919_v12  ;;  %v6397_v49 = vpop.f32.mrb[48].mxu0 }
 0x464   :  { %v6438_v15 = vpop.f32.mrb[48].mxu1  ;;  %v6398_v18 = vadd.f32 %v6397_v49, %v12648_v45  ;;  %v6399_v19 = vpop.f32.mrb[49].mxu0  ;;  %v11926_v45 = vld [vmem:[#allocation11 + $0x2b0] ss:$48 sps:$4 sm:$0xff]  }
 0x465   :  { %v6440_v24 = vpop.f32.mrb[49].mxu1  ;;  %v6400_v26 = vadd.f32 %v6399_v19, %v12650_v50  ;;  %v6401_v28 = vpop.f32.mrb[50].mxu0  ;;  %8536 = vmatpush1.bf16.msra.mxu0 %v11914_v4  ;;  %v11934_v50 = vld [vmem:[#allocation11 + $0x314] ss:$48 sps:$4 sm:$0xff]   ;;  %v11968_v49 = vld [vmem:[#allocation11 + $0x550] ss:$48 sps:$4 sm:$0xff]  }
 0x466   :  { %v6442_v29 = vpop.f32.mrb[50].mxu1  ;;  %8577 = vmatpush1.bf16.msra.mxu1 %v11917_v13  ;;  %v12758_v17 = vadd.f32 %v6438_v15, %v6398_v18  ;;  %v6402_v30 = vpop.f32.mrb[51].mxu0  ;;  %8537 = vmatprep.subr.bf16.mxu0 %v11922_v20  ;;  %v11971_v15 = vld [vmem:[#allocation11 + $0x258] ss:$48 sps:$4 sm:$0xff]   ;;  %v11976_v19 = vld [vmem:[#allocation11 + $0x5b4] ss:$48 sps:$4 sm:$0xff]  }
 0x467   :  { %v6443_v31 = vpop.f32.mrb[51].mxu1  ;;  %8578 = vmatprep.subr.bf16.mxu1 %v11925_v7  ;;  %v6441_v39 = vadd.f32 %v6440_v24, %v6400_v26  ;;  %v11979_v24 = vld [vmem:[#allocation11 + $0x2bc] ss:$48 sps:$4 sm:$0xff]   ;;  %v11974_v26 = vld [vmem:[#allocation11 + $0x5b0] ss:$48 sps:$4 sm:$0xff]  }
 0x468   :  { %v11977_v28 = vld [vmem:[#allocation11 + $0x2b8] ss:$48 sps:$4 sm:$0xff]   ;;  %v11982_v29 = vld [vmem:[#allocation11 + $0x31c] ss:$48 sps:$4 sm:$0xff]  }
 0x469   :  { %8538 = vmatpush1.bf16.msra.mxu0 %v11920_v16  ;;  %v11985_v16 = vld [vmem:[#allocation11 + $0x61c] ss:$48 sps:$4 sm:$0xff]  }
 0x46a   :  { %8579 = vmatpush1.bf16.msra.mxu1 %v11923_v51  ;;  %8539 = vmatprep.subr.bf16.mxu0 %v11928_v33  ;;  %v11980_v51 = vld [vmem:[#allocation11 + $0x318] ss:$48 sps:$4 sm:$0xff]   ;;  %v11988_v30 = vld [vmem:[#allocation11 + $0x37c] ss:$48 sps:$4 sm:$0xff]  }
 0x46b   :  { %8580 = vmatprep.subr.bf16.mxu1 %v11931_v34  ;;  %v11991_v31 = vld [vmem:[#allocation11 + $0x67c] ss:$48 sps:$4 sm:$0xff]   ;;  %v11986_v33 = vld [vmem:[#allocation11 + $0x378] ss:$48 sps:$4 sm:$0xff]  }
 0x46c   :  { %v11989_v34 = vld [vmem:[#allocation11 + $0x678] ss:$48 sps:$4 sm:$0xff]  }
 0x46d   :  { %8540 = vmatpush1.bf16.msra.mxu0 %v11926_v45  ;;  %v11997_v45 = vld [vmem:[#allocation11 + $0x6dc] ss:$48 sps:$4 sm:$0xff]  }
 0x46e   :  { %8581 = vmatpush1.bf16.msra.mxu1 %v11929_v32  ;;  %8541 = vmatprep.subr.bf16.mxu0 %v11934_v50  ;;  %v11992_v32 = vld [vmem:[#allocation11 + $0x3d8] ss:$48 sps:$4 sm:$0xff]  }
 0x46f   :  { %8607 = vmatprep.subr.bf16.mxu1 %v11937_v35  ;;  %v11995_v50 = vld [vmem:[#allocation11 + $0x6d8] ss:$48 sps:$4 sm:$0xff]   ;;  %v12000_v35 = vld [vmem:[#allocation11 + $0x43c] ss:$48 sps:$4 sm:$0xff]  }
 0x471   :  { %8599 = vmatmul.mubr.bf16.vlgmr.msra.gmra.mrb[68].mxu1 %v12736_v10  ;;  %8542 = vmatpush1.bf16.msra.mxu0 %v11932_v36  ;;  %v12003_v36 = vld [vmem:[#allocation11 + $0x73c] ss:$48 sps:$4 sm:$0xff]  }
 0x472   :  { %8608 = vmatpush1.bf16.msra.mxu1 %v11935_v37  ;;  %8543 = vmatprep.subr.bf16.mxu0 %v11940_v40  ;;  %v11998_v37 = vld [vmem:[#allocation11 + $0x438] ss:$48 sps:$4 sm:$0xff]  }
 0x473   :  { %8609 = vmatprep.subr.bf16.mxu1 %v11943_v41  ;;  %8639 = vmatprep.mubr.bf16.mxu1 %v12721_v47  ;;  %v12001_v40 = vld [vmem:[#allocation11 + $0x738] ss:$48 sps:$4 sm:$0xff]   ;;  %v12006_v41 = vld [vmem:[#allocation11 + $0x49c] ss:$48 sps:$4 sm:$0xff]  }
 0x475   :  { %8544 = vmatpush1.bf16.msra.mxu0 %v11938_v44  ;;  %v12009_v44 = vld [vmem:[#allocation11 + $0x79c] ss:$48 sps:$4 sm:$0xff]  }
 0x476   :  { %8610 = vmatpush1.bf16.msra.mxu1 %v11941_v46  ;;  %8545 = vmatprep.subr.bf16.mxu0 %v11946_v52  ;;  %v12004_v46 = vld [vmem:[#allocation11 + $0x498] ss:$48 sps:$4 sm:$0xff]  }
 0x477   :  { %8611 = vmatprep.subr.bf16.mxu1 %v11949_v53  ;;  %v12007_v52 = vld [vmem:[#allocation11 + $0x798] ss:$48 sps:$4 sm:$0xff]   ;;  %v12012_v53 = vld [vmem:[#allocation11 + $0x4fc] ss:$48 sps:$4 sm:$0xff]  }
 0x479   :  { %8546 = vmatpush1.bf16.msra.mxu0 %v11944_v38  ;;  %v12015_v38 = vld [vmem:[#allocation11 + $0x7fc] ss:$48 sps:$4 sm:$0xff]  }
 0x47a   :  { %8612 = vmatpush1.bf16.msra.mxu1 %v11947_v54  ;;  %8547 = vmatprep.subr.bf16.mxu0 %v11952_v42  ;;  %v12010_v54 = vld [vmem:[#allocation11 + $0x4f8] ss:$48 sps:$4 sm:$0xff]  }
 0x47b   :  { %8613 = vmatprep.subr.bf16.mxu1 %v11955_v8  ;;  %v12013_v42 = vld [vmem:[#allocation11 + $0x7f8] ss:$48 sps:$4 sm:$0xff]   ;;  %v12018_v8 = vld [vmem:[#allocation11 + $0x55c] ss:$48 sps:$4 sm:$0xff]  }
 0x47d   :  { %8548 = vmatpush1.bf16.msra.mxu0 %v11950_v22  ;;  %v12021_v22 = vld [vmem:[#allocation11 + $0x85c] ss:$48 sps:$4 sm:$0xff]  }
 0x47e   :  { %8614 = vmatpush1.bf16.msra.mxu1 %v11953_v25  ;;  %8549 = vmatprep.subr.bf16.mxu0 %v11958_v61 }
 0x47f   :  { %8615 = vmatprep.subr.bf16.mxu1 %v11961_v21 }
 0x481   :  { %8550 = vmatpush1.bf16.msra.mxu0 %v11956_v58 }
 0x482   :  { %8616 = vmatpush1.bf16.msra.mxu1 %v11959_v60  ;;  %8551 = vmatprep.subr.bf16.mxu0 %v11964_v0  ;;  %v12016_v0 = vld [vmem:[#allocation11 + $0x558] ss:$48 sps:$4 sm:$0xff]  }
 0x483   :  { %8617 = vmatprep.subr.bf16.mxu1 %v11967_v2  ;;  %v6479_v12 = vpop.f32.mrb[52].mxu0  ;;  %v12019_v2 = vld [vmem:[#allocation11 + $0x858] ss:$48 sps:$4 sm:$0xff]  }
 0x484   :  { %v12763_v4 = vadd.f32 %v6479_v12, %v12758_v17  ;;  %v6481_v13 = vpop.f32.mrb[53].mxu0  ;;  %v11983_v17 = vld [vmem:[#allocation11 + $0x618] ss:$48 sps:$4 sm:$0xff]  }
 0x485   :  { %v12765_v20 = vadd.f32 %v6481_v13, %v6441_v39  ;;  %v6483_v7 = vpop.f32.mrb[54].mxu0  ;;  %8552 = vmatpush1.bf16.msra.mxu0 %v11962_v5  ;;  %v11994_v39 = vld [vmem:[#allocation11 + $0x3dc] ss:$48 sps:$4 sm:$0xff]   ;;  %v12025_v12 = vld [vmem:[#allocation11 + $0x8b8] ss:$48 sps:$4 sm:$0xff]  }
 0x486   :  { %8618 = vmatpush1.bf16.msra.mxu1 %v11965_v62  ;;  %v6484_v18 = vpop.f32.mrb[55].mxu0  ;;  %8553 = vmatprep.subr.bf16.mxu0 %v11970_v14  ;;  %v12024_v62 = vld [vmem:[#allocation11 + $0x5bc] ss:$48 sps:$4 sm:$0xff]   ;;  %v12033_v13 = vld [vmem:[#allocation11 + $0x624] ss:$48 sps:$4 sm:$0xff]  }
 0x487   :  { %8619 = vmatprep.subr.bf16.mxu1 %v11973_v3  ;;  %v12027_v14 = vld [vmem:[#allocation11 + $0x8bc] ss:$48 sps:$4 sm:$0xff]   ;;  %v12022_v3 = vld [vmem:[#allocation11 + $0x5b8] ss:$48 sps:$4 sm:$0xff]   ;;  %v12031_v7 = vld [vmem:[#allocation11 + $0x620] ss:$48 sps:$4 sm:$0xff]  }
 0x488   :  { %v12034_v18 = vld [vmem:[#allocation11 + $0x80] ss:$48 sps:$4 sm:$0xff]  }
 0x489   :  { %8554 = vmatpush1.bf16.msra.mxu0 %v11968_v49  ;;  %v12036_v49 = vld [vmem:[#allocation11 + $0x84] ss:$48 sps:$4 sm:$0xff]  }
 0x48a   :  { %8620 = vmatpush1.bf16.msra.mxu1 %v11971_v15  ;;  %8555 = vmatprep.subr.bf16.mxu0 %v11976_v19  ;;  %v12039_v15 = vld [vmem:[#allocation11 + $0x684] ss:$48 sps:$4 sm:$0xff]   ;;  %v12037_v19 = vld [vmem:[#allocation11 + $0x680] ss:$48 sps:$4 sm:$0xff]  }
 0x48b   :  { %8621 = vmatprep.subr.bf16.mxu1 %v11979_v24  ;;  %v12042_v24 = vld [vmem:[#allocation11 + $0xe4] ss:$48 sps:$4 sm:$0xff]  }
 0x48d   :  { %8556 = vmatpush1.bf16.msra.mxu0 %v11974_v26  ;;  %v12045_v26 = vld [vmem:[#allocation11 + $0x6e4] ss:$48 sps:$4 sm:$0xff]  }
 0x48e   :  { %8622 = vmatpush1.bf16.msra.mxu1 %v11977_v28  ;;  %8648 = vmatprep.subr.bf16.mxu0 %v11985_v16  ;;  %v12040_v28 = vld [vmem:[#allocation11 + $0xe0] ss:$48 sps:$4 sm:$0xff]   ;;  %v12048_v16 = vld [vmem:[#allocation11 + $0x144] ss:$48 sps:$4 sm:$0xff]  }
 0x48f   :  { %8623 = vmatprep.subr.bf16.mxu1 %v11982_v29  ;;  %v12043_v29 = vld [vmem:[#allocation11 + $0x6e0] ss:$48 sps:$4 sm:$0xff]  }
 0x490   :  { %8558 = vmatmul.mubr.bf16.vlgmr.msra.gmra.mrb[68].mxu0 %v12748_v11 }
 0x491   :  { %8649 = vmatpush1.bf16.msra.mxu0 %v11983_v17  ;;  %8680 = vmatprep.mubr.bf16.mxu0 %v12393_v48  ;;  %v12046_v17 = vld [vmem:[#allocation11 + $0x140] ss:$48 sps:$4 sm:$0xff]  }
 0x492   :  { %8624 = vmatpush1.bf16.msra.mxu1 %v11980_v51  ;;  %8650 = vmatprep.subr.bf16.mxu0 %v11991_v31  ;;  %v12051_v51 = vld [vmem:[#allocation11 + $0x744] ss:$48 sps:$4 sm:$0xff]  }
 0x493   :  { %8625 = vmatprep.subr.bf16.mxu1 %v11988_v30  ;;  %v12049_v30 = vld [vmem:[#allocation11 + $0x740] ss:$48 sps:$4 sm:$0xff]   ;;  %v12054_v31 = vld [vmem:[#allocation11 + $0x1a4] ss:$48 sps:$4 sm:$0xff]  }
 0x495   :  { %8651 = vmatpush1.bf16.msra.mxu0 %v11989_v34  ;;  %v12052_v34 = vld [vmem:[#allocation11 + $0x1a0] ss:$48 sps:$4 sm:$0xff]  }
 0x496   :  { %8626 = vmatpush1.bf16.msra.mxu1 %v11986_v33  ;;  %8652 = vmatprep.subr.bf16.mxu0 %v11997_v45  ;;  %v12057_v33 = vld [vmem:[#allocation11 + $0x7a4] ss:$48 sps:$4 sm:$0xff]  }
 0x497   :  { %8627 = vmatprep.subr.bf16.mxu1 %v11994_v39  ;;  %v12055_v39 = vld [vmem:[#allocation11 + $0x7a0] ss:$48 sps:$4 sm:$0xff]   ;;  %v12060_v45 = vld [vmem:[#allocation11 + $0x204] ss:$48 sps:$4 sm:$0xff]  }
 0x499   :  { %8653 = vmatpush1.bf16.msra.mxu0 %v11995_v50  ;;  %v12058_v50 = vld [vmem:[#allocation11 + $0x200] ss:$48 sps:$4 sm:$0xff]  }
 0x49a   :  { %8628 = vmatpush1.bf16.msra.mxu1 %v11992_v32  ;;  %8654 = vmatprep.subr.bf16.mxu0 %v12003_v36  ;;  %v12063_v32 = vld [vmem:[#allocation11 + $0x804] ss:$48 sps:$4 sm:$0xff]  }
 0x49b   :  { %8629 = vmatprep.subr.bf16.mxu1 %v12000_v35  ;;  %v12061_v35 = vld [vmem:[#allocation11 + $0x800] ss:$48 sps:$4 sm:$0xff]   ;;  %v12066_v36 = vld [vmem:[#allocation11 + $0x264] ss:$48 sps:$4 sm:$0xff]  }
 0x49d   :  { %8655 = vmatpush1.bf16.msra.mxu0 %v12001_v40 }
 0x49e   :  { %8630 = vmatpush1.bf16.msra.mxu1 %v11998_v37  ;;  %8656 = vmatprep.subr.bf16.mxu0 %v12009_v44  ;;  %v12069_v37 = vld [vmem:[#allocation11 + $0x864] ss:$48 sps:$4 sm:$0xff]  }
 0x49f   :  { %8631 = vmatprep.subr.bf16.mxu1 %v12006_v41 }
 0x4a1   :  { %8657 = vmatpush1.bf16.msra.mxu0 %v12007_v52 }
 0x4a2   :  { %8632 = vmatpush1.bf16.msra.mxu1 %v12004_v46  ;;  %8658 = vmatprep.subr.bf16.mxu0 %v12015_v38 }
 0x4a3   :  { %8633 = vmatprep.subr.bf16.mxu1 %v12012_v53 }
 0x4a4   :  { %v6520_v25 = vpop.f32.mrb[52].mxu1 }
 0x4a5   :  { %v12770_v61 = vadd.f32 %v6520_v25, %v12656_v23  ;;  %v6522_v21 = vpop.f32.mrb[53].mxu1  ;;  %8659 = vmatpush1.bf16.msra.mxu0 %v12013_v42  ;;  %v12030_v23 = vld [vmem:[#allocation11 + $0x24] ss:$48 sps:$4 sm:$0xff]   ;;  %v12064_v42 = vld [vmem:[#allocation11 + $0x260] ss:$48 sps:$4 sm:$0xff]  }
 0x4a6   :  { %v12773_v58 = vadd.f32 %v6522_v21, %v12658_v27  ;;  %v6524_v60 = vpop.f32.mrb[54].mxu1  ;;  %8634 = vmatpush1.bf16.msra.mxu1 %v12010_v54  ;;  %8660 = vmatprep.subr.bf16.mxu0 %v12021_v22  ;;  %v12028_v27 = vld [vmem:[#allocation11 + $0x20] ss:$48 sps:$4 sm:$0xff]  }
 0x4a7   :  { %v6525_v5 = vpop.f32.mrb[55].mxu1  ;;  %8635 = vmatprep.subr.bf16.mxu1 %v12018_v8  ;;  %v12067_v8 = vld [vmem:[#allocation11 + $0x860] ss:$48 sps:$4 sm:$0xff]   ;;  %v12072_v60 = vld [vmem:[#allocation11 + $0x2c4] ss:$48 sps:$4 sm:$0xff]  }
 0x4a8   :  { %v12078_v5 = vld [vmem:[#allocation11 + $0x324] ss:$48 sps:$4 sm:$0xff]  }
 0x4a9   :  { %8661 = vmatpush1.bf16.msra.mxu0 %v12019_v2 }
 0x4aa   :  { %8636 = vmatpush1.bf16.msra.mxu1 %v12016_v0  ;;  %8662 = vmatprep.subr.bf16.mxu0 %v12027_v14  ;;  %v12075_v0 = vld [vmem:[#allocation11 + $0x8c4] ss:$48 sps:$4 sm:$0xff]   ;;  %v12076_v14 = vld [vmem:[#allocation11 + $0x320] ss:$48 sps:$4 sm:$0xff]  }
 0x4ab   :  { %8637 = vmatprep.subr.bf16.mxu1 %v12024_v62  ;;  %v12081_v62 = vld [vmem:[#allocation11 + $0x2c] ss:$48 sps:$4 sm:$0xff]  }
 0x4ad   :  { %8663 = vmatpush1.bf16.msra.mxu0 %v12025_v12  ;;  %v12084_v12 = vld [vmem:[#allocation11 + $0x384] ss:$48 sps:$4 sm:$0xff]  }
 0x4ae   :  { %8638 = vmatpush1.bf16.msra.mxu1 %v12022_v3  ;;  %8689 = vmatprep.subr.bf16.mxu0 %v12030_v23  ;;  %v12079_v3 = vld [vmem:[#allocation11 + $0x28] ss:$48 sps:$4 sm:$0xff]   ;;  %v12087_v23 = vld [vmem:[#allocation11 + $0x8c] ss:$48 sps:$4 sm:$0xff]  }
 0x4af   :  { %8730 = vmatprep.subr.bf16.mxu1 %v12033_v13  ;;  %v12082_v13 = vld [vmem:[#allocation11 + $0x380] ss:$48 sps:$4 sm:$0xff]  }
 0x4b0   :  { %8681 = vmatmul.mubr.bf16.vlgmr.msra.gmra.mrb[72].mxu0 %v12736_v10 }
 0x4b1   :  { %8640 = vmatmul.mubr.bf16.vlgmr.msra.gmra.mrb[72].mxu1 %v12748_v11  ;;  %8690 = vmatpush1.bf16.msra.mxu0 %v12028_v27  ;;  %v12085_v27 = vld [vmem:[#allocation11 + $0x88] ss:$48 sps:$4 sm:$0xff]  }
 0x4b2   :  { %8731 = vmatpush1.bf16.msra.mxu1 %v12031_v7  ;;  %8691 = vmatprep.subr.bf16.mxu0 %v12036_v49  ;;  %v12090_v7 = vld [vmem:[#allocation11 + $0x3e4] ss:$48 sps:$4 sm:$0xff]   ;;  %v12093_v49 = vld [vmem:[#allocation11 + $0xec] ss:$48 sps:$4 sm:$0xff]  }
 0x4b3   :  { %8732 = vmatprep.subr.bf16.mxu1 %v12039_v15  ;;  %8762 = vmatprep.mubr.bf16.mxu1 %v12393_v48  ;;  %v12088_v15 = vld [vmem:[#allocation11 + $0x3e0] ss:$48 sps:$4 sm:$0xff]  }
 0x4b4   :  { %8721 = vmatprep.mubr.bf16.mxu0 %v12721_v47 }
 0x4b5   :  { %8692 = vmatpush1.bf16.msra.mxu0 %v12034_v18  ;;  %v12091_v18 = vld [vmem:[#allocation11 + $0xe8] ss:$48 sps:$4 sm:$0xff]  }
 0x4b6   :  { %8733 = vmatpush1.bf16.msra.mxu1 %v12037_v19  ;;  %8693 = vmatprep.subr.bf16.mxu0 %v12042_v24  ;;  %v12096_v19 = vld [vmem:[#allocation11 + $0x444] ss:$48 sps:$4 sm:$0xff]   ;;  %v12099_v24 = vld [vmem:[#allocation11 + $0x14c] ss:$48 sps:$4 sm:$0xff]  }
 0x4b7   :  { %8734 = vmatprep.subr.bf16.mxu1 %v12045_v26  ;;  %v12094_v26 = vld [vmem:[#allocation11 + $0x440] ss:$48 sps:$4 sm:$0xff]  }
 0x4b9   :  { %8694 = vmatpush1.bf16.msra.mxu0 %v12040_v28  ;;  %v12097_v28 = vld [vmem:[#allocation11 + $0x148] ss:$48 sps:$4 sm:$0xff]  }
 0x4ba   :  { %8735 = vmatpush1.bf16.msra.mxu1 %v12043_v29  ;;  %8695 = vmatprep.subr.bf16.mxu0 %v12048_v16  ;;  %v12102_v29 = vld [vmem:[#allocation11 + $0x4a4] ss:$48 sps:$4 sm:$0xff]   ;;  %v12105_v16 = vld [vmem:[#allocation11 + $0x1ac] ss:$48 sps:$4 sm:$0xff]  }
 0x4bb   :  { %8736 = vmatprep.subr.bf16.mxu1 %v12051_v51  ;;  %v12100_v51 = vld [vmem:[#allocation11 + $0x4a0] ss:$48 sps:$4 sm:$0xff]  }
 0x4bd   :  { %8696 = vmatpush1.bf16.msra.mxu0 %v12046_v17  ;;  %v12108_v17 = vld [vmem:[#allocation11 + $0x504] ss:$48 sps:$4 sm:$0xff]  }
 0x4be   :  { %8737 = vmatpush1.bf16.msra.mxu1 %v12049_v30  ;;  %8697 = vmatprep.subr.bf16.mxu0 %v12054_v31  ;;  %v12111_v30 = vld [vmem:[#allocation11 + $0x20c] ss:$48 sps:$4 sm:$0xff]   ;;  %v12106_v31 = vld [vmem:[#allocation11 + $0x500] ss:$48 sps:$4 sm:$0xff]  }
 0x4bf   :  { %8738 = vmatprep.subr.bf16.mxu1 %v12057_v33  ;;  %v12109_v33 = vld [vmem:[#allocation11 + $0x208] ss:$48 sps:$4 sm:$0xff]  }
 0x4c1   :  { %8698 = vmatpush1.bf16.msra.mxu0 %v12052_v34  ;;  %v12114_v34 = vld [vmem:[#allocation11 + $0x564] ss:$48 sps:$4 sm:$0xff]  }
 0x4c2   :  { %8739 = vmatpush1.bf16.msra.mxu1 %v12055_v39  ;;  %8699 = vmatprep.subr.bf16.mxu0 %v12060_v45  ;;  %v12117_v39 = vld [vmem:[#allocation11 + $0x26c] ss:$48 sps:$4 sm:$0xff]  }
 0x4c3   :  { %8740 = vmatprep.subr.bf16.mxu1 %v12063_v32  ;;  %v6561_v40 = vpop.f32.mrb[56].mxu0 }
 0x4c4   :  { %v6602_v41 = vpop.f32.mrb[56].mxu1  ;;  %v6562_v44 = vadd.f32 %v6561_v40, %v12770_v61  ;;  %v6563_v46 = vpop.f32.mrb[57].mxu0  ;;  %v12070_v61 = vld [vmem:[#allocation11 + $0x2c0] ss:$48 sps:$4 sm:$0xff]   ;;  %v12120_v40 = vld [vmem:[#allocation11 + $0x5c4] ss:$48 sps:$4 sm:$0xff]  }
 0x4c5   :  { %v6604_v52 = vpop.f32.mrb[57].mxu1  ;;  %v6564_v53 = vadd.f32 %v6563_v46, %v12773_v58  ;;  %v6565_v38 = vpop.f32.mrb[58].mxu0  ;;  %8700 = vmatpush1.bf16.msra.mxu0 %v12058_v50  ;;  %v12073_v58 = vld [vmem:[#allocation11 + $0x8c0] ss:$48 sps:$4 sm:$0xff]   ;;  %v12121_v46 = vld [vmem:[#allocation11 + $0x2c8] ss:$48 sps:$4 sm:$0xff]  }
 0x4c6   :  { %v6606_v54 = vpop.f32.mrb[58].mxu1  ;;  %8741 = vmatpush1.bf16.msra.mxu1 %v12061_v35  ;;  %v12781_v22 = vadd.f32 %v6602_v41, %v6562_v44  ;;  %v6566_v25 = vpop.f32.mrb[59].mxu0  ;;  %8701 = vmatprep.subr.bf16.mxu0 %v12066_v36  ;;  %v12112_v35 = vld [vmem:[#allocation11 + $0x560] ss:$48 sps:$4 sm:$0xff]   ;;  %v12115_v36 = vld [vmem:[#allocation11 + $0x268] ss:$48 sps:$4 sm:$0xff]  }
 0x4c7   :  { %v6607_v21 = vpop.f32.mrb[59].mxu1  ;;  %8742 = vmatprep.subr.bf16.mxu1 %v12069_v37  ;;  %v12783_v2 = vadd.f32 %v6604_v52, %v6564_v53  ;;  %v12123_v41 = vld [vmem:[#allocation11 + $0x2cc] ss:$48 sps:$4 sm:$0xff]   ;;  %v12118_v44 = vld [vmem:[#allocation11 + $0x5c0] ss:$48 sps:$4 sm:$0xff]  }
 0x4c8   :  { %v12126_v52 = vld [vmem:[#allocation11 + $0x32c] ss:$48 sps:$4 sm:$0xff]   ;;  %v12124_v38 = vld [vmem:[#allocation11 + $0x328] ss:$48 sps:$4 sm:$0xff]  }
 0x4c9   :  { %8702 = vmatpush1.bf16.msra.mxu0 %v12064_v42  ;;  %v12129_v53 = vld [vmem:[#allocation11 + $0x62c] ss:$48 sps:$4 sm:$0xff]   ;;  %v12127_v54 = vld [vmem:[#allocation11 + $0x628] ss:$48 sps:$4 sm:$0xff]  }
 0x4ca   :  { %8743 = vmatpush1.bf16.msra.mxu1 %v12067_v8  ;;  %8703 = vmatprep.subr.bf16.mxu0 %v12072_v60  ;;  %v12132_v42 = vld [vmem:[#allocation11 + $0x38c] ss:$48 sps:$4 sm:$0xff]   ;;  %v12130_v25 = vld [vmem:[#allocation11 + $0x388] ss:$48 sps:$4 sm:$0xff]  }
 0x4cb   :  { %8744 = vmatprep.subr.bf16.mxu1 %v12075_v0  ;;  %v12135_v8 = vld [vmem:[#allocation11 + $0x68c] ss:$48 sps:$4 sm:$0xff]   ;;  %v12133_v21 = vld [vmem:[#allocation11 + $0x688] ss:$48 sps:$4 sm:$0xff]  }
 0x4cc   :  { %v12138_v60 = vld [vmem:[#allocation11 + $0x3ec] ss:$48 sps:$4 sm:$0xff]  }
 0x4cd   :  { %8704 = vmatpush1.bf16.msra.mxu0 %v12070_v61  ;;  %v12141_v0 = vld [vmem:[#allocation11 + $0x6ec] ss:$48 sps:$4 sm:$0xff]   ;;  %v12136_v61 = vld [vmem:[#allocation11 + $0x3e8] ss:$48 sps:$4 sm:$0xff]  }
 0x4ce   :  { %8745 = vmatpush1.bf16.msra.mxu1 %v12073_v58  ;;  %8705 = vmatprep.subr.bf16.mxu0 %v12078_v5  ;;  %v12139_v58 = vld [vmem:[#allocation11 + $0x6e8] ss:$48 sps:$4 sm:$0xff]   ;;  %v12144_v5 = vld [vmem:[#allocation11 + $0x44c] ss:$48 sps:$4 sm:$0xff]  }
 0x4cf   :  { %8771 = vmatprep.subr.bf16.mxu1 %v12081_v62  ;;  %v12147_v62 = vld [vmem:[#allocation11 + $0x74c] ss:$48 sps:$4 sm:$0xff]  }
 0x4d1   :  { %8763 = vmatmul.mubr.bf16.vlgmr.msra.gmra.mrb[76].mxu1 %v12736_v10  ;;  %8706 = vmatpush1.bf16.msra.mxu0 %v12076_v14  ;;  %v12142_v14 = vld [vmem:[#allocation11 + $0x448] ss:$48 sps:$4 sm:$0xff]  }
 0x4d2   :  { %8772 = vmatpush1.bf16.msra.mxu1 %v12079_v3  ;;  %8707 = vmatprep.subr.bf16.mxu0 %v12084_v12  ;;  %v12145_v3 = vld [vmem:[#allocation11 + $0x748] ss:$48 sps:$4 sm:$0xff]   ;;  %v12150_v12 = vld [vmem:[#allocation11 + $0x4ac] ss:$48 sps:$4 sm:$0xff]  }
 0x4d3   :  { %8773 = vmatprep.subr.bf16.mxu1 %v12087_v23  ;;  %8803 = vmatprep.mubr.bf16.mxu1 %v12721_v47  ;;  %v12103_v47 = vld [vmem:[#allocation11 + $0x1a8] ss:$48 sps:$4 sm:$0xff]   ;;  %v12153_v23 = vld [vmem:[#allocation11 + $0x7ac] ss:$48 sps:$4 sm:$0xff]  }
 0x4d5   :  { %8708 = vmatpush1.bf16.msra.mxu0 %v12082_v13  ;;  %v12148_v13 = vld [vmem:[#allocation11 + $0x4a8] ss:$48 sps:$4 sm:$0xff]  }
 0x4d6   :  { %8774 = vmatpush1.bf16.msra.mxu1 %v12085_v27  ;;  %8709 = vmatprep.subr.bf16.mxu0 %v12090_v7  ;;  %v12793_v27 = vld [vmem:[#allocation14] sm:$0xff] }
 0x4d7   :  { %8775 = vmatprep.subr.bf16.mxu1 %v12093_v49  ;;  %v12156_v7 = vld [vmem:[#allocation11 + $0x50c] ss:$48 sps:$4 sm:$0xff]  }
 0x4d8   :  { %v12159_v49 = vld [vmem:[#allocation11 + $0x80c] ss:$48 sps:$4 sm:$0xff]  }
 0x4d9   :  { %8710 = vmatpush1.bf16.msra.mxu0 %v12088_v15  ;;  %v12796_v15 = vsub.s32 0, %v12559_v43 }
 0x4da   :  { %8776 = vmatpush1.bf16.msra.mxu1 %v12091_v18  ;;  %8711 = vmatprep.subr.bf16.mxu0 %v12096_v19  ;;  %v12799_v18 = vsub.s32 1, %v12559_v43  ;;  %v12801_v19 = vld [vmem:[#allocation13] sm:$0xff] }
 0x4db   :  { %8777 = vmatprep.subr.bf16.mxu1 %v12099_v24  ;;  %v12804_v24 = vunpack.c.l.bf16 %v12793_v27 }
 0x4dd   :  { %8712 = vmatpush1.bf16.msra.mxu0 %v12094_v26  ;;  %v12807_v26 = vsub.s32 2, %v12559_v43 }
 0x4de   :  { %8778 = vmatpush1.bf16.msra.mxu1 %v12097_v28  ;;  %8713 = vmatprep.subr.bf16.mxu0 %v12102_v29  ;;  %v12810_v28 = vsub.s32 3, %v12559_v43  ;;  %v12154_v29 = vld [vmem:[#allocation11 + $0x508] ss:$48 sps:$4 sm:$0xff]  }
 0x4df   :  { %8779 = vmatprep.subr.bf16.mxu1 %v12105_v16  ;;  %v12157_v16 = vld [vmem:[#allocation11 + $0x808] ss:$48 sps:$4 sm:$0xff]  }
 0x4e1   :  { %8714 = vmatpush1.bf16.msra.mxu0 %v12100_v51  ;;  %v12162_v51 = vld [vmem:[#allocation11 + $0x56c] ss:$48 sps:$4 sm:$0xff]  }
 0x4e2   :  { %8780 = vmatpush1.bf16.msra.mxu1 %v12103_v47  ;;  %8715 = vmatprep.subr.bf16.mxu0 %v12108_v17  ;;  %v12165_v47 = vld [vmem:[#allocation11 + $0x86c] ss:$48 sps:$4 sm:$0xff]  }
 0x4e3   :  { %8781 = vmatprep.subr.bf16.mxu1 %v12111_v30  ;;  %v8872_v30 = vrot.slane %v12801_v19, %v12796_v15 }
 0x4e4   :  { %v12787_v45 = vpop.f32.mrb[60].mxu1 }
 0x4e5   :  { %v12789_v32 = vpop.f32.mrb[61].mxu1  ;;  %8716 = vmatpush1.bf16.msra.mxu0 %v12106_v31 }
 0x4e6   :  { %v8440_v50 = vpop.f32.mrb[62].mxu1  ;;  %8782 = vmatpush1.bf16.msra.mxu1 %v12109_v33  ;;  %8717 = vmatprep.subr.bf16.mxu0 %v12114_v34  ;;  %v8964_v33 = vrot.slane %v12804_v24, %v12796_v15  ;;  %v9112_v34 = vrot.slane %v12804_v24, %v12799_v18 }
 0x4e7   :  { %v8441_v37 = vpop.f32.mrb[63].mxu1  ;;  %8783 = vmatprep.subr.bf16.mxu1 %v12117_v39  ;;  %v8876_v50 = vrot.slane %v12801_v19, %v12799_v18 }
 0x4e8   :  { %v9116_v37 = vrot.slane %v12804_v24, %v12810_v28 }
 0x4e9   :  { %8718 = vmatpush1.bf16.msra.mxu0 %v12112_v35 }
 0x4ea   :  { %8784 = vmatpush1.bf16.msra.mxu1 %v12115_v36  ;;  %8719 = vmatprep.subr.bf16.mxu0 %v12120_v40  ;;  %v8968_v36 = vrot.slane %v12804_v24, %v12807_v26 }
 0x4eb   :  { %8785 = vmatprep.subr.bf16.mxu1 %v12123_v41  ;;  %v12163_v41 = vld [vmem:[#allocation11 + $0x868] ss:$48 sps:$4 sm:$0xff]  }
 0x4ed   :  { %8720 = vmatpush1.bf16.msra.mxu0 %v12118_v44 }
 0x4ee   :  { %8786 = vmatpush1.bf16.msra.mxu1 %v12121_v46  ;;  %8812 = vmatprep.subr.bf16.mxu0 %v12129_v53  ;;  %v12171_v53 = vld [vmem:[#allocation11 + $0x8cc] ss:$48 sps:$4 sm:$0xff]  }
 0x4ef   :  { %8787 = vmatprep.subr.bf16.mxu1 %v12126_v52  ;;  %v12168_v52 = vld [vmem:[#allocation11 + $0x5cc] ss:$48 sps:$4 sm:$0xff]  }
 0x4f0   :  { %8722 = vmatmul.mubr.bf16.vlgmr.msra.gmra.mrb[76].mxu0 %v12748_v11 }
 0x4f1   :  { %8813 = vmatpush1.bf16.msra.mxu0 %v12127_v54  ;;  %8844 = vmatprep.mubr.bf16.mxu0 %v12393_v48  ;;  %v12151_v48 = vld [vmem:[#allocation11 + $0x7a8] ss:$48 sps:$4 sm:$0xff]   ;;  %v9024_v54 = vrot.slane %v8964_v33, %v12796_v15 }
 0x4f2   :  { %8788 = vmatpush1.bf16.msra.mxu1 %v12124_v38  ;;  %8814 = vmatprep.subr.bf16.mxu0 %v12135_v8 }
 0x4f3   :  { %8789 = vmatprep.subr.bf16.mxu1 %v12132_v42  ;;  %v9172_v42 = vrot.slane %v9112_v34, %v12799_v18 }
 0x4f5   :  { %8815 = vmatpush1.bf16.msra.mxu0 %v12133_v21  ;;  %v9176_v21 = vrot.slane %v9116_v37, %v12799_v18 }
 0x4f6   :  { %8790 = vmatpush1.bf16.msra.mxu1 %v12130_v25  ;;  %8816 = vmatprep.subr.bf16.mxu0 %v12141_v0  ;;  %v9028_v25 = vrot.slane %v8968_v36, %v12796_v15 }
 0x4f7   :  { %8791 = vmatprep.subr.bf16.mxu1 %v12138_v60  ;;  %v12169_v60 = vld [vmem:[#allocation11 + $0x8c8] ss:$48 sps:$4 sm:$0xff]  }
 0x4f9   :  { %8817 = vmatpush1.bf16.msra.mxu0 %v12139_v58 }
 0x4fa   :  { %8792 = vmatpush1.bf16.msra.mxu1 %v12136_v61  ;;  %8818 = vmatprep.subr.bf16.mxu0 %v12147_v62 }
 0x4fb   :  { %8793 = vmatprep.subr.bf16.mxu1 %v12144_v5 }
 0x4fd   :  { %8819 = vmatpush1.bf16.msra.mxu0 %v12145_v3 }
 0x4fe   :  { %8794 = vmatpush1.bf16.msra.mxu1 %v12142_v14  ;;  %8820 = vmatprep.subr.bf16.mxu0 %v12153_v23 }
 0x4ff   :  { %8795 = vmatprep.subr.bf16.mxu1 %v12150_v12 }
 0x501   :  { %8821 = vmatpush1.bf16.msra.mxu0 %v12151_v48 }
 0x502   :  { %8796 = vmatpush1.bf16.msra.mxu1 %v12148_v13  ;;  %8822 = vmatprep.subr.bf16.mxu0 %v12159_v49  ;;  %v12842_v49 = vsub.s32 5, %v12559_v43 }
 0x503   :  { %8797 = vmatprep.subr.bf16.mxu1 %v12156_v7  ;;  %v8395_v17 = vpop.f32.mrb[60].mxu0  ;;  %v12839_v7 = vsub.s32 4, %v12559_v43 }
 0x504   :  { %v8437_v31 = vadd.f32 %v12787_v45, %v8395_v17  ;;  %v8397_v39 = vpop.f32.mrb[61].mxu0  ;;  %v12160_v45 = vld [vmem:[#allocation11 + $0x568] ss:$48 sps:$4 sm:$0xff]  }
 0x505   :  { %v8439_v35 = vadd.f32 %v12789_v32, %v8397_v39  ;;  %v8399_v40 = vpop.f32.mrb[62].mxu0  ;;  %8823 = vmatpush1.bf16.msra.mxu0 %v12157_v16  ;;  %v12848_v16 = vsub.s32 7, %v12559_v43  ;;  %v8884_v39 = vrot.slane %v12801_v19, %v12810_v28 }
 0x506   :  { %8798 = vmatpush1.bf16.msra.mxu1 %v12154_v29  ;;  %v8853_v44 = vadd.f32 %v8437_v31, %v12673_v55  ;;  %v8400_v46 = vpop.f32.mrb[63].mxu0  ;;  %8824 = vmatprep.subr.bf16.mxu0 %v12165_v47  ;;  %v12166_v55 = vld [vmem:[#allocation11 + $0x5c8] ss:$48 sps:$4 sm:$0xff]   ;;  %v12845_v29 = vsub.s32 6, %v12559_v43 }
 0x507   :  { %8799 = vmatprep.subr.bf16.mxu1 %v12162_v51  ;;  %v8854_v32 = vadd.f32 %v8439_v35, %v12675_v57 }
 0x508   :  { %v8929_v38 = vadd.f32 %v8872_v30, %v8853_v44  ;;  %v9120_v30 = vrot.slane %v12804_v24, %v12842_v49  ;;  %v8976_v43 = vrot.slane %v12804_v24, %v12845_v29 }
 0x509   :  { %v8930_v8 = vadd.f32 %v8876_v50, %v8854_v32  ;;  %8825 = vmatpush1.bf16.msra.mxu0 %v12163_v41  ;;  %v9124_v50 = vrot.slane %v12804_v24, %v12848_v16 }
 0x50a   :  { %8800 = vmatpush1.bf16.msra.mxu1 %v12160_v45  ;;  %v8941_v0 = vmax.f32 %v8929_v38, 0.0  ;;  %8826 = vmatprep.subr.bf16.mxu0 %v12171_v53  ;;  %v9036_v32 = vrot.slane %v8976_v43, %v12796_v15 }
 0x50b   :  { %8801 = vmatprep.subr.bf16.mxu1 %v12168_v52  ;;  %v8942_v61 = vmax.f32 %v8930_v8, 0.0  ;;  %v9180_v52 = vrot.slane %v9120_v30, %v12799_v18  ;;  %v9184_v38 = vrot.slane %v9124_v50, %v12799_v18 }
 0x50c   :  { %v9069_v57 = vmul.f32 %v9024_v54, %v8941_v0  ;;  %v9217_v58 = vmul.f32 %v9172_v42, %v8941_v0 }
 0x50d   :  { %v9070_v5 = vmul.f32 %v9028_v25, %v8942_v61  ;;  %v9218_v62 = vmul.f32 %v9176_v21, %v8942_v61  ;;  %8827 = vmatpush1.bf16.msra.mxu0 %v12169_v60 }
 0x50e   :  { %8802 = vmatpush1.bf16.msra.mxu1 %v12166_v55  ;;  %v9082_v14 = vsel %vm9081_vm0, %v9069_v57, 0.0  ;;  %v9229_v3 = vsel %vm9081_vm0, %v9217_v58, 0.0 }
 0x50f   :  { %v9083_v12 = vsel %vm9081_vm0, %v9070_v5, 0.0  ;;  %v9230_v23 = vsel %vm9081_vm0, %v9218_v62, 0.0 }
 0x510   :  { %v9084_v13 = vadd.f32 %v9083_v12, %v9082_v14  ;;  %v9231_v48 = vadd.f32 %v9230_v23, %v9229_v3  ;;  %8845 = vmatmul.mubr.bf16.vlgmr.msra.gmra.mrb[80].mxu0 %v12736_v10  ;;  %v8972_v10 = vrot.slane %v12804_v24, %v12839_v7  ;;  %v8956_v12 = vunpack.c.h.bf16 %v12793_v27 }
 0x511   :  { %8804 = vmatmul.mubr.bf16.vlgmr.msra.gmra.mrb[80].mxu1 %v12748_v11  ;;  %v8880_v11 = vrot.slane %v12801_v19, %v12807_v26 }
 0x512   :  { %v9032_v46 = vrot.slane %v8972_v10, %v12796_v15  ;;  %v8892_v10 = vrot.slane %v12801_v19, %v12842_v49  ;;  %v8984_v30 = vrot.slane %v8956_v12, %v12807_v26 }
 0x523   :  { %v8518_v47 = vpop.f32.mrb[64].mxu0 }
 0x524   :  { %v8477_v51 = vpop.f32.mrb[64].mxu1  ;;  %v8520_v33 = vpop.f32.mrb[65].mxu0 }
 0x525   :  { %v8519_v17 = vadd.f32 %v8518_v47, %v8477_v51  ;;  %v8479_v31 = vpop.f32.mrb[65].mxu1  ;;  %v8522_v36 = vpop.f32.mrb[66].mxu0  ;;  %v8888_v47 = vrot.slane %v12801_v19, %v12839_v7 }
 0x526   :  { %v8521_v34 = vadd.f32 %v8520_v33, %v8479_v31  ;;  %v8481_v35 = vpop.f32.mrb[66].mxu1  ;;  %v8523_v45 = vpop.f32.mrb[67].mxu0  ;;  %v9132_v31 = vrot.slane %v8956_v12, %v12810_v28 }
 0x527   :  { %v8855_v37 = vadd.f32 %v8519_v17, %v12689_v9  ;;  %v8482_v40 = vpop.f32.mrb[67].mxu1 }
 0x528   :  { %v8856_v41 = vadd.f32 %v8521_v34, %v12691_v56  ;;  %v9192_v40 = vrot.slane %v9132_v31, %v12799_v18 }
 0x529   :  { %v8931_v44 = vadd.f32 %v8880_v11, %v8855_v37  ;;  %v9044_v37 = vrot.slane %v8984_v30, %v12796_v15 }
 0x52a   :  { %v8932_v53 = vadd.f32 %v8884_v39, %v8856_v41 }
 0x52b   :  { %v8943_v54 = vmax.f32 %v8931_v44, 0.0 }
 0x52c   :  { %v8944_v24 = vmax.f32 %v8932_v53, 0.0 }
 0x52d   :  { %v9071_v42 = vmul.f32 %v9032_v46, %v8943_v54  ;;  %v9219_v8 = vmul.f32 %v9180_v52, %v8943_v54 }
 0x52e   :  { %v9072_v25 = vmul.f32 %v9036_v32, %v8944_v24  ;;  %v9220_v9 = vmul.f32 %v9184_v38, %v8944_v24 }
 0x52f   :  { %v9085_v21 = vsel %vm9081_vm0, %v9071_v42, 0.0  ;;  %v9232_v56 = vsel %vm9081_vm0, %v9219_v8, 0.0 }
 0x530   :  { %v9086_v55 = vadd.f32 %v9085_v21, %v9084_v13  ;;  %v9233_v60 = vadd.f32 %v9232_v56, %v9231_v48  ;;  %v9087_v0 = vsel %vm9081_vm0, %v9072_v25, 0.0  ;;  %v9234_v61 = vsel %vm9081_vm0, %v9220_v9, 0.0 }
 0x531   :  { %v8980_v13 = vrot.slane %v8956_v12, %v12796_v15  ;;  %v9128_v48 = vrot.slane %v8956_v12, %v12799_v18  ;;  %v8896_v56 = vrot.slane %v12801_v19, %v12845_v29 }
 0x532   :  { %v9088_v57 = vadd.f32 %v9087_v0, %v9086_v55  ;;  %v9235_v58 = vadd.f32 %v9234_v61, %v9233_v60  ;;  %v8988_v55 = vrot.slane %v8956_v12, %v12839_v7  ;;  %v9136_v60 = vrot.slane %v8956_v12, %v12842_v49 }
 0x533   :  { %v9040_v50 = vrot.slane %v8980_v13, %v12796_v15  ;;  %v9188_v35 = vrot.slane %v9128_v48, %v12799_v18 }
 0x544   :  { %v8600_v5 = vpop.f32.mrb[68].mxu1 }
 0x545   :  { %v8602_v62 = vpop.f32.mrb[69].mxu1 }
 0x546   :  { %v8604_v14 = vpop.f32.mrb[70].mxu1 }
 0x547   :  { %v8605_v3 = vpop.f32.mrb[71].mxu1 }
 0x563   :  { %v8559_v23 = vpop.f32.mrb[68].mxu0 }
 0x564   :  { %v8601_v51 = vadd.f32 %v8600_v5, %v8559_v23  ;;  %v8561_v17 = vpop.f32.mrb[69].mxu0  ;;  %v8992_v5 = vrot.slane %v8956_v12, %v12845_v29 }
 0x565   :  { %v8603_v11 = vadd.f32 %v8602_v62, %v8561_v17  ;;  %v8563_v33 = vpop.f32.mrb[70].mxu0  ;;  %v9140_v62 = vrot.slane %v8956_v12, %v12848_v16  ;;  %v9048_v17 = vrot.slane %v8988_v55, %v12796_v15 }
 0x566   :  { %v8857_v27 = vadd.f32 %v8601_v51, %v12708_v1  ;;  %v8564_v34 = vpop.f32.mrb[71].mxu0 }
 0x567   :  { %v8858_v39 = vadd.f32 %v8603_v11, %v12711_v6  ;;  %v9196_v11 = vrot.slane %v9136_v60, %v12799_v18  ;;  %v9200_v30 = vrot.slane %v9140_v62, %v12799_v18 }
 0x568   :  { %v8933_v43 = vadd.f32 %v8888_v47, %v8857_v27 }
 0x569   :  { %v8934_v36 = vadd.f32 %v8892_v10, %v8858_v39 }
 0x56a   :  { %v8945_v45 = vmax.f32 %v8933_v43, 0.0 }
 0x56b   :  { %v8946_v41 = vmax.f32 %v8934_v36, 0.0 }
 0x56c   :  { %v9073_v44 = vmul.f32 %v9040_v50, %v8945_v45  ;;  %v9221_v46 = vmul.f32 %v9188_v35, %v8945_v45 }
 0x56d   :  { %v9074_v52 = vmul.f32 %v9044_v37, %v8946_v41  ;;  %v9222_v53 = vmul.f32 %v9192_v40, %v8946_v41 }
 0x56e   :  { %v9089_v1 = vsel %vm9081_vm0, %v9073_v44, 0.0  ;;  %v9236_v6 = vsel %vm9081_vm0, %v9221_v46, 0.0 }
 0x56f   :  { %v9090_v32 = vadd.f32 %v9089_v1, %v9088_v57  ;;  %v9237_v38 = vadd.f32 %v9236_v6, %v9235_v58  ;;  %v9091_v54 = vsel %vm9081_vm0, %v9074_v52, 0.0  ;;  %v9238_v24 = vsel %vm9081_vm0, %v9222_v53, 0.0  ;;  %v8954_v52 = vld [vmem:[#allocation14 + $0x8] sm:$0xf]  ;;  %v8866_v1 = vld [vmem:[#allocation13 + $0x8] sm:$0xf] }
 0x570   :  { %v8900_v58 = vrot.slane %v12801_v19, %v12848_v16  ;;  %v9052_v19 = vrot.slane %v8992_v5, %v12796_v15  ;;  %v8957_v53 = vunpack.c.l.bf16 %v8954_v52 }
 0x571   :  { %v9092_v42 = vadd.f32 %v9091_v54, %v9090_v32  ;;  %v9239_v8 = vadd.f32 %v9238_v24, %v9237_v38  ;;  %v8904_v38 = vrot.slane %v8866_v1, %v12796_v15 }
 0x572   :  { %v8996_v54 = vrot.slane %v8957_v53, %v12796_v15  ;;  %v9144_v24 = vrot.slane %v8957_v53, %v12799_v18 }
 0x583   :  { %v8682_v9 = vpop.f32.mrb[72].mxu0 }
 0x584   :  { %v8641_v25 = vpop.f32.mrb[72].mxu1  ;;  %v8684_v61 = vpop.f32.mrb[73].mxu0 }
 0x585   :  { %v8683_v21 = vadd.f32 %v8682_v9, %v8641_v25  ;;  %v8643_v0 = vpop.f32.mrb[73].mxu1  ;;  %v8686_v3 = vpop.f32.mrb[74].mxu0  ;;  %v8908_v25 = vrot.slane %v8866_v1, %v12799_v18  ;;  %v9148_v9 = vrot.slane %v8957_v53, %v12810_v28 }
 0x586   :  { %v8685_v57 = vadd.f32 %v8684_v61, %v8643_v0  ;;  %v8645_v14 = vpop.f32.mrb[74].mxu1  ;;  %v8687_v47 = vpop.f32.mrb[75].mxu0 }
 0x587   :  { %v8859_v23 = vadd.f32 %v8683_v21, %v12742_v59  ;;  %v8646_v51 = vpop.f32.mrb[75].mxu1  ;;  %v9208_v62 = vrot.slane %v9148_v9, %v12799_v18 }
 0x588   :  { %v8860_v13 = vadd.f32 %v8685_v57, %v12744_v63  ;;  %v9056_v57 = vrot.slane %v8996_v54, %v12796_v15 }
 0x589   :  { %v8935_v48 = vadd.f32 %v8896_v56, %v8859_v23  ;;  %v9000_v56 = vrot.slane %v8957_v53, %v12807_v26 }
 0x58a   :  { %v8936_v10 = vadd.f32 %v8900_v58, %v8860_v13  ;;  %v9204_v58 = vrot.slane %v9144_v24, %v12799_v18 }
 0x58b   :  { %v8947_v31 = vmax.f32 %v8935_v48, 0.0  ;;  %v9060_v14 = vrot.slane %v9000_v56, %v12796_v15 }
 0x58c   :  { %v8948_v12 = vmax.f32 %v8936_v10, 0.0 }
 0x58d   :  { %v9075_v33 = vmul.f32 %v9048_v17, %v8947_v31  ;;  %v9223_v27 = vmul.f32 %v9196_v11, %v8947_v31 }
 0x58e   :  { %v9076_v34 = vmul.f32 %v9052_v19, %v8948_v12  ;;  %v9224_v59 = vmul.f32 %v9200_v30, %v8948_v12 }
 0x58f   :  { %v9093_v39 = vsel %vm9081_vm0, %v9075_v33, 0.0  ;;  %v9240_v63 = vsel %vm9081_vm0, %v9223_v27, 0.0 }
 0x590   :  { %v9241_v43 = vadd.f32 %v9240_v63, %v9239_v8  ;;  %v9242_v50 = vsel %vm9081_vm0, %v9224_v59, 0.0  ;;  %v9094_v35 = vadd.f32 %v9093_v39, %v9092_v42  ;;  %v9095_v36 = vsel %vm9081_vm0, %v9076_v34, 0.0 }
 0x591   :  { %v8912_v34 = vrot.slane %v8866_v1, %v12807_v26  ;;  %v9004_v63 = vrot.slane %v8957_v53, %v12839_v7 }
 0x592   :  { %v9096_v37 = vadd.f32 %v9095_v36, %v9094_v35  ;;  %v9243_v40 = vadd.f32 %v9242_v50, %v9241_v43  ;;  %v9152_v43 = vrot.slane %v8957_v53, %v12842_v49  ;;  %v8916_v35 = vrot.slane %v8866_v1, %v12810_v28 }
 0x593   :  { %v9064_v7 = vrot.slane %v9004_v63, %v12796_v15 }
 0x594   :  { %v9212_v49 = vrot.slane %v9152_v43, %v12799_v18 }
 0x5a4   :  { %v8764_v45 = vpop.f32.mrb[76].mxu1 }
 0x5a5   :  { %v8766_v41 = vpop.f32.mrb[77].mxu1 }
 0x5a6   :  { %v8768_v44 = vpop.f32.mrb[78].mxu1 }
 0x5a7   :  { %v8769_v46 = vpop.f32.mrb[79].mxu1 }
 0x5c3   :  { %v8723_v6 = vpop.f32.mrb[76].mxu0 }
 0x5c4   :  { %v8765_v32 = vadd.f32 %v8764_v45, %v8723_v6  ;;  %v8725_v42 = vpop.f32.mrb[77].mxu0  ;;  %v9156_v45 = vrot.slane %v8957_v53, %v12848_v16 }
 0x5c5   :  { %v8767_v8 = vadd.f32 %v8766_v41, %v8725_v42  ;;  %v8727_v21 = vpop.f32.mrb[78].mxu0 }
 0x5c6   :  { %v8861_v55 = vadd.f32 %v8765_v32, %v12763_v4  ;;  %v8728_v60 = vpop.f32.mrb[79].mxu0  ;;  %v9216_v1 = vrot.slane %v9156_v45, %v12799_v18 }
 0x5c7   :  { %v8862_v0 = vadd.f32 %v8767_v8, %v12765_v20 }
 0x5c8   :  { %v8937_v61 = vadd.f32 %v8904_v38, %v8861_v55 }
 0x5c9   :  { %v8938_v5 = vadd.f32 %v8908_v25, %v8862_v0 }
 0x5ca   :  { %v8949_v3 = vmax.f32 %v8937_v61, 0.0 }
 0x5cb   :  { %v8950_v23 = vmax.f32 %v8938_v5, 0.0 }
 0x5cc   :  { %v9077_v51 = vmul.f32 %v9056_v57, %v8949_v3  ;;  %v9225_v47 = vmul.f32 %v9204_v58, %v8949_v3 }
 0x5cd   :  { %v9226_v13 = vmul.f32 %v9208_v62, %v8950_v23  ;;  %v9078_v48 = vmul.f32 %v9060_v14, %v8950_v23 }
 0x5ce   :  { %v9097_v4 = vsel %vm9081_vm0, %v9077_v51, 0.0  ;;  %v9244_v20 = vsel %vm9081_vm0, %v9225_v47, 0.0 }
 0x5cf   :  { %v9098_v17 = vadd.f32 %v9097_v4, %v9096_v37  ;;  %v9099_v11 = vsel %vm9081_vm0, %v9078_v48, 0.0  ;;  %v9245_v10 = vadd.f32 %v9244_v20, %v9243_v40  ;;  %v9246_v19 = vsel %vm9081_vm0, %v9226_v13, 0.0 }
 0x5d0   :  { %v9008_v40 = vrot.slane %v8957_v53, %v12845_v29 }
 0x5d1   :  { %v9100_v30 = vadd.f32 %v9099_v11, %v9098_v17  ;;  %v9247_v31 = vadd.f32 %v9246_v19, %v9245_v10 }
 0x5d2   :  { %v9068_v28 = vrot.slane %v9008_v40, %v12796_v15 }
 0x5e3   :  { %v8846_v33 = vpop.f32.mrb[80].mxu0 }
 0x5e4   :  { %v8805_v12 = vpop.f32.mrb[80].mxu1  ;;  %v8848_v39 = vpop.f32.mrb[81].mxu0 }
 0x5e5   :  { %v8847_v27 = vadd.f32 %v8846_v33, %v8805_v12  ;;  %v8807_v59 = vpop.f32.mrb[81].mxu1  ;;  %v8850_v37 = vpop.f32.mrb[82].mxu0 }
 0x5e6   :  { %v8849_v50 = vadd.f32 %v8848_v39, %v8807_v59  ;;  %v8809_v36 = vpop.f32.mrb[82].mxu1  ;;  %v8851_v46 = vpop.f32.mrb[83].mxu0 }
 0x5e7   :  { %v8863_v41 = vadd.f32 %v8847_v27, %v12781_v22  ;;  %v8810_v44 = vpop.f32.mrb[83].mxu1 }
 0x5e8   :  { %v8864_v26 = vadd.f32 %v8849_v50, %v12783_v2 }
 0x5e9   :  { %v8939_v52 = vadd.f32 %v8912_v34, %v8863_v41 }
 0x5ea   :  { %v8940_v6 = vadd.f32 %v8916_v35, %v8864_v26 }
 0x5eb   :  { %v8951_v32 = vmax.f32 %v8939_v52, 0.0 }
 0x5ec   :  { %v8952_v29 = vmax.f32 %v8940_v6, 0.0 }
 0x5ed   :  { %v9079_v38 = vmul.f32 %v9064_v7, %v8951_v32  ;;  %v9227_v16 = vmul.f32 %v9212_v49, %v8951_v32 }
 0x5ee   :  { %v9080_v53 = vmul.f32 %v9068_v28, %v8952_v29  ;;  %v9228_v22 = vmul.f32 %v9216_v1, %v8952_v29 }
 0x5ef   :  { %v9101_v54 = vsel %vm9081_vm0, %v9079_v38, 0.0  ;;  %v9248_v2 = vsel %vm9081_vm0, %v9227_v16, 0.0 }
 0x5f0   :  { %v9102_v24 = vadd.f32 %v9101_v54, %v9100_v30  ;;  %v9103_v42 = vsel %vm9081_vm0, %v9080_v53, 0.0  ;;  %v9249_v8 = vadd.f32 %v9248_v2, %v9247_v31  ;;  %v9250_v25 = vsel %vm9081_vm0, %v9228_v22, 0.0 }
 0x5f2   :  { %v9104_v9 = vadd.f32 %v9103_v42, %v9102_v24  ;;  %v9251_v15 = vadd.f32 %v9250_v25, %v9249_v8 }
 0x5f4   :  { %9105 = vadd.xlane.f32.xlu0 %v9104_v9 }
 0x5f8   :  { %9252 = vadd.xlane.f32.xlu0 %v9251_v15 }
 0x681   :  { %v9106_v18 = vpop.xlane.xlu0 %9105 }
 0x682   :  { %9108 = vst.msk [vmem:[#allocation16] sm:$0x3] %vm9107_vm1, %v9106_v18 }
 0x685   :  { %v9253_v21 = vpop.xlane.xlu0 %9252 }
 0x686   :  { %9255 = vst.msk [vmem:[#allocation16] sm:$0x3] %vm9254_vm2, %v9253_v21 }
 0x687   :  { %12359 = shalt.err (!%p12356_p12)
}
 0x688   :  { %s12360_s5 = scalar_lea.hbm %s12961_s8, 32 }
 0x689   :  { %p12361_p13 = scmp.ne.s32.totalorder %s12961_s8, %s12360_s5  ;;  %p12364_p0 = scmp.lt.u32.totalorder %s12360_s5, %s12961_s8 }
 0x68b   :  { %p12366_p1 = pnand %p12364_p0, %p12361_p13 }
 0x68d   :  { %12369 = shalt.err (!%p12366_p1)
}
 0x68e   :  { %9265 = dma.vmem_to_hbm [thread:$0]  %s9263_s26, 32, %s12961_s8, [#allocation4]  }
 0x68f   :  { %12380 = dma.done.wait [#allocation4], 32  }
 0x690   :  { %12381 = vsyncadd [#allocation4], 4294967264 }
 0x691   :  { %9269 = vsyncpa [#allocation3], 1 }
 0x692   :  { %9270 = vsyncpa [#allocation6], 1 }
 0x693   :  { %9271 = vsyncpa [#allocation9], 1 }
 0x694   :  { %9272 = vsyncpa [#allocation12], 1 }
 0x695   :  { %9273 = vsyncpa [#allocation15], 1 }
 0x696   :  { %9274 = vsyncpa [#allocation4], 1 }

</bundles_post_ra>
